<compile_context>
chip_gen: v5e
topology: v5e:2x2
jax: 0.10.0
libtpu: 0.0.40
codegen_flags: <defaults>
</compile_context>

<pallas_src>
import jax
import jax.numpy as jnp
from jax.experimental import pallas as pl
from jax.experimental.pallas import tpu as pltpu

SDF_NET_BREADTH = 256
_H = SDF_NET_BREADTH


# --------------------------------------------------------------------------
# Kernels
# --------------------------------------------------------------------------
def _mlp_kernel_mxu_l1(x_ref,           # (tm, 8)  bf16 : [x0..x3, 1, 0, 0, 0]
                       w1_ref,          # (8, H)   bf16 : [w1; b1; 0]
                       w2_ref, b2_ref,  # (H, H) bf16, (1, H) bf16
                       w3_ref, b3_ref,  # (H, H) bf16, (1, H) bf16
                       w4_ref, b4_ref,  # (H, H) bf16, (1, H) f32
                       o_ref):
    # Layer 1 on the MXU; bias folded via the constant-1 column.  f32 accumulate.
    h = jnp.dot(x_ref[...], w1_ref[...], preferred_element_type=jnp.float32)
    h = jnp.maximum(h, 0.0).astype(jnp.bfloat16)

    # Layers 2-3: bf16 MXU operands, f32 accumulate, packed-bf16 bias+ReLU.
    h = jnp.dot(h, w2_ref[...], preferred_element_type=jnp.float32)
    h = jnp.maximum(h.astype(jnp.bfloat16) + b2_ref[...], 0.0)

    h = jnp.dot(h, w3_ref[...], preferred_element_type=jnp.float32)
    h = jnp.maximum(h.astype(jnp.bfloat16) + b3_ref[...], 0.0)

    # Layer 4: bf16 MXU operands, f32 epilogue.
    h = jnp.dot(h, w4_ref[...], preferred_element_type=jnp.float32)
    h = jnp.maximum(h + b4_ref[...], 0.0)

    o_ref[...] = h.astype(o_ref.dtype)


def _mlp_kernel_vpu_l1(x_ref,           # (tm, 4)  f32
                       w1_ref, b1_ref,  # (4, H) f32, (1, H) f32
                       w2_ref, b2_ref,  # (H, H) bf16, (1, H) f32
                       w3_ref, b3_ref,
                       w4_ref, b4_ref,
                       o_ref):
    # v5e path: layer 1 as 4 broadcast FMAs on the VPU (the MXU is the binding
    # unit on v5e, so no extra MXU pass is added); f32 epilogues (no bf16 VALU).
    x = x_ref[...]
    w1 = w1_ref[...]
    h = b1_ref[...] + x[:, 0:1] * w1[0:1, :]
    h = h + x[:, 1:2] * w1[1:2, :]
    h = h + x[:, 2:3] * w1[2:3, :]
    h = h + x[:, 3:4] * w1[3:4, :]
    h = jnp.maximum(h, 0.0)

    h = jnp.dot(h.astype(jnp.bfloat16), w2_ref[...],
                preferred_element_type=jnp.float32)
    h = jnp.maximum(h + b2_ref[...], 0.0)

    h = jnp.dot(h.astype(jnp.bfloat16), w3_ref[...],
                preferred_element_type=jnp.float32)
    h = jnp.maximum(h + b3_ref[...], 0.0)

    h = jnp.dot(h.astype(jnp.bfloat16), w4_ref[...],
                preferred_element_type=jnp.float32)
    h = jnp.maximum(h + b4_ref[...], 0.0)

    o_ref[...] = h.astype(o_ref.dtype)


# --------------------------------------------------------------------------
# Parameter prep (one-time, cache the result with the params)
# --------------------------------------------------------------------------
def _is_v5e():
    try:
        kind = jax.devices()[0].device_kind.lower()
    except Exception:
        return False
    return ("v5 lite" in kind) or ("v5e" in kind) or ("v5litepod" in kind)


def prepare_params(params, *, mxu_layer1=None):
    """One-time packing/casting of the 4 (w, b) pairs.

    mxu_layer1: None -> auto (MXU layer-1 on v6e/v7x, VPU layer-1 on v5e).
    """
    if mxu_layer1 is None:
        mxu_layer1 = not _is_v5e()
    (w1, b1), (w2, b2), (w3, b3), (w4, b4) = params
    H = _H
    bf16 = jnp.bfloat16

    if mxu_layer1:
        # Packed layer-1 weight: rows 0-3 = w1, row 4 = b1, rows 5-7 = 0.
        w1p = (jnp.zeros((8, H), jnp.float32)
               .at[:4, :].set(w1)
               .at[4, :].set(b1)
               .astype(bf16))
        tensors = (w1p,
                   w2.astype(bf16), b2.reshape(1, H).astype(bf16),
                   w3.astype(bf16), b3.reshape(1, H).astype(bf16),
                   w4.astype(bf16), b4.reshape(1, H).astype(jnp.float32))
    else:
        tensors = (w1.astype(jnp.float32), b1.reshape(1, H).astype(jnp.float32),
                   w2.astype(bf16), b2.reshape(1, H).astype(jnp.float32),
                   w3.astype(bf16), b3.reshape(1, H).astype(jnp.float32),
                   w4.astype(bf16), b4.reshape(1, H).astype(jnp.float32))
    return {"mxu_layer1": bool(mxu_layer1), "tensors": tensors}


# --------------------------------------------------------------------------
# Forward
# --------------------------------------------------------------------------
def _choose_tm(N, tm):
    # Multiple of 256 (fills the 2x256x256 MXU on v6e/v7x, also a multiple of
    # 128 for v5e), and capped so the grid has >=2 steps -> both v7x
    # TensorCores get work (harmless extra step on 1-TC chips).
    tm = max(256, (int(tm) // 256) * 256)
    two_tiles = ((pl.cdiv(N, 2) + 255) // 256) * 256
    return max(256, min(tm, two_tiles))


def modelf_forward(psdf, params, *, tm=2048, out_dtype=None):
    """Fused MLP encoder forward.

    psdf: (N, 4) float32; any N (batch is zero-padded to a tile multiple and
    the result is sliced back).
    params: output of prepare_params(), or the raw list of (w, b) pairs
    (prepped on the fly — prefer passing the prepped dict to avoid per-call
    casts).
    tm: batch tile; 1024-2048 amortizes per-step overhead, keep <=2048 on
    v7x (64 MiB VMEM).
    out_dtype: None -> psdf.dtype (float32, matches the PyTorch module);
    jnp.bfloat16 halves HBM writeback on v6e if tolerated downstream.
    """
    if not (isinstance(params, dict) and "tensors" in params):
        params = prepare_params(params)

    N, fin = psdf.shape
    assert fin == 4
    H = _H
    out_dtype = psdf.dtype if out_dtype is None else out_dtype

    tm = _choose_tm(N, tm)
    num_tiles = pl.cdiv(N, tm)
    n_pad = num_tiles * tm
    x = psdf if n_pad == N else jnp.pad(psdf, ((0, n_pad - N), (0, 0)))

    const = lambda i: (0, 0)          # weights/biases: whole (resident) block
    row = lambda i: (i, 0)            # batch-tiled input/output

    if params["mxu_layer1"]:
        # (N, 8) bf16 input: [x, 1, 0, 0, 0] — column 4 folds b1 into the matmul.
        x_in = jnp.concatenate(
            [x, jnp.ones((n_pad, 1), x.dtype), jnp.zeros((n_pad, 3), x.dtype)],
            axis=1).astype(jnp.bfloat16)
        kernel = _mlp_kernel_mxu_l1
        in_specs = [
            pl.BlockSpec((tm, 8), row),     # x (bf16, bias column folded)
            pl.BlockSpec((8, H), const),    # packed [w1; b1] (bf16)
            pl.BlockSpec((H, H), const),    # w2 (bf16)
            pl.BlockSpec((1, H), const),    # b2 (bf16)
            pl.BlockSpec((H, H), const),    # w3 (bf16)
            pl.BlockSpec((1, H), const),    # b3 (bf16)
            pl.BlockSpec((H, H), const),    # w4 (bf16)
            pl.BlockSpec((1, H), const),    # b4 (f32)
        ]
    else:
        x_in = x
        kernel = _mlp_kernel_vpu_l1
        in_specs = [
            pl.BlockSpec((tm, fin), row),   # x (f32)
            pl.BlockSpec((fin, H), const),  # w1 (f32)
            pl.BlockSpec((1, H), const),    # b1 (f32)
            pl.BlockSpec((H, H), const),    # w2 (bf16)
            pl.BlockSpec((1, H), const),    # b2 (f32)
            pl.BlockSpec((H, H), const),    # w3 (bf16)
            pl.BlockSpec((1, H), const),    # b3 (f32)
            pl.BlockSpec((H, H), const),    # w4 (bf16)
            pl.BlockSpec((1, H), const),    # b4 (f32)
        ]

    out = pl.pallas_call(
        kernel,
        out_shape=jax.ShapeDtypeStruct((n_pad, H), out_dtype),
        grid_spec=pltpu.PrefetchScalarGridSpec(
            num_scalar_prefetch=0,
            grid=(num_tiles,),
            in_specs=in_specs,
            out_specs=pl.BlockSpec((tm, H), row),
        ),
        compiler_params=pltpu.CompilerParams(
            dimension_semantics=("parallel",),
            # Headroom for tm sweeps (v5e scoped default is 16 MiB); stays
            # under v7x's 64 MiB physical VMEM for tm <= 2048.
            vmem_limit_bytes=48 * 1024 * 1024,
        ),
    )(x_in, *params["tensors"])

    return out if n_pad == N else out[:N]


# --------------------------------------------------------------------------
# Init + reference
# --------------------------------------------------------------------------
def init_params(key):
    """Deterministic init mimicking PyTorch nn.Linear default:
    U(-1/sqrt(fan_in), 1/sqrt(fan_in)) for weights and biases."""
    H = _H
    dims = [(4, H), (H, H), (H, H), (H, H)]
    params = []
    for (fan_in, fan_out) in dims:
        key, kw, kb = jax.random.split(key, 3)
        bound = 1.0 / jnp.sqrt(fan_in)
        w = jax.random.uniform(kw, (fan_in, fan_out), jnp.float32,
                               minval=-bound, maxval=bound)
        b = jax.random.uniform(kb, (fan_out,), jnp.float32,
                               minval=-bound, maxval=bound)
        params.append((w, b))
    return params


def reference_forward(psdf, params):
    h = psdf
    for (w, b) in params:
        h = jnp.maximum(h @ w + b, 0.0)
    return h


if __name__ == "__main__":
    key = jax.random.PRNGKey(0)
    kx, kp = jax.random.split(key)

    N = 384                      # not a tile multiple -> exercises padding;
                                 # tm auto-caps to 256 -> 2 grid steps.
    psdf = jax.random.normal(kx, (N, 4), jnp.float32)
    params = init_params(kp)

    prepped = prepare_params(params)          # one-time prep (hoisted, cached)
    out = modelf_forward(psdf, prepped)       # tm auto-chosen from default 2048
    out = jax.block_until_ready(out)

    ref = reference_forward(psdf, params)
    assert out.shape == (N, SDF_NET_BREADTH)

    # bf16 matmul operands -> compare with a relative max-error bound.
    err = float(jnp.max(jnp.abs(out - ref)) / (jnp.max(jnp.abs(ref)) + 1e-6))
    assert err < 2e-2, f"mismatch vs reference: rel err {err}"

    print("KERNEL_OK")
</pallas_src>

<mosaic_0001>
module attributes {stable_mosaic.version = 11 : i64} {
  func.func @_mlp_kernel_mxu_l1(%arg0: i32, %arg1: memref<256x8xbf16, #tpu.memory_space<vmem>>, %arg2: memref<8x256xbf16, #tpu.memory_space<vmem>>, %arg3: memref<256x256xbf16, #tpu.memory_space<vmem>>, %arg4: memref<1x256xbf16, #tpu.memory_space<vmem>>, %arg5: memref<256x256xbf16, #tpu.memory_space<vmem>>, %arg6: memref<1x256xbf16, #tpu.memory_space<vmem>>, %arg7: memref<256x256xbf16, #tpu.memory_space<vmem>>, %arg8: memref<1x256xf32, #tpu.memory_space<vmem>>, %arg9: memref<256x256xf32, #tpu.memory_space<vmem>>) attributes {dimension_semantics = [#tpu.dimension_semantics<parallel>], iteration_bounds = array<i64: 2>, scalar_prefetch = 0 : i64, scratch_operands = 0 : i64, tpu.core_type = #tpu.core_type<tc>, window_params = [{transform_indices = @transform_0, window_bounds = array<i64: 256, 8>}, {pipeline_mode = #tpu.pipeline_mode<synchronous>, transform_indices = @transform_1, window_bounds = array<i64: 8, 256>}, {pipeline_mode = #tpu.pipeline_mode<synchronous>, transform_indices = @transform_2, window_bounds = array<i64: 256, 256>}, {pipeline_mode = #tpu.pipeline_mode<synchronous>, transform_indices = @transform_3, window_bounds = array<i64: 1, 256>}, {pipeline_mode = #tpu.pipeline_mode<synchronous>, transform_indices = @transform_4, window_bounds = array<i64: 256, 256>}, {pipeline_mode = #tpu.pipeline_mode<synchronous>, transform_indices = @transform_5, window_bounds = array<i64: 1, 256>}, {pipeline_mode = #tpu.pipeline_mode<synchronous>, transform_indices = @transform_6, window_bounds = array<i64: 256, 256>}, {pipeline_mode = #tpu.pipeline_mode<synchronous>, transform_indices = @transform_7, window_bounds = array<i64: 1, 256>}, {transform_indices = @transform_8, window_bounds = array<i64: 256, 256>}]} {
    %c0 = arith.constant 0 : index
    %c0_0 = arith.constant 0 : index
    %0 = vector.load %arg1[%c0, %c0_0] : memref<256x8xbf16, #tpu.memory_space<vmem>>, vector<256x8xbf16>
    %c0_1 = arith.constant 0 : index
    %c0_2 = arith.constant 0 : index
    %1 = vector.load %arg2[%c0_1, %c0_2] : memref<8x256xbf16, #tpu.memory_space<vmem>>, vector<8x256xbf16>
    %cst = arith.constant dense<0.000000e+00> : vector<256x256xf32>
    %2 = tpu.matmul %0, %1, %cst {dimension_numbers = #tpu.dot_dimension_numbers<[1], [0], [0], [1], [0, 0, 1, 1], [], []>} : vector<256x8xbf16>, vector<8x256xbf16>, vector<256x256xf32> -> vector<256x256xf32>
    %cst_3 = arith.constant 0.000000e+00 : f32
    %3 = vector.broadcast %cst_3 : f32 to vector<256x256xf32>
    %4 = arith.maximumf %2, %3 : vector<256x256xf32>
    %5 = arith.truncf %4 : vector<256x256xf32> to vector<256x256xbf16>
    %c0_4 = arith.constant 0 : index
    %c0_5 = arith.constant 0 : index
    %6 = vector.load %arg3[%c0_4, %c0_5] : memref<256x256xbf16, #tpu.memory_space<vmem>>, vector<256x256xbf16>
    %cst_6 = arith.constant dense<0.000000e+00> : vector<256x256xf32>
    %7 = tpu.matmul %5, %6, %cst_6 {dimension_numbers = #tpu.dot_dimension_numbers<[1], [0], [0], [1], [0, 0, 1, 1], [], []>} : vector<256x256xbf16>, vector<256x256xbf16>, vector<256x256xf32> -> vector<256x256xf32>
    %8 = arith.truncf %7 : vector<256x256xf32> to vector<256x256xbf16>
    %c0_7 = arith.constant 0 : index
    %c0_8 = arith.constant 0 : index
    %9 = vector.load %arg4[%c0_7, %c0_8] : memref<1x256xbf16, #tpu.memory_space<vmem>>, vector<1x256xbf16>
    %10 = vector.broadcast %9 : vector<1x256xbf16> to vector<256x256xbf16>
    %11 = arith.addf %8, %10 : vector<256x256xbf16>
    %cst_9 = arith.constant 0.000000e+00 : bf16
    %12 = vector.broadcast %cst_9 : bf16 to vector<256x256xbf16>
    %13 = arith.maximumf %11, %12 : vector<256x256xbf16>
    %c0_10 = arith.constant 0 : index
    %c0_11 = arith.constant 0 : index
    %14 = vector.load %arg5[%c0_10, %c0_11] : memref<256x256xbf16, #tpu.memory_space<vmem>>, vector<256x256xbf16>
    %cst_12 = arith.constant dense<0.000000e+00> : vector<256x256xf32>
    %15 = tpu.matmul %13, %14, %cst_12 {dimension_numbers = #tpu.dot_dimension_numbers<[1], [0], [0], [1], [0, 0, 1, 1], [], []>} : vector<256x256xbf16>, vector<256x256xbf16>, vector<256x256xf32> -> vector<256x256xf32>
    %16 = arith.truncf %15 : vector<256x256xf32> to vector<256x256xbf16>
    %c0_13 = arith.constant 0 : index
    %c0_14 = arith.constant 0 : index
    %17 = vector.load %arg6[%c0_13, %c0_14] : memref<1x256xbf16, #tpu.memory_space<vmem>>, vector<1x256xbf16>
    %18 = vector.broadcast %17 : vector<1x256xbf16> to vector<256x256xbf16>
    %19 = arith.addf %16, %18 : vector<256x256xbf16>
    %cst_15 = arith.constant 0.000000e+00 : bf16
    %20 = vector.broadcast %cst_15 : bf16 to vector<256x256xbf16>
    %21 = arith.maximumf %19, %20 : vector<256x256xbf16>
    %c0_16 = arith.constant 0 : index
    %c0_17 = arith.constant 0 : index
    %22 = vector.load %arg7[%c0_16, %c0_17] : memref<256x256xbf16, #tpu.memory_space<vmem>>, vector<256x256xbf16>
    %cst_18 = arith.constant dense<0.000000e+00> : vector<256x256xf32>
    %23 = tpu.matmul %21, %22, %cst_18 {dimension_numbers = #tpu.dot_dimension_numbers<[1], [0], [0], [1], [0, 0, 1, 1], [], []>} : vector<256x256xbf16>, vector<256x256xbf16>, vector<256x256xf32> -> vector<256x256xf32>
    %c0_19 = arith.constant 0 : index
    %c0_20 = arith.constant 0 : index
    %24 = vector.load %arg8[%c0_19, %c0_20] : memref<1x256xf32, #tpu.memory_space<vmem>>, vector<1x256xf32>
    %25 = vector.broadcast %24 : vector<1x256xf32> to vector<256x256xf32>
    %26 = arith.addf %23, %25 : vector<256x256xf32>
    %cst_21 = arith.constant 0.000000e+00 : f32
    %27 = vector.broadcast %cst_21 : f32 to vector<256x256xf32>
    %28 = arith.maximumf %26, %27 : vector<256x256xf32>
    %c0_22 = arith.constant 0 : index
    %c0_23 = arith.constant 0 : index
    %29 = vector.load %arg9[%c0_22, %c0_23] : memref<256x256xf32, #tpu.memory_space<vmem>>, vector<256x256xf32>
    tpu.vector_store %arg9[%c0_22, %c0_23], %28 {strides = array<i32>} : memref<256x256xf32, #tpu.memory_space<vmem>>, vector<256x256xf32>,
    return
  }
  func.func @transform_0(%arg0: i32) -> (i32, i32) {
    %c0_i32 = arith.constant 0 : i32
    %c0_i32_0 = arith.constant 0 : i32
    return %arg0, %c0_i32 : i32, i32
  }
  func.func @transform_1(%arg0: i32) -> (i32, i32) {
    %c0_i32 = arith.constant 0 : i32
    %c0_i32_0 = arith.constant 0 : i32
    %c0_i32_1 = arith.constant 0 : i32
    return %c0_i32, %c0_i32_0 : i32, i32
  }
  func.func @transform_2(%arg0: i32) -> (i32, i32) {
    %c0_i32 = arith.constant 0 : i32
    %c0_i32_0 = arith.constant 0 : i32
    %c0_i32_1 = arith.constant 0 : i32
    return %c0_i32, %c0_i32_0 : i32, i32
  }
  func.func @transform_3(%arg0: i32) -> (i32, i32) {
    %c0_i32 = arith.constant 0 : i32
    %c0_i32_0 = arith.constant 0 : i32
    %c0_i32_1 = arith.constant 0 : i32
    return %c0_i32, %c0_i32_0 : i32, i32
  }
  func.func @transform_4(%arg0: i32) -> (i32, i32) {
    %c0_i32 = arith.constant 0 : i32
    %c0_i32_0 = arith.constant 0 : i32
    %c0_i32_1 = arith.constant 0 : i32
    return %c0_i32, %c0_i32_0 : i32, i32
  }
  func.func @transform_5(%arg0: i32) -> (i32, i32) {
    %c0_i32 = arith.constant 0 : i32
    %c0_i32_0 = arith.constant 0 : i32
    %c0_i32_1 = arith.constant 0 : i32
    return %c0_i32, %c0_i32_0 : i32, i32
  }
  func.func @transform_6(%arg0: i32) -> (i32, i32) {
    %c0_i32 = arith.constant 0 : i32
    %c0_i32_0 = arith.constant 0 : i32
    %c0_i32_1 = arith.constant 0 : i32
    return %c0_i32, %c0_i32_0 : i32, i32
  }
  func.func @transform_7(%arg0: i32) -> (i32, i32) {
    %c0_i32 = arith.constant 0 : i32
    %c0_i32_0 = arith.constant 0 : i32
    %c0_i32_1 = arith.constant 0 : i32
    return %c0_i32, %c0_i32_0 : i32, i32
  }
  func.func @transform_8(%arg0: i32) -> (i32, i32) {
    %c0_i32 = arith.constant 0 : i32
    %c0_i32_0 = arith.constant 0 : i32
    return %arg0, %c0_i32 : i32, i32
  }
}

</mosaic_0001>

<bundles_post_ra>
// kernel: tpu_custom_call.1
= control target key start
LH: loop header
LB: loop body
LE: loop exit
PB: predicated region body
PF: predicated region fallthrough
CT: control target
= control target key end

     0   :  { %13 = vsyncpa [#allocation3], 0  ;;  %s5263_s0 = inlined_call_operand.vmem [shape: bf16[512,8], index: 0, kind: input, shape index: {}]   ;;  %s5264_s1 = inlined_call_operand.vmem [shape: bf16[8,256], index: 1, kind: input, shape index: {}]   ;;  %s5265_s2 = inlined_call_operand.vmem [shape: bf16[256,256], index: 2, kind: input, shape index: {}]   ;;  %s5266_s3 = inlined_call_operand.vmem [shape: bf16[1,256], index: 3, kind: input, shape index: {}]   ;;  %s5267_s4 = inlined_call_operand.hbm [shape: bf16[256,256], index: 4, kind: input, shape index: {}]   ;;  %s5268_s5 = inlined_call_operand.vmem [shape: bf16[1,256], index: 5, kind: input, shape index: {}]   ;;  %s5269_s6 = inlined_call_operand.hbm [shape: bf16[256,256], index: 6, kind: input, shape index: {}]   ;;  %s5270_s7 = inlined_call_operand.vmem [shape: f32[1,256], index: 7, kind: input, shape index: {}]   ;;  %s5271_s8 = inlined_call_operand.hbm [shape: f32[512,256], index: 8, kind: output, shape index: {}]  }
   0x1   :  { %14 = vsyncpa [#allocation6], 0 }
   0x2   :  { %15 = vsyncpa [#allocation4], 0 }
   0x3   :  { %17 = vsyncpa [#allocation4 + $0x1], 0  ;;  %s4267_s27 = smov 0   ;;  %s4269_s28 = smov 0  }
   0x4   :  { %s4271_s29 = smov 0   ;;  %s4273_s30 = smov 0  }
   0x5 LB: > { %s4288_s9 = sadd.s32 4294967295, %s4214_s30   ;;  %s3399_s10 = sadd.s32 4294967294, %s4214_s30   ;;  %s4214_s30 = sphi %s4273_s30, %s5278_s30   ;;  %s4210_s29 = sphi %s4271_s29, %s5277_s29   ;;  %s4206_s28 = sphi %s4269_s28, %s5276_s28   ;;  %s4202_s27 = sphi %s4267_s27, %s5275_s27  }
   0x6   : > { %s4292_s11 = sadd.s32 1, %s4214_s30   ;;  %s203_s12 = sadd.s32 1, %s4210_s29 }
   0x7   : > { %s200_s13 = ssub.s32 %s4214_s30, %s4292_s11  ;;  %p213_p0 = scmp.ne.s32.totalorder %s4210_s29, %s4206_s28 }
   0x8   : > { %p201_p1 = scmp.eq.s32.totalorder %s200_s13, 0  ;;  %p214_p2 = scmp.eq.s32.totalorder %s4288_s9, 1 }
   0x9   : > { %p219_p3 = scmp.ne.s32.totalorder %s4206_s28, %s4202_s27  ;;  %p220_p4 = scmp.eq.s32.totalorder %s3399_s10, 1 }
   0xa   : > { %s4303_s14 = scalar_select %p201_p1, %s4210_s29, %s203_s12  }
   0xb   : > { %p4305_p5 = por %p214_p2, %p213_p0  ;;  %p4309_p6 = por %p220_p4, %p219_p3 }
   0xc   : > { %p3400_p7 = scmp.ge.s32.totalorder %s4214_s30, 1  ;;  %p227_p8 = scmp.lt.s32.totalorder %s4214_s30, 3 }
   0xd   : > { %p4041_p9 = scmp.eq.s32.totalorder %s4288_s9, 0  ;;  %s247_s20 = sshll.u32 %s5267_s4, 4  ;;  %s248_s20 = int_to_ptr.hbm [resolvable:$true] %s247_s20 }
   0xe   : > { %p4316_p10 = pnand %p3400_p7, %p227_p8  ;;  %s4216_s21 = smov [#allocation2]  }
   0xf   : > { %s249_s22 = sshll.u32 %s4216_s21, 4  ;;  %s264_s25 = sshll.u32 %s5269_s6, 4  ;;  %s250_s22 = int_to_ptr.vmem [resolvable:$true] %s249_s22  ;;  %s265_s25 = int_to_ptr.hbm [resolvable:$true] %s264_s25 }
  0x10   : > { %p4030_p11 = pneg %p4316_p10  ;;  %s4217_s26 = smov 128  }
  0x11   : > { %s4218_s10 = smov 8   ;;  %s4219_s12 = smov [#allocation5]  }
  0x12   : > { %p4031_p12 = pnand %p4041_p9, %p4030_p11  ;;  %s266_s13 = sshll.u32 %s4219_s12, 4  ;;  %s267_s13 = int_to_ptr.vmem [resolvable:$true] %s266_s13 }
  0x13   : > { %294 = sbr.rel (%p4316_p10) target bundleno = 1092 (0x444), region = 52 }
  0x14   : > { %4033 = dma.hbm_to_vmem [thread:$0]  (!%p4031_p12), %s248_s20, 4096, %s250_s22, [#allocation3], %s4217_s26, %s4217_s26, %s4218_s10  }
  0x15   : > { %4036 = dma.hbm_to_vmem [thread:$0]  (!%p4031_p12), %s265_s25, 4096, %s267_s13, [#allocation6], %s4217_s26, %s4217_s26, %s4218_s10  }
  0x18   : > { %4189 = dma.done.wait (%p4041_p9), [#allocation3], 4096  }
  0x19   : > { %4191 = vsyncadd (%p4041_p9), [#allocation3], 4294963200 }
  0x1a   : > { %4193 = dma.done.wait (%p4041_p9), [#allocation6], 4096  }
  0x1b   : > { %4195 = vsyncadd (%p4041_p9), [#allocation6], 4294963200  ;;  %s3408_s18 = sshll.u32 %s4288_s9, 5  ;;  %v374_v0 = vld [vmem:[%s5264_s1] sm:$0xff]  ;;  %vm509_vm0 = vcmask 1043456   ;;  %vm460_vm1 = vcmask 64512  }
  0x1c   : > { %p335_p13 = scmp.lt.s32.totalorder %s3408_s18, 63  ;;  %v456_v1 = vunpack.c.l.b16 %v374_v0  ;;  %v457_v2 = vunpack.c.h.b16 %v374_v0  ;;  %v3564_v3 = vld [vmem:[%s5265_s2 + $0x70] sm:$0xf]  ;;  %v3927_v4 = vld [vmem:[%s5265_s2 + $0x74] sm:$0xf0]  ;;  %s331_s24 = sand.u32 1, %s4206_s28  }
  0x1d   : > { %v3628_v5 = vld [vmem:[%s5265_s2 + $0xf0] sm:$0xf]  ;;  %v3943_v6 = vld [vmem:[%s5265_s2 + $0xf4] sm:$0xf0]  ;;  %v3565_v9 = vor.u32 %v3927_v4, %v3564_v3  ;;  %v3926_v16 = vld [vmem:[%s5265_s2 + $0x74] sm:$0xf] }
  0x1e   : > { %s5280_s18 = smov (!%p335_p13, %s3408_s18), 63  ;;  %v458_v7 = vpack.c.b16 %v456_v1, %v456_v1  ;;  %v459_v8 = vpack.c.b16 %v457_v2, %v457_v2  ;;  %v3629_v10 = vor.u32 %v3943_v6, %v3628_v5  ;;  %v3566_v17 = vld [vmem:[%s5265_s2 + $0x78] sm:$0xf0]  ;;  %v3942_v19 = vld [vmem:[%s5265_s2 + $0xf4] sm:$0xf]  ;;  %s3407_s26 = sshll.u32 %s331_s24, 9 }
  0x1f   : > { %s3409_s19 = sshll.u32 %s5280_s18, 2  ;;  %v3569_v18 = vor.u32 %v3926_v16, %v3566_v17  ;;  %v3630_v20 = vld [vmem:[%s5265_s2 + $0xf8] sm:$0xf0]  ;;  %v3556_v21 = vld [vmem:[%s5265_s2 + $0x60] sm:$0xf]  ;;  %s5073_s10 = scalar_lea.vmem [#allocation7], %s3407_s26 }
  0x20   : > { %s4350_s25 = scalar_lea.vmem %s5263_s0, %s3409_s19  ;;  %v511_v11 = vsel %vm509_vm0, %v458_v7, 0  ;;  %v514_v12 = vsel %vm509_vm0, %v459_v8, 0  ;;  %v3633_v22 = vor.u32 %v3942_v19, %v3630_v20  ;;  %v3925_v23 = vld [vmem:[%s5265_s2 + $0x64] sm:$0xf0]  ;;  %v3620_v24 = vld [vmem:[%s5265_s2 + $0xe0] sm:$0xf] }
  0x21   : > { %v3896_v13 = vld [vmem:[%s4350_s25] sm:$0xff]  ;;  %523 = vmatpush.bf16.msra.mxu0 %v511_v11  ;;  %612 = vmatpush.bf16.msra.mxu1 %v514_v12  ;;  %v3905_v15 = vld [vmem:[%s4350_s25 + $0x48] sm:$0xff]  ;;  %v3557_v26 = vor.u32 %v3925_v23, %v3556_v21  ;;  %v3906_v29 = vld [vmem:[%s4350_s25 + $0x50] sm:$0xff]  ;;  %s4009_s12 = sshll.u32 %s4288_s9, 9  ;;  %s3299_s9 = scalar_lea.sflag [#allocation4], %s331_s24 }
  0x22   : > { %v4363_v14 = vld [vmem:[%s4350_s25 + $0x40] sm:$0xff]  ;;  %4011 = vmatpush.bf16.msra.mxu3 %v514_v12  ;;  %4010 = vmatpush.bf16.msra.mxu2 %v511_v11  ;;  %v3941_v25 = vld [vmem:[%s5265_s2 + $0xe4] sm:$0xf0]  ;;  %v3558_v31 = vld [vmem:[%s5265_s2 + $0x68] sm:$0xf0]  ;;  %s3311_s20 = scalar_lea.hbm %s5271_s8, %s4009_s12  ;;  %s4164_s26 = scalar_lea.hbm %s5271_s8, 1024 }
  0x23   : > { %v3621_v27 = vor.u32 %v3941_v25, %v3620_v24  ;;  %v3897_v28 = vld [vmem:[%s4350_s25 + $0x8] sm:$0xff]  ;;  %v3924_v30 = vld [vmem:[%s5265_s2 + $0x64] sm:$0xf]  ;;  %v3548_v35 = vld [vmem:[%s5265_s2 + $0x50] sm:$0xf]  ;;  %s3314_s19 = sshll.u32 %s3311_s20, 4  ;;  %s3315_s19 = int_to_ptr.hbm [resolvable:$true] %s3314_s19 }
  0x24   : > { %3474 = vmatmul.msk.bf16.vlgmr.msra.gmra.mxu0 %vm460_vm1, %v3896_v13  ;;  %3490 = vmatmul.msk.bf16.vlgmr.msra.gmra.mxu1 %vm460_vm1, %v3896_v13  ;;  %v3561_v32 = vor.u32 %v3924_v30, %v3558_v31  ;;  %v3940_v33 = vld [vmem:[%s5265_s2 + $0xe4] sm:$0xf]  ;;  %v3622_v34 = vld [vmem:[%s5265_s2 + $0xe8] sm:$0xf0]  ;;  %v3923_v37 = vld [vmem:[%s5265_s2 + $0x54] sm:$0xf0] }
  0x25   : > { %3498 = vmatmul.msk.bf16.vlgmr.msra.gmra.mxu3 %vm460_vm1, %v4363_v14  ;;  %3483 = vmatmul.msk.bf16.vlgmr.msra.gmra.mxu2 %vm460_vm1, %v3905_v15  ;;  %v3625_v36 = vor.u32 %v3940_v33, %v3622_v34  ;;  %v3612_v38 = vld [vmem:[%s5265_s2 + $0xd0] sm:$0xf]  ;;  %v3939_v39 = vld [vmem:[%s5265_s2 + $0xd4] sm:$0xf0]  ;;  %v3549_v40 = vor.u32 %v3923_v37, %v3548_v35  ;;  %v3938_v44 = vld [vmem:[%s5265_s2 + $0xd4] sm:$0xf] }
  0x26   : > { %982 = vmatpush.bf16.msrb.mxu2 %v3565_v9  ;;  %1071 = vmatpush.bf16.msrb.mxu3 %v3629_v10  ;;  %v3613_v41 = vor.u32 %v3939_v39, %v3612_v38  ;;  %v3898_v42 = vld [vmem:[%s4350_s25 + $0x10] sm:$0xff]  ;;  %v3907_v43 = vld [vmem:[%s4350_s25 + $0x58] sm:$0xff]  ;;  %v3540_v47 = vld [vmem:[%s5265_s2 + $0x40] sm:$0xf]  ;;  %s4158_s17 = sshra.s32 %s3315_s19, 4  ;;  %s4159_s17 = int_to_ptr.hbm [resolvable:$true] %s4158_s17 }
  0x27   : > { %1160 = vmatpush.bf16.msrb.mxu0 %v3569_v18  ;;  %1249 = vmatpush.bf16.msrb.mxu1 %v3633_v22  ;;  %v3614_v45 = vld [vmem:[%s5265_s2 + $0xd8] sm:$0xf0]  ;;  %v3921_v48 = vld [vmem:[%s5265_s2 + $0x44] sm:$0xf0]  ;;  %v3922_v49 = vld [vmem:[%s5265_s2 + $0x54] sm:$0xf]  ;;  %p4165_p3 = scmp.lt.s32.totalorder %s4159_s17, %s5271_s8 }
  0x28   : > { %v3617_v46 = vor.u32 %v3938_v44, %v3614_v45  ;;  %v3541_v50 = vor.u32 %v3921_v48, %v3540_v47  ;;  %v3550_v51 = vld [vmem:[%s5265_s2 + $0x58] sm:$0xf0]  ;;  %v3604_v52 = vld [vmem:[%s5265_s2 + $0xc0] sm:$0xf]  ;;  %v3937_v53 = vld [vmem:[%s5265_s2 + $0xc4] sm:$0xf0] }
  0x29   : > { %v3553_v54 = vor.u32 %v3922_v49, %v3550_v51  ;;  %v3605_v55 = vor.u32 %v3937_v53, %v3604_v52  ;;  %v3899_v56 = vld [vmem:[%s4350_s25 + $0x18] sm:$0xff]  ;;  %v3908_v57 = vld [vmem:[%s4350_s25 + $0x60] sm:$0xff]  ;;  %v3532_v58 = vld [vmem:[%s5265_s2 + $0x30] sm:$0xf]  ;;  %s4160_s21 = scalar_lea.hbm %s4159_s17, 512 }
  0x2a   : > { %983 = vmatpush.bf16.msrb.mxu2 %v3557_v26  ;;  %1072 = vmatpush.bf16.msrb.mxu3 %v3621_v27  ;;  %v3919_v59 = vld [vmem:[%s5265_s2 + $0x34] sm:$0xf0]  ;;  %v3936_v61 = vld [vmem:[%s5265_s2 + $0xc4] sm:$0xf]  ;;  %v3606_v62 = vld [vmem:[%s5265_s2 + $0xc8] sm:$0xf0]  ;;  %p4161_p0 = scmp.ne.s32.totalorder %s4159_s17, %s4160_s21  ;;  %p4166_p4 = scmp.lt.s32.totalorder %s4164_s26, %s4160_s21 }
  0x2b   : > { %1161 = vmatpush.bf16.msrb.mxu0 %v3561_v32  ;;  %1250 = vmatpush.bf16.msrb.mxu1 %v3625_v36  ;;  %v3533_v60 = vor.u32 %v3919_v59, %v3532_v58  ;;  %v3920_v63 = vld [vmem:[%s5265_s2 + $0x44] sm:$0xf]  ;;  %v3609_v0 = vor.u32 %v3936_v61, %v3606_v62  ;;  %v3542_v1 = vld [vmem:[%s5265_s2 + $0x48] sm:$0xf0]  ;;  %v3596_v2 = vld [vmem:[%s5265_s2 + $0xb0] sm:$0xf] }
  0x2c   : > { %v3935_v3 = vld [vmem:[%s5265_s2 + $0xb4] sm:$0xf0]  ;;  %v3545_v4 = vor.u32 %v3920_v63, %v3542_v1  ;;  %v3900_v6 = vld [vmem:[%s4350_s25 + $0x20] sm:$0xff]  ;;  %v3909_v7 = vld [vmem:[%s4350_s25 + $0x68] sm:$0xff]  ;;  %p4162_p1 = pnand %p4161_p0, %p4305_p5  ;;  %p4167_p7 = por %p4166_p4, %p4165_p3 }
  0x2d   : > { %v3597_v5 = vor.u32 %v3935_v3, %v3596_v2  ;;  %v3524_v8 = vld [vmem:[%s5265_s2 + $0x20] sm:$0xf]  ;;  %v3917_v9 = vld [vmem:[%s5265_s2 + $0x24] sm:$0xf0]  ;;  %v3934_v11 = vld [vmem:[%s5265_s2 + $0xb4] sm:$0xf] }
  0x2e   : > { %984 = vmatpush.bf16.msrb.mxu2 %v3549_v40  ;;  %1073 = vmatpush.bf16.msrb.mxu3 %v3613_v41  ;;  %v3525_v10 = vor.u32 %v3917_v9, %v3524_v8  ;;  %v3598_v12 = vld [vmem:[%s5265_s2 + $0xb8] sm:$0xf0]  ;;  %v3918_v13 = vld [vmem:[%s5265_s2 + $0x34] sm:$0xf]  ;;  %v3588_v17 = vld [vmem:[%s5265_s2 + $0xa0] sm:$0xf]  ;;  %p4163_p2 = pneg %p4162_p1 }
  0x2f   : > { %1251 = vmatpush.bf16.msrb.mxu1 %v3617_v46  ;;  %1162 = vmatpush.bf16.msrb.mxu0 %v3553_v54  ;;  %v3534_v16 = vld [vmem:[%s5265_s2 + $0x38] sm:$0xf0]  ;;  %v3933_v18 = vld [vmem:[%s5265_s2 + $0xa4] sm:$0xf0]  ;;  %v3516_v21 = vld [vmem:[%s5265_s2 + $0x10] sm:$0xf] }
  0x30   : > { %v3537_v19 = vor.u32 %v3918_v13, %v3534_v16  ;;  %v3589_v20 = vor.u32 %v3933_v18, %v3588_v17  ;;  %v3915_v22 = vld [vmem:[%s5265_s2 + $0x14] sm:$0xf0]  ;;  %v3901_v24 = vld [vmem:[%s4350_s25 + $0x28] sm:$0xff]  ;;  %v3910_v25 = vld [vmem:[%s4350_s25 + $0x70] sm:$0xff]  ;;  %p4168_p8 = pnand %p4167_p7, %p4163_p2 }
  0x31   : > { %v3517_v23 = vor.u32 %v3915_v22, %v3516_v21  ;;  %v3932_v26 = vld [vmem:[%s5265_s2 + $0xa4] sm:$0xf]  ;;  %v3590_v27 = vld [vmem:[%s5265_s2 + $0xa8] sm:$0xf0]  ;;  %v3508_v31 = vld [vmem:[%s5265_s2] sm:$0xf] }
  0x32   : > { %985 = vmatpush.bf16.msrb.mxu2 %v3541_v50  ;;  %1074 = vmatpush.bf16.msrb.mxu3 %v3605_v55  ;;  %v3526_v30 = vld [vmem:[%s5265_s2 + $0x28] sm:$0xf0]  ;;  %v3913_v33 = vld [vmem:[%s5265_s2 + $0x4] sm:$0xf0]  ;;  %v3580_v34 = vld [vmem:[%s5265_s2 + $0x90] sm:$0xf] }
  0x33   : > { %1252 = vmatpush.bf16.msrb.mxu1 %v3609_v0  ;;  %1163 = vmatpush.bf16.msrb.mxu0 %v3545_v4  ;;  %v3931_v35 = vld [vmem:[%s5265_s2 + $0x94] sm:$0xf0]  ;;  %v3509_v36 = vor.u32 %v3913_v33, %v3508_v31  ;;  %v3902_v38 = vld [vmem:[%s4350_s25 + $0x30] sm:$0xff]  ;;  %v3582_v41 = vld [vmem:[%s5265_s2 + $0x98] sm:$0xf0] }
  0x34   : > { %3475 = vmatmul.msk.bf16.gmra.mxu0 %vm460_vm1, %v3897_v28  ;;  %3491 = vmatmul.msk.bf16.gmra.mxu1 %vm460_vm1, %v3897_v28  ;;  %v3593_v28 = vor.u32 %v3932_v26, %v3590_v27  ;;  %v3581_v37 = vor.u32 %v3931_v35, %v3580_v34  ;;  %v3911_v39 = vld [vmem:[%s4350_s25 + $0x78] sm:$0xff]  ;;  %v3930_v40 = vld [vmem:[%s5265_s2 + $0x94] sm:$0xf]  ;;  %v3929_v44 = vld [vmem:[%s5265_s2 + $0x84] sm:$0xf0] }
  0x35   : > { %3499 = vmatmul.msk.bf16.gmra.mxu3 %vm460_vm1, %v3905_v15  ;;  %3484 = vmatmul.msk.bf16.gmra.mxu2 %vm460_vm1, %v3906_v29  ;;  %v3601_v15 = vor.u32 %v3934_v11, %v3598_v12  ;;  %v3928_v45 = vld [vmem:[%s5265_s2 + $0x84] sm:$0xf]  ;;  %v3574_v47 = vld [vmem:[%s5265_s2 + $0x88] sm:$0xf0]  ;;  %v3914_v49 = vld [vmem:[%s5265_s2 + $0x14] sm:$0xf] }
  0x36   : > { %986 = vmatpush.bf16.msrb.mxu2 %v3533_v60  ;;  %1075 = vmatpush.bf16.msrb.mxu3 %v3597_v5  ;;  %v3577_v48 = vor.u32 %v3928_v45, %v3574_v47  ;;  %v3518_v50 = vld [vmem:[%s5265_s2 + $0x18] sm:$0xf0]  ;;  %v3692_v52 = vld [vmem:[#allocation2 + $0x70] sm:$0xf]  ;;  %v3959_v53 = vld [vmem:[#allocation2 + $0x74] sm:$0xf0] }
  0x37   : > { %1253 = vmatpush.bf16.msrb.mxu1 %v3601_v15  ;;  %1164 = vmatpush.bf16.msrb.mxu0 %v3537_v19  ;;  %v3521_v51 = vor.u32 %v3914_v49, %v3518_v50  ;;  %v3912_v54 = vld [vmem:[%s5265_s2 + $0x4] sm:$0xf]  ;;  %v3903_v55 = vld [vmem:[%s4350_s25 + $0x38] sm:$0xff]  ;;  %v3975_v60 = vld [vmem:[#allocation2 + $0xf4] sm:$0xf0]  ;;  %s3312_s25 = sshll.u32 %s5073_s10, 4  ;;  %s3313_s25 = int_to_ptr.vmem [resolvable:$true] %s3312_s25 }
  0x38   : > { %v3756_v59 = vld [vmem:[#allocation2 + $0xf0] sm:$0xf]  ;;  %v3974_v0 = vld [vmem:[#allocation2 + $0xf4] sm:$0xf]  ;;  %v3758_v1 = vld [vmem:[#allocation2 + $0xf8] sm:$0xf0] }
  0x39   : > { %v3757_v61 = vor.u32 %v3975_v60, %v3756_v59  ;;  %v3761_v2 = vor.u32 %v3974_v0, %v3758_v1  ;;  %v3957_v15 = vld [vmem:[#allocation2 + $0x64] sm:$0xf0]  ;;  %v3750_v47 = vld [vmem:[#allocation2 + $0xe8] sm:$0xf0]  ;;  %v3676_v60 = vld [vmem:[#allocation2 + $0x50] sm:$0xf] }
  0x3a   : > { %987 = vmatpush.bf16.msrb.mxu2 %v3525_v10  ;;  %1076 = vmatpush.bf16.msrb.mxu3 %v3589_v20 }
  0x3b   : > { %1254 = vmatpush.bf16.msrb.mxu1 %v3593_v28 }
  0x3e   : > { %988 = vmatpush.bf16.msrb.mxu2 %v3517_v23  ;;  %1077 = vmatpush.bf16.msrb.mxu3 %v3581_v37  ;;  %v3958_v23 = vld [vmem:[#allocation2 + $0x74] sm:$0xf]  ;;  %v3748_v37 = vld [vmem:[#allocation2 + $0xe0] sm:$0xf] }
  0x42   : > { %989 = vmatpush.bf16.msrb.mxu2 %v3509_v36 }
  0x44   : > { %3476 = vmatmul.msk.bf16.gmra.mxu0 %vm460_vm1, %v3898_v42  ;;  %3492 = vmatmul.msk.bf16.gmra.mxu1 %vm460_vm1, %v3898_v42  ;;  %v3585_v42 = vor.u32 %v3930_v40, %v3582_v41 }
  0x45   : > { %3500 = vmatmul.msk.bf16.gmra.mxu3 %vm460_vm1, %v3906_v29  ;;  %3485 = vmatmul.msk.bf16.gmra.mxu2 %vm460_vm1, %v3907_v43  ;;  %v3916_v29 = vld [vmem:[%s5265_s2 + $0x24] sm:$0xf] }
  0x46   : > { %v3529_v32 = vor.u32 %v3916_v29, %v3526_v30  ;;  %1255 = vmatpush.bf16.msrb.mxu1 %v3585_v42 }
  0x48   : > { %1165 = vmatpush.bf16.msrb.mxu0 %v3529_v32 }
  0x4a   : > { %1256 = vmatpush.bf16.msrb.mxu1 %v3577_v48 }
  0x4c   : > { %1166 = vmatpush.bf16.msrb.mxu0 %v3521_v51 }
  0x4e   : > { %2162 = vmatpush.bf16.msra.mxu1 %v3761_v2 }
  0x54   : > { %3477 = vmatmul.msk.bf16.gmra.mxu0 %vm460_vm1, %v3899_v56  ;;  %3493 = vmatmul.msk.bf16.gmra.mxu1 %vm460_vm1, %v3899_v56  ;;  %v3693_v56 = vor.u32 %v3959_v53, %v3692_v52 }
  0x55   : > { %3501 = vmatmul.msk.bf16.gmra.mxu3 %vm460_vm1, %v3907_v43  ;;  %3486 = vmatmul.msk.bf16.gmra.mxu2 %vm460_vm1, %v3908_v57  ;;  %v3572_v43 = vld [vmem:[%s5265_s2 + $0x80] sm:$0xf] }
  0x56   : > { %v3573_v46 = vor.u32 %v3929_v44, %v3572_v43  ;;  %1895 = vmatpush.bf16.msra.mxu2 %v3693_v56 }
  0x58   : > { %1078 = vmatpush.bf16.msrb.mxu3 %v3573_v46  ;;  %v3972_v46 = vld [vmem:[#allocation2 + $0xe4] sm:$0xf] }
  0x59   : > { %v3753_v48 = vor.u32 %v3972_v46, %v3750_v47  ;;  %v3668_v47 = vld [vmem:[#allocation2 + $0x40] sm:$0xf] }
  0x5b   : > { %2163 = vmatpush.bf16.msra.mxu1 %v3753_v48  ;;  %v3953_v48 = vld [vmem:[#allocation2 + $0x44] sm:$0xf0] }
  0x5c   : > { %1984 = vmatpush.bf16.msra.mxu3 %v3757_v61  ;;  %v3955_v61 = vld [vmem:[#allocation2 + $0x54] sm:$0xf0] }
  0x64   : > { %3478 = vmatmul.msk.bf16.gmra.mxu0 %vm460_vm1, %v3900_v6  ;;  %3494 = vmatmul.msk.bf16.gmra.mxu1 %vm460_vm1, %v3900_v6 }
  0x65   : > { %3502 = vmatmul.msk.bf16.gmra.mxu3 %vm460_vm1, %v3908_v57  ;;  %3487 = vmatmul.msk.bf16.gmra.mxu2 %vm460_vm1, %v3909_v7  ;;  %v3510_v57 = vld [vmem:[%s5265_s2 + $0x8] sm:$0xf0] }
  0x66   : > { %v3513_v58 = vor.u32 %v3912_v54, %v3510_v57 }
  0x68   : > { %1167 = vmatpush.bf16.msrb.mxu0 %v3513_v58 }
  0x74   : > { %3479 = vmatmul.msk.bf16.gmra.mxu0 %vm460_vm1, %v3901_v24  ;;  %3495 = vmatmul.msk.bf16.gmra.mxu1 %vm460_vm1, %v3901_v24  ;;  %v3694_v24 = vld [vmem:[#allocation2 + $0x78] sm:$0xf0] }
  0x75   : > { %3503 = vmatmul.msk.bf16.gmra.mxu3 %vm460_vm1, %v3909_v7  ;;  %3488 = vmatmul.msk.bf16.gmra.mxu2 %vm460_vm1, %v3910_v25 }
  0x84   : > { %3480 = vmatmul.msk.bf16.gmra.mxu0 %vm460_vm1, %v3902_v38  ;;  %3496 = vmatmul.msk.bf16.gmra.mxu1 %vm460_vm1, %v3902_v38  ;;  %v3973_v38 = vld [vmem:[#allocation2 + $0xe4] sm:$0xf0] }
  0x85   : > { %3504 = vmatmul.msk.bf16.gmra.mxu3 %vm460_vm1, %v3910_v25  ;;  %3489 = vmatmul.msk.bf16.gmra.mxu2 %vm460_vm1, %v3911_v39  ;;  %v3697_v25 = vor.u32 %v3958_v23, %v3694_v24  ;;  %v3749_v40 = vor.u32 %v3973_v38, %v3748_v37 }
  0x87   : > { %2073 = vmatpush.bf16.msra.mxu0 %v3697_v25  ;;  %1985 = vmatpush.bf16.msra.mxu3 %v3749_v40 }
  0x94   : > { %3481 = vmatmul.msk.bf16.gmra.mxu0 %vm460_vm1, %v3903_v55  ;;  %3497 = vmatmul.msk.bf16.gmra.mxu1 %vm460_vm1, %v3903_v55 }
  0x95   : > { %3505 = vmatmul.msk.bf16.gmra.mxu3 %vm460_vm1, %v3911_v39 }
  0xa1   : > { %v525_v62 = vpop.f32.mrf.mxu0  ;;  %v614_v63 = vpop.f32.mrf.mxu1 }
  0xa2   : > { %v695_v3 = vmax.f32 %v614_v63, 0.0  ;;  %v694_v8 = vmax.f32 %v525_v62, 0.0  ;;  %v3677_v63 = vor.u32 %v3955_v61, %v3676_v60 }
  0xa4   : > { %3482 = vmatmul.msk.bf16.gmra.mxu0 %vm460_vm1, %v4363_v14  ;;  %v3684_v14 = vld [vmem:[#allocation2 + $0x60] sm:$0xf] }
  0xa5   : > { %v3685_v18 = vor.u32 %v3957_v15, %v3684_v14 }
  0xa7   : > { %1896 = vmatpush.bf16.msra.mxu2 %v3685_v18 }
  0xa8   : > { %v654_v4 = vpop.f32.mrf.mxu3  ;;  %v4593_v5 = vpop.f32.mrf.mxu2 }
  0xa9   : > { %v527_v6 = vpop.f32.mrf.mxu0  ;;  %v616_v7 = vpop.f32.mrf.mxu1  ;;  %v727_v13 = vmax.f32 %v654_v4, 0.0  ;;  %v3956_v4 = vld [vmem:[#allocation2 + $0x64] sm:$0xf] }
  0xaa   : > { %v696_v9 = vmax.f32 %v527_v6, 0.0  ;;  %v697_v10 = vmax.f32 %v616_v7, 0.0  ;;  %v3686_v6 = vld [vmem:[#allocation2 + $0x68] sm:$0xf0] }
  0xab   : > { %1897 = vmatpush.bf16.msra.mxu2 %v3677_v63  ;;  %v3689_v7 = vor.u32 %v3956_v4, %v3686_v6 }
  0xac   : > { %v758_v11 = vpack.c.bf16 %v696_v9, %v694_v8  ;;  %v759_v12 = vpack.c.bf16 %v697_v10, %v695_v3 }
  0xad   : > { %2074 = vmatpush.bf16.msra.mxu0 %v3689_v7 }
  0xae   : > { %990 = vmatmul.bf16.vlgmr.msrb.gmra.mxu2 %v758_v11  ;;  %1079 = vmatmul.bf16.vlgmr.msrb.gmra.mxu3 %v759_v12 }
  0xaf   : > { %1257 = vmatmul.bf16.vlgmr.msrb.gmra.mxu1 %v759_v12 }
  0xb0   : > { %v656_v16 = vpop.f32.mrf.mxu3  ;;  %v4595_v17 = vpop.f32.mrf.mxu2 }
  0xb1   : > { %v530_v19 = vpop.f32.mrf.mxu0  ;;  %v619_v20 = vpop.f32.mrf.mxu1  ;;  %v729_v21 = vmax.f32 %v656_v16, 0.0 }
  0xb2   : > { %v699_v26 = vmax.f32 %v619_v20, 0.0  ;;  %v698_v30 = vmax.f32 %v530_v19, 0.0  ;;  %v3740_v20 = vld [vmem:[#allocation2 + $0xd0] sm:$0xf] }
  0xb3   : > { %v4597_v22 = vpack.c.bf16 %v729_v21, %v727_v13  ;;  %v3971_v21 = vld [vmem:[#allocation2 + $0xd4] sm:$0xf0] }
  0xb4   : > { %1168 = vmatmul.bf16.vlgmr.msrb.gmra.mxu0 %v758_v11  ;;  %v3741_v24 = vor.u32 %v3971_v21, %v3740_v20  ;;  %v3734_v20 = vld [vmem:[#allocation2 + $0xc8] sm:$0xf0] }
  0xb6   : > { %1986 = vmatpush.bf16.msra.mxu3 %v3741_v24 }
  0xb8   : > { %v659_v27 = vpop.f32.mrf.mxu3  ;;  %v4599_v33 = vpop.f32.mrf.mxu2 }
  0xb9   : > { %v532_v28 = vpop.f32.mrf.mxu0  ;;  %v621_v29 = vpop.f32.mrf.mxu1  ;;  %v731_v36 = vmax.f32 %v659_v27, 0.0 }
  0xba   : > { %v700_v31 = vmax.f32 %v532_v28, 0.0  ;;  %v701_v32 = vmax.f32 %v621_v29, 0.0 }
  0xbc   : > { %v760_v34 = vpack.c.bf16 %v700_v31, %v698_v30  ;;  %v761_v35 = vpack.c.bf16 %v701_v32, %v699_v26  ;;  %v3970_v30 = vld [vmem:[#allocation2 + $0xd4] sm:$0xf]  ;;  %v3742_v31 = vld [vmem:[#allocation2 + $0xd8] sm:$0xf0] }
  0xbd   : > { %v3745_v32 = vor.u32 %v3970_v30, %v3742_v31 }
  0xbe   : > { %995 = vmatmul.bf16.gmra.mxu2 %v760_v34  ;;  %1084 = vmatmul.bf16.gmra.mxu3 %v761_v35 }
  0xbf   : > { %1262 = vmatmul.bf16.gmra.mxu1 %v761_v35 }
  0xc0   : > { %v661_v39 = vpop.f32.mrf.mxu3  ;;  %v4603_v45 = vpop.f32.mrf.mxu2  ;;  %2164 = vmatpush.bf16.msra.mxu1 %v3745_v32  ;;  %v1370_v32 = vld [vmem:[%s5266_s3] sm:$0x3] }
  0xc1   : > { %v535_v41 = vpop.f32.mrf.mxu0  ;;  %v624_v42 = vpop.f32.mrf.mxu1  ;;  %v733_v43 = vmax.f32 %v661_v39, 0.0  ;;  %1372 = vst [vmem:[#allocation1] ss:$9 sm:$0xff] %v1370_v32 }
  0xc2   : > { %v703_v49 = vmax.f32 %v624_v42, 0.0  ;;  %v702_v53 = vmax.f32 %v535_v41, 0.0 }
  0xc3   : > { %v4601_v44 = vpack.c.bf16 %v733_v43, %v731_v36 }
  0xc4   : > { %1173 = vmatmul.bf16.gmra.mxu0 %v760_v34 }
  0xc8   : > { %v664_v50 = vpop.f32.mrf.mxu3  ;;  %v4605_v58 = vpop.f32.mrf.mxu2 }
  0xc9   : > { %v537_v51 = vpop.f32.mrf.mxu0  ;;  %v626_v52 = vpop.f32.mrf.mxu1  ;;  %v735_v59 = vmax.f32 %v664_v50, 0.0  ;;  %v3669_v50 = vor.u32 %v3953_v48, %v3668_v47 }
  0xca   : > { %v704_v54 = vmax.f32 %v537_v51, 0.0  ;;  %v705_v55 = vmax.f32 %v626_v52, 0.0 }
  0xcb   : > { %1898 = vmatpush.bf16.msra.mxu2 %v3669_v50 }
  0xcc   : > { %v762_v56 = vpack.c.bf16 %v704_v54, %v702_v53  ;;  %v763_v57 = vpack.c.bf16 %v705_v55, %v703_v49  ;;  %v3954_v55 = vld [vmem:[#allocation2 + $0x54] sm:$0xf] }
  0xce   : > { %1000 = vmatmul.bf16.gmra.mxu2 %v762_v56  ;;  %1089 = vmatmul.bf16.gmra.mxu3 %v763_v57 }
  0xcf   : > { %1267 = vmatmul.bf16.gmra.mxu1 %v763_v57 }
  0xd0   : > { %v666_v62 = vpop.f32.mrf.mxu3  ;;  %v4609_v9 = vpop.f32.mrf.mxu2 }
  0xd1   : > { %v540_v0 = vpop.f32.mrf.mxu0  ;;  %v629_v1 = vpop.f32.mrf.mxu1  ;;  %v737_v2 = vmax.f32 %v666_v62, 0.0 }
  0xd2   : > { %v707_v8 = vmax.f32 %v629_v1, 0.0  ;;  %v706_v13 = vmax.f32 %v540_v0, 0.0 }
  0xd3   : > { %v4607_v3 = vpack.c.bf16 %v737_v2, %v735_v59 }
  0xd4   : > { %1178 = vmatmul.bf16.gmra.mxu0 %v762_v56  ;;  %v3678_v56 = vld [vmem:[#allocation2 + $0x58] sm:$0xf0] }
  0xd5   : > { %v3681_v57 = vor.u32 %v3954_v55, %v3678_v56 }
  0xd7   : > { %2075 = vmatpush.bf16.msra.mxu0 %v3681_v57 }
  0xd8   : > { %v669_v10 = vpop.f32.mrf.mxu3  ;;  %v4611_v28 = vpop.f32.mrf.mxu2 }
  0xd9   : > { %v542_v11 = vpop.f32.mrf.mxu0  ;;  %v631_v12 = vpop.f32.mrf.mxu1  ;;  %v739_v19 = vmax.f32 %v669_v10, 0.0  ;;  %v3969_v10 = vld [vmem:[#allocation2 + $0xc4] sm:$0xf0] }
  0xda   : > { %v708_v14 = vmax.f32 %v542_v11, 0.0  ;;  %v709_v15 = vmax.f32 %v631_v12, 0.0 }
  0xdc   : > { %v764_v16 = vpack.c.bf16 %v708_v14, %v706_v13  ;;  %v765_v18 = vpack.c.bf16 %v709_v15, %v707_v8  ;;  %v3732_v8 = vld [vmem:[#allocation2 + $0xc0] sm:$0xf] }
  0xdd   : > { %v3733_v13 = vor.u32 %v3969_v10, %v3732_v8  ;;  %v3724_v10 = vld [vmem:[#allocation2 + $0xb0] sm:$0xf] }
  0xde   : > { %1005 = vmatmul.bf16.gmra.mxu2 %v764_v16  ;;  %1094 = vmatmul.bf16.gmra.mxu3 %v765_v18 }
  0xdf   : > { %1272 = vmatmul.bf16.gmra.mxu1 %v765_v18  ;;  %1987 = vmatpush.bf16.msra.mxu3 %v3733_v13 }
  0xe0   : > { %v671_v23 = vpop.f32.mrf.mxu3  ;;  %v4615_v43 = vpop.f32.mrf.mxu2 }
  0xe1   : > { %v545_v25 = vpop.f32.mrf.mxu0  ;;  %v634_v26 = vpop.f32.mrf.mxu1  ;;  %v741_v27 = vmax.f32 %v671_v23, 0.0 }
  0xe2   : > { %v711_v34 = vmax.f32 %v634_v26, 0.0  ;;  %v710_v38 = vmax.f32 %v545_v25, 0.0 }
  0xe3   : > { %v4613_v29 = vpack.c.bf16 %v741_v27, %v739_v19  ;;  %v3968_v19 = vld [vmem:[#allocation2 + $0xc4] sm:$0xf] }
  0xe4   : > { %1183 = vmatmul.bf16.gmra.mxu0 %v764_v16  ;;  %v3737_v21 = vor.u32 %v3968_v19, %v3734_v20 }
  0xe6   : > { %2165 = vmatpush.bf16.msra.mxu1 %v3737_v21 }
  0xe8   : > { %v674_v35 = vpop.f32.mrf.mxu3  ;;  %v4619_v59 = vpop.f32.mrf.mxu2 }
  0xe9   : > { %v547_v36 = vpop.f32.mrf.mxu0  ;;  %v636_v37 = vpop.f32.mrf.mxu1  ;;  %v743_v46 = vmax.f32 %v674_v35, 0.0 }
  0xea   : > { %v712_v39 = vmax.f32 %v547_v36, 0.0  ;;  %v713_v40 = vmax.f32 %v636_v37, 0.0 }
  0xec   : > { %v767_v41 = vpack.c.bf16 %v713_v40, %v711_v34  ;;  %v766_v42 = vpack.c.bf16 %v712_v39, %v710_v38  ;;  %v3660_v38 = vld [vmem:[#allocation2 + $0x30] sm:$0xf]  ;;  %v3951_v39 = vld [vmem:[#allocation2 + $0x34] sm:$0xf0] }
  0xee   : > { %1010 = vmatmul.bf16.gmra.mxu2 %v766_v42  ;;  %1099 = vmatmul.bf16.gmra.mxu3 %v767_v41 }
  0xef   : > { %1277 = vmatmul.bf16.gmra.mxu1 %v767_v41  ;;  %v3661_v41 = vor.u32 %v3951_v39, %v3660_v38 }
  0xf0   : > { %v676_v49 = vpop.f32.mrf.mxu3  ;;  %v4621_v11 = vpop.f32.mrf.mxu2 }
  0xf1   : > { %v550_v51 = vpop.f32.mrf.mxu0  ;;  %v639_v52 = vpop.f32.mrf.mxu1  ;;  %v745_v53 = vmax.f32 %v676_v49, 0.0  ;;  %1899 = vmatpush.bf16.msra.mxu2 %v3661_v41 }
  0xf2   : > { %v715_v60 = vmax.f32 %v639_v52, 0.0  ;;  %v714_v0 = vmax.f32 %v550_v51, 0.0 }
  0xf3   : > { %v4617_v54 = vpack.c.bf16 %v745_v53, %v743_v46 }
  0xf4   : > { %1188 = vmatmul.bf16.gmra.mxu0 %v766_v42 }
  0xf8   : > { %v679_v61 = vpop.f32.mrf.mxu3  ;;  %v4628_v34 = vpop.f32.mrf.mxu2 }
  0xf9   : > { %v552_v62 = vpop.f32.mrf.mxu0  ;;  %v641_v63 = vpop.f32.mrf.mxu1  ;;  %v747_v7 = vmax.f32 %v679_v61, 0.0  ;;  %v3670_v61 = vld [vmem:[#allocation2 + $0x48] sm:$0xf0] }
  0xfa   : > { %v716_v1 = vmax.f32 %v552_v62, 0.0  ;;  %v717_v2 = vmax.f32 %v641_v63, 0.0 }
  0xfc   : > { %v768_v4 = vpack.c.bf16 %v716_v1, %v714_v0  ;;  %v769_v6 = vpack.c.bf16 %v717_v2, %v715_v60  ;;  %v3952_v60 = vld [vmem:[#allocation2 + $0x44] sm:$0xf] }
  0xfd   : > { %v3673_v0 = vor.u32 %v3952_v60, %v3670_v61 }
  0xfe   : > { %1015 = vmatmul.bf16.gmra.mxu2 %v768_v4  ;;  %1104 = vmatmul.bf16.gmra.mxu3 %v769_v6 }
  0xff   : > { %1282 = vmatmul.bf16.gmra.mxu1 %v769_v6  ;;  %2076 = vmatpush.bf16.msra.mxu0 %v3673_v0 }
 0x100   : > { %v681_v12 = vpop.f32.mrf.mxu3  ;;  %v4632_v49 = vpop.f32.mrf.mxu2 }
 0x101   : > { %v555_v14 = vpop.f32.mrf.mxu0  ;;  %v644_v15 = vpop.f32.mrf.mxu1  ;;  %v749_v16 = vmax.f32 %v681_v12, 0.0  ;;  %v3967_v12 = vld [vmem:[#allocation2 + $0xb4] sm:$0xf0] }
 0x102   : > { %v719_v23 = vmax.f32 %v644_v15, 0.0  ;;  %v718_v27 = vmax.f32 %v555_v14, 0.0  ;;  %v3725_v13 = vor.u32 %v3967_v12, %v3724_v10  ;;  %v3966_v14 = vld [vmem:[#allocation2 + $0xb4] sm:$0xf]  ;;  %v3726_v15 = vld [vmem:[#allocation2 + $0xb8] sm:$0xf0] }
 0x103   : > { %v4623_v18 = vpack.c.bf16 %v749_v16, %v747_v7  ;;  %v3729_v16 = vor.u32 %v3966_v14, %v3726_v15  ;;  %v3716_v14 = vld [vmem:[#allocation2 + $0xa0] sm:$0xf]  ;;  %v3965_v15 = vld [vmem:[#allocation2 + $0xa4] sm:$0xf0] }
 0x104   : > { %1193 = vmatmul.bf16.gmra.mxu0 %v768_v4  ;;  %1988 = vmatpush.bf16.msra.mxu3 %v3725_v13 }
 0x105   : > { %2166 = vmatpush.bf16.msra.mxu1 %v3729_v16  ;;  %v3717_v16 = vor.u32 %v3965_v15, %v3716_v14 }
 0x108   : > { %v684_v24 = vpop.f32.mrf.mxu3  ;;  %v4634_v1 = vpop.f32.mrf.mxu2  ;;  %1989 = vmatpush.bf16.msra.mxu3 %v3717_v16 }
 0x109   : > { %v557_v25 = vpop.f32.mrf.mxu0  ;;  %v646_v26 = vpop.f32.mrf.mxu1  ;;  %v751_v37 = vmax.f32 %v684_v24, 0.0 }
 0x10a   : > { %v720_v30 = vmax.f32 %v557_v25, 0.0  ;;  %v721_v31 = vmax.f32 %v646_v26, 0.0  ;;  %v1373_v26 = vld [vmem:[#allocation1] sm:$0xff] }
 0x10b   : > { %v1375_v39 = vpack.i.b16 %v1373_v26, %v1373_v26 }
 0x10c   : > { %v770_v35 = vpack.c.bf16 %v720_v30, %v718_v27  ;;  %v771_v36 = vpack.c.bf16 %v721_v31, %v719_v23  ;;  %v3652_v27 = vld [vmem:[#allocation2 + $0x20] sm:$0xf]  ;;  %v3949_v30 = vld [vmem:[#allocation2 + $0x24] sm:$0xf0] }
 0x10d   : > { %v1374_v31 = vld [vmem:[#allocation1 + $0x9] sm:$0xff]  ;;  %v3653_v32 = vor.u32 %v3949_v30, %v3652_v27 }
 0x10e   : > { %1020 = vmatmul.bf16.gmra.mxu2 %v770_v35  ;;  %1109 = vmatmul.bf16.gmra.mxu3 %v771_v36  ;;  %v1378_v41 = vpack.i.b16 %v1374_v31, %v1374_v31 }
 0x10f   : > { %1287 = vmatmul.bf16.gmra.mxu1 %v771_v36  ;;  %1900 = vmatpush.bf16.msra.mxu2 %v3653_v32 }
 0x110   : > { %v686_v40 = vpop.f32.mrf.mxu3  ;;  %v4638_v19 = vpop.f32.mrf.mxu2 }
 0x111   : > { %v560_v42 = vpop.f32.mrf.mxu0  ;;  %v649_v46 = vpop.f32.mrf.mxu1  ;;  %v753_v47 = vmax.f32 %v686_v40, 0.0 }
 0x112   : > { %v723_v50 = vmax.f32 %v649_v46, 0.0  ;;  %v722_v55 = vmax.f32 %v560_v42, 0.0 }
 0x113   : > { %v4630_v48 = vpack.c.bf16 %v753_v47, %v751_v37  ;;  %v1377_v47 = vperm.slane %v1375_v39, 0  ;;  %v3964_v39 = vld [vmem:[#allocation2 + $0xa4] sm:$0xf] }
 0x114   : > { %1198 = vmatmul.bf16.gmra.mxu0 %v770_v35 }
 0x115   : > { %v4644_v61 = vunpack.c.l.bf16 %v1377_v47 }
 0x118   : > { %v689_v51 = vpop.f32.mrf.mxu3 }
 0x119   : > { %v562_v52 = vpop.f32.mrf.mxu0  ;;  %v651_v53 = vpop.f32.mrf.mxu1  ;;  %v755_v2 = vmax.f32 %v689_v51, 0.0  ;;  %v3950_v51 = vld [vmem:[#allocation2 + $0x34] sm:$0xf] }
 0x11a   : > { %v724_v56 = vmax.f32 %v562_v52, 0.0  ;;  %v725_v57 = vmax.f32 %v651_v53, 0.0  ;;  %v730_v52 = vmax.f32 %v4593_v5, 0.0  ;;  %v732_v53 = vmax.f32 %v4595_v17, 0.0 }
 0x11c   : > { %v772_v62 = vpack.c.bf16 %v724_v56, %v722_v55  ;;  %v773_v63 = vpack.c.bf16 %v725_v57, %v723_v50  ;;  %v1380_v50 = vperm.slane %v1378_v41, 0  ;;  %v734_v41 = vmax.f32 %v4599_v33, 0.0 }
 0x11e   : > { %1025 = vmatmul.bf16.gmra.mxu2 %v772_v62  ;;  %1114 = vmatmul.bf16.gmra.mxu3 %v773_v63 }
 0x11f   : > { %1292 = vmatmul.bf16.gmra.mxu1 %v773_v63 }
 0x120   : > { %v691_v4 = vpop.f32.mrf.mxu3 }
 0x121   : > { %v565_v6 = vpop.f32.mrf.mxu0  ;;  %v757_v7 = vmax.f32 %v691_v4, 0.0 }
 0x122   : > { %v726_v21 = vmax.f32 %v565_v6, 0.0  ;;  %v776_v6 = vpack.c.bf16 %v732_v53, %v730_v52 }
 0x123   : > { %v4636_v8 = vpack.c.bf16 %v757_v7, %v755_v2  ;;  %v4646_v2 = vunpack.c.l.bf16 %v1380_v50 }
 0x124   : > { %1203 = vmatmul.bf16.gmra.mxu0 %v772_v62 }
 0x129   : > { %v567_v20 = vpop.f32.mrf.mxu0 }
 0x12a   : > { %v728_v23 = vmax.f32 %v567_v20, 0.0 }
 0x12c   : > { %v774_v24 = vpack.c.bf16 %v728_v23, %v726_v21  ;;  %v1258_v25 = vpop.f32.mrf.mxu1 }
 0x12e   : > { %1030 = vmatmul.bf16.gmra.mxu2 %v774_v24  ;;  %1119 = vmatmul.bf16.gmra.mxu3 %v4597_v22 }
 0x12f   : > { %1297 = vmatmul.bf16.gmra.mxu1 %v4597_v22  ;;  %v3662_v22 = vld [vmem:[#allocation2 + $0x38] sm:$0xf0] }
 0x130   : > { %v3665_v55 = vor.u32 %v3950_v51, %v3662_v22 }
 0x131   : > { %v991_v35 = vpop.f32.mrf.mxu2  ;;  %v1080_v36 = vpop.f32.mrf.mxu3 }
 0x132   : > { %v1081_v37 = vadd.f32 %v1080_v36, %v991_v35  ;;  %v1169_v38 = vpop.f32.mrf.mxu0  ;;  %2077 = vmatpush.bf16.msra.mxu0 %v3665_v55 }
 0x133   : > { %v1259_v40 = vadd.f32 %v1258_v25, %v1169_v38 }
 0x134   : > { %v1260_v42 = vpop.f32.mrf.mxu1  ;;  %1208 = vmatmul.bf16.gmra.mxu0 %v774_v24 }
 0x135   : > { %v1338_v46 = vpack.c.bf16 %v1259_v40, %v1081_v37  ;;  %v3718_v40 = vld [vmem:[#allocation2 + $0xa8] sm:$0xf0] }
 0x137   : > { %v1381_v60 = vunpack.c.l.bf16 %v1338_v46  ;;  %v1382_v0 = vunpack.c.h.bf16 %v1338_v46  ;;  %v3721_v46 = vor.u32 %v3964_v39, %v3718_v40 }
 0x139   : > { %v993_v56 = vpop.f32.mrf.mxu2  ;;  %v1082_v57 = vpop.f32.mrf.mxu3  ;;  %v1447_v5 = vadd.f32 %v4644_v61, %v1381_v60  ;;  %v1448_v17 = vadd.f32 %v4646_v2, %v1382_v0  ;;  %2167 = vmatpush.bf16.msra.mxu1 %v3721_v46  ;;  %v3947_v0 = vld [vmem:[#allocation2 + $0x14] sm:$0xf0] }
 0x13a   : > { %v1083_v62 = vadd.f32 %v1082_v57, %v993_v56  ;;  %v1171_v63 = vpop.f32.mrf.mxu0 }
 0x13b   : > { %v1261_v4 = vadd.f32 %v1260_v42, %v1171_v63  ;;  %v1607_v25 = vmax.f32 %v1447_v5, 0.0  ;;  %v1608_v30 = vmax.f32 %v1448_v17, 0.0  ;;  %v736_v42 = vmax.f32 %v4603_v45, 0.0  ;;  %v3644_v45 = vld [vmem:[#allocation2 + $0x10] sm:$0xf] }
 0x13c   : > { %v1263_v7 = vpop.f32.mrf.mxu1 }
 0x13d   : > { %v1339_v10 = vpack.c.bf16 %v1261_v4, %v1083_v62  ;;  %v778_v56 = vpack.c.bf16 %v736_v42, %v734_v41 }
 0x13e   : > { %1035 = vmatmul.bf16.gmra.mxu2 %v776_v6  ;;  %1124 = vmatmul.bf16.gmra.mxu3 %v4601_v44 }
 0x13f   : > { %v1383_v12 = vunpack.c.l.bf16 %v1339_v10  ;;  %v1384_v13 = vunpack.c.h.bf16 %v1339_v10  ;;  %1302 = vmatmul.bf16.gmra.mxu1 %v4601_v44 }
 0x141   : > { %v1449_v20 = vadd.f32 %v4644_v61, %v1383_v12  ;;  %v1450_v21 = vadd.f32 %v4646_v2, %v1384_v13  ;;  %v996_v23 = vpop.f32.mrf.mxu2  ;;  %v1085_v24 = vpop.f32.mrf.mxu3 }
 0x142   : > { %v1086_v26 = vadd.f32 %v1085_v24, %v996_v23  ;;  %v1174_v27 = vpop.f32.mrf.mxu0 }
 0x143   : > { %v1609_v31 = vmax.f32 %v1449_v20, 0.0  ;;  %v1610_v32 = vmax.f32 %v1450_v21, 0.0  ;;  %v1264_v35 = vadd.f32 %v1263_v7, %v1174_v27  ;;  %v3654_v27 = vld [vmem:[#allocation2 + $0x28] sm:$0xf0] }
 0x144   : > { %v1265_v36 = vpop.f32.mrf.mxu1  ;;  %1213 = vmatmul.bf16.gmra.mxu0 %v776_v6  ;;  %v3645_v6 = vor.u32 %v3947_v0, %v3644_v45 }
 0x145   : > { %v4654_v44 = vpack.c.bf16 %v1609_v31, %v1607_v25  ;;  %v4656_v37 = vpack.c.bf16 %v1610_v32, %v1608_v30  ;;  %v1340_v38 = vpack.c.bf16 %v1264_v35, %v1086_v26  ;;  %v3948_v26 = vld [vmem:[#allocation2 + $0x24] sm:$0xf]  ;;  %v738_v30 = vmax.f32 %v4605_v58, 0.0 }
 0x146   : > { %1901 = vmatpush.bf16.msra.mxu2 %v3645_v6  ;;  %v740_v31 = vmax.f32 %v4609_v9, 0.0  ;;  %v3657_v32 = vor.u32 %v3948_v26, %v3654_v27  ;;  %v3708_v9 = vld [vmem:[#allocation2 + $0x90] sm:$0xf] }
 0x147   : > { %v1385_v51 = vunpack.c.l.bf16 %v1340_v38  ;;  %v1386_v53 = vunpack.c.h.bf16 %v1340_v38 }
 0x148   : > { %2078 = vmatpush.bf16.msra.mxu0 %v3657_v32  ;;  %v780_v46 = vpack.c.bf16 %v740_v31, %v738_v30 }
 0x149   : > { %v998_v47 = vpop.f32.mrf.mxu2  ;;  %v1087_v50 = vpop.f32.mrf.mxu3  ;;  %v1451_v62 = vadd.f32 %v4644_v61, %v1385_v51  ;;  %v1452_v4 = vadd.f32 %v4646_v2, %v1386_v53 }
 0x14a   : > { %v1088_v22 = vadd.f32 %v1087_v50, %v998_v47  ;;  %v1176_v52 = vpop.f32.mrf.mxu0 }
 0x14b   : > { %v1266_v55 = vadd.f32 %v1265_v36, %v1176_v52  ;;  %v1611_v14 = vmax.f32 %v1451_v62, 0.0  ;;  %v1612_v20 = vmax.f32 %v1452_v4, 0.0  ;;  %v3963_v52 = vld [vmem:[#allocation2 + $0x94] sm:$0xf0] }
 0x14c   : > { %v1268_v57 = vpop.f32.mrf.mxu1 }
 0x14d   : > { %v1341_v60 = vpack.c.bf16 %v1266_v55, %v1088_v22  ;;  %v3709_v55 = vor.u32 %v3963_v52, %v3708_v9 }
 0x14e   : > { %1040 = vmatmul.bf16.gmra.mxu2 %v778_v56  ;;  %1129 = vmatmul.bf16.gmra.mxu3 %v4607_v3 }
 0x14f   : > { %v1387_v33 = vunpack.c.l.bf16 %v1341_v60  ;;  %v1388_v63 = vunpack.c.h.bf16 %v1341_v60  ;;  %1307 = vmatmul.bf16.gmra.mxu1 %v4607_v3  ;;  %1990 = vmatpush.bf16.msra.mxu3 %v3709_v55 }
 0x151   : > { %v1001_v7 = vpop.f32.mrf.mxu2  ;;  %v1090_v10 = vpop.f32.mrf.mxu3  ;;  %v1453_v5 = vadd.f32 %v4644_v61, %v1387_v33  ;;  %v1454_v17 = vadd.f32 %v4646_v2, %v1388_v63 }
 0x152   : > { %v1091_v12 = vadd.f32 %v1090_v10, %v1001_v7  ;;  %v1179_v13 = vpop.f32.mrf.mxu0 }
 0x153   : > { %v1269_v15 = vadd.f32 %v1268_v57, %v1179_v13  ;;  %v1613_v16 = vmax.f32 %v1453_v5, 0.0  ;;  %v1614_v21 = vmax.f32 %v1454_v17, 0.0  ;;  %v3710_v13 = vld [vmem:[#allocation2 + $0x98] sm:$0xf0] }
 0x154   : > { %v1270_v3 = vpop.f32.mrf.mxu1  ;;  %1218 = vmatmul.bf16.gmra.mxu0 %v778_v56 }
 0x155   : > { %v1342_v23 = vpack.c.bf16 %v1269_v15, %v1091_v12  ;;  %v4666_v24 = vpack.c.bf16 %v1613_v16, %v1611_v14  ;;  %v4668_v25 = vpack.c.bf16 %v1614_v21, %v1612_v20  ;;  %v3962_v12 = vld [vmem:[#allocation2 + $0x94] sm:$0xf]  ;;  %v742_v14 = vmax.f32 %v4611_v28, 0.0 }
 0x156   : > { %v744_v15 = vmax.f32 %v4615_v43, 0.0  ;;  %v3713_v16 = vor.u32 %v3962_v12, %v3710_v13  ;;  %v3636_v43 = vld [vmem:[#allocation2] sm:$0xf] }
 0x157   : > { %v1389_v38 = vunpack.c.l.bf16 %v1342_v23  ;;  %v1390_v41 = vunpack.c.h.bf16 %v1342_v23 }
 0x158   : > { %2168 = vmatpush.bf16.msra.mxu1 %v3713_v16  ;;  %v782_v31 = vpack.c.bf16 %v744_v15, %v742_v14 }
 0x159   : > { %v1003_v35 = vpop.f32.mrf.mxu2  ;;  %v1092_v36 = vpop.f32.mrf.mxu3  ;;  %v1455_v51 = vadd.f32 %v4644_v61, %v1389_v38  ;;  %v1456_v53 = vadd.f32 %v4646_v2, %v1390_v41 }
 0x15a   : > { %v1093_v39 = vadd.f32 %v1092_v36, %v1003_v35  ;;  %v1181_v40 = vpop.f32.mrf.mxu0 }
 0x15b   : > { %v1271_v42 = vadd.f32 %v1270_v3, %v1181_v40  ;;  %v1615_v45 = vmax.f32 %v1455_v51, 0.0  ;;  %v1616_v6 = vmax.f32 %v1456_v53, 0.0 }
 0x15c   : > { %v1273_v47 = vpop.f32.mrf.mxu1 }
 0x15d   : > { %v1343_v50 = vpack.c.bf16 %v1271_v42, %v1093_v39  ;;  %v3945_v39 = vld [vmem:[#allocation2 + $0x4] sm:$0xf0] }
 0x15e   : > { %1045 = vmatmul.bf16.gmra.mxu2 %v780_v46  ;;  %1134 = vmatmul.bf16.gmra.mxu3 %v4613_v29  ;;  %v3637_v41 = vor.u32 %v3945_v39, %v3636_v43 }
 0x15f   : > { %v1391_v58 = vunpack.c.l.bf16 %v1343_v50  ;;  %v1392_v22 = vunpack.c.h.bf16 %v1343_v50  ;;  %1312 = vmatmul.bf16.gmra.mxu1 %v4613_v29 }
 0x160   : > { %1902 = vmatpush.bf16.msra.mxu2 %v3637_v41 }
 0x161   : > { %v1006_v56 = vpop.f32.mrf.mxu2  ;;  %v1095_v57 = vpop.f32.mrf.mxu3  ;;  %v1457_v60 = vadd.f32 %v4644_v61, %v1391_v58  ;;  %v1458_v62 = vadd.f32 %v4646_v2, %v1392_v22 }
 0x162   : > { %v1096_v33 = vadd.f32 %v1095_v57, %v1006_v56  ;;  %v1184_v63 = vpop.f32.mrf.mxu0 }
 0x163   : > { %v1274_v0 = vadd.f32 %v1273_v47, %v1184_v63  ;;  %v1617_v4 = vmax.f32 %v1457_v60, 0.0  ;;  %v1618_v7 = vmax.f32 %v1458_v62, 0.0  ;;  %v3946_v62 = vld [vmem:[#allocation2 + $0x14] sm:$0xf]  ;;  %v746_v63 = vmax.f32 %v4619_v59, 0.0 }
 0x164   : > { %v1275_v29 = vpop.f32.mrf.mxu1  ;;  %1223 = vmatmul.bf16.gmra.mxu0 %v780_v46 }
 0x165   : > { %v1344_v10 = vpack.c.bf16 %v1274_v0, %v1096_v33  ;;  %v4678_v5 = vpack.c.bf16 %v1617_v4, %v1615_v45  ;;  %v4680_v17 = vpack.c.bf16 %v1618_v7, %v1616_v6  ;;  %v3646_v33 = vld [vmem:[#allocation2 + $0x18] sm:$0xf0]  ;;  %v748_v45 = vmax.f32 %v4621_v11, 0.0  ;;  %v3700_v11 = vld [vmem:[#allocation2 + $0x80] sm:$0xf] }
 0x166   : > { %v3649_v0 = vor.u32 %v3946_v62, %v3646_v33 }
 0x167   : > { %v1393_v3 = vunpack.c.l.bf16 %v1344_v10  ;;  %v1394_v27 = vunpack.c.h.bf16 %v1344_v10  ;;  %v784_v14 = vpack.c.bf16 %v748_v45, %v746_v63 }
 0x168   : > { %2079 = vmatpush.bf16.msra.mxu0 %v3649_v0 }
 0x169   : > { %v1008_v20 = vpop.f32.mrf.mxu2  ;;  %v1097_v21 = vpop.f32.mrf.mxu3  ;;  %v1459_v36 = vadd.f32 %v4644_v61, %v1393_v3  ;;  %v1460_v40 = vadd.f32 %v4646_v2, %v1394_v27  ;;  %v3961_v3 = vld [vmem:[#allocation2 + $0x84] sm:$0xf0] }
 0x16a   : > { %v1098_v23 = vadd.f32 %v1097_v21, %v1008_v20  ;;  %v1186_v26 = vpop.f32.mrf.mxu0 }
 0x16b   : > { %v1276_v30 = vadd.f32 %v1275_v29, %v1186_v26  ;;  %v1619_v22 = vmax.f32 %v1459_v36, 0.0  ;;  %v1620_v53 = vmax.f32 %v1460_v40, 0.0  ;;  %v3701_v26 = vor.u32 %v3961_v3, %v3700_v11 }
 0x16c   : > { %v1278_v32 = vpop.f32.mrf.mxu1 }
 0x16d   : > { %v1345_v35 = vpack.c.bf16 %v1276_v30, %v1098_v23  ;;  %1991 = vmatpush.bf16.msra.mxu3 %v3701_v26 }
 0x16e   : > { %1050 = vmatmul.bf16.gmra.mxu2 %v782_v31  ;;  %1139 = vmatmul.bf16.gmra.mxu3 %v4617_v54 }
 0x16f   : > { %v1395_v28 = vunpack.c.l.bf16 %v1345_v35  ;;  %v1396_v38 = vunpack.c.h.bf16 %v1345_v35  ;;  %1317 = vmatmul.bf16.gmra.mxu1 %v4617_v54 }
 0x171   : > { %v1011_v42 = vpop.f32.mrf.mxu2  ;;  %v1100_v46 = vpop.f32.mrf.mxu3  ;;  %v1461_v47 = vadd.f32 %v4644_v61, %v1395_v28  ;;  %v1462_v50 = vadd.f32 %v4646_v2, %v1396_v38 }
 0x172   : > { %v1101_v51 = vadd.f32 %v1100_v46, %v1011_v42  ;;  %v1189_v58 = vpop.f32.mrf.mxu0 }
 0x173   : > { %v1279_v9 = vadd.f32 %v1278_v32, %v1189_v58  ;;  %v1621_v52 = vmax.f32 %v1461_v47, 0.0  ;;  %v1622_v55 = vmax.f32 %v1462_v50, 0.0  ;;  %v3960_v47 = vld [vmem:[#allocation2 + $0x84] sm:$0xf]  ;;  %v3702_v50 = vld [vmem:[#allocation2 + $0x88] sm:$0xf0] }
 0x174   : > { %v1280_v54 = vpop.f32.mrf.mxu1  ;;  %1228 = vmatmul.bf16.gmra.mxu0 %v782_v31  ;;  %v752_v58 = vmax.f32 %v4632_v49, 0.0  ;;  %v2283_v49 = vld [vmem:[%s5268_s5] sm:$0x3] }
 0x175   : > { %v1346_v56 = vpack.c.bf16 %v1279_v9, %v1101_v51  ;;  %v4690_v57 = vpack.c.bf16 %v1621_v52, %v1619_v22  ;;  %v4692_v60 = vpack.c.bf16 %v1622_v55, %v1620_v53  ;;  %v750_v51 = vmax.f32 %v4628_v34, 0.0  ;;  %2285 = vst [vmem:[#allocation1] ss:$9 sm:$0xff] %v2283_v49 }
 0x176   : > { %v3705_v22 = vor.u32 %v3960_v47, %v3702_v50 }
 0x177   : > { %v1397_v7 = vunpack.c.l.bf16 %v1346_v56  ;;  %v1398_v12 = vunpack.c.h.bf16 %v1346_v56  ;;  %v786_v33 = vpack.c.bf16 %v752_v58, %v750_v51 }
 0x178   : > { %2169 = vmatpush.bf16.msra.mxu1 %v3705_v22 }
 0x179   : > { %v1013_v4 = vpop.f32.mrf.mxu2  ;;  %v1102_v6 = vpop.f32.mrf.mxu3  ;;  %v1463_v20 = vadd.f32 %v4644_v61, %v1397_v7  ;;  %v1464_v23 = vadd.f32 %v4646_v2, %v1398_v12  ;;  %v3991_v7 = vld [vmem:[#allocation5 + $0x74] sm:$0xf0]  ;;  %v3944_v12 = vld [vmem:[#allocation2 + $0x4] sm:$0xf] }
 0x17a   : > { %v1103_v29 = vadd.f32 %v1102_v6, %v1013_v4  ;;  %v1191_v10 = vpop.f32.mrf.mxu0  ;;  %v3820_v6 = vld [vmem:[#allocation5 + $0x70] sm:$0xf] }
 0x17b   : > { %v1281_v13 = vadd.f32 %v1280_v54, %v1191_v10  ;;  %v1623_v28 = vmax.f32 %v1463_v20, 0.0  ;;  %v1624_v39 = vmax.f32 %v1464_v23, 0.0  ;;  %v3821_v10 = vor.u32 %v3991_v7, %v3820_v6 }
 0x17c   : > { %v1283_v15 = vpop.f32.mrf.mxu1 }
 0x17d   : > { %v1347_v16 = vpack.c.bf16 %v1281_v13, %v1103_v29  ;;  %v3638_v13 = vld [vmem:[#allocation2 + $0x8] sm:$0xf0]  ;;  %2814 = vmatpush.bf16.msrb.mxu2 %v3821_v10 }
 0x17e   : > { %1055 = vmatmul.bf16.gmra.mxu2 %v784_v14  ;;  %1144 = vmatmul.bf16.gmra.mxu3 %v4623_v18 }
 0x17f   : > { %v1399_v59 = vunpack.c.l.bf16 %v1347_v16  ;;  %v1400_v21 = vunpack.c.h.bf16 %v1347_v16  ;;  %1322 = vmatmul.bf16.gmra.mxu1 %v4623_v18  ;;  %v3641_v16 = vor.u32 %v3944_v12, %v3638_v13  ;;  %v4006_v12 = vld [vmem:[#allocation5 + $0xf4] sm:$0xf]  ;;  %v3886_v13 = vld [vmem:[#allocation5 + $0xf8] sm:$0xf0] }
 0x181   : > { %v1016_v27 = vpop.f32.mrf.mxu2  ;;  %v1105_v30 = vpop.f32.mrf.mxu3  ;;  %v1465_v31 = vadd.f32 %v4644_v61, %v1399_v59  ;;  %v1466_v32 = vadd.f32 %v4646_v2, %v1400_v21  ;;  %2080 = vmatpush.bf16.msra.mxu0 %v3641_v16 }
 0x182   : > { %v1106_v35 = vadd.f32 %v1105_v30, %v1016_v27  ;;  %v1194_v36 = vpop.f32.mrf.mxu0 }
 0x183   : > { %v1284_v38 = vadd.f32 %v1283_v15, %v1194_v36  ;;  %v1625_v43 = vmax.f32 %v1465_v31, 0.0  ;;  %v1626_v40 = vmax.f32 %v1466_v32, 0.0  ;;  %v754_v36 = vmax.f32 %v4634_v1, 0.0  ;;  %v3884_v1 = vld [vmem:[#allocation5 + $0xf0] sm:$0xf] }
 0x184   : > { %v1285_v18 = vpop.f32.mrf.mxu1  ;;  %1233 = vmatmul.bf16.gmra.mxu0 %v784_v14 }
 0x185   : > { %v1348_v41 = vpack.c.bf16 %v1284_v38, %v1106_v35  ;;  %v4702_v42 = vpack.c.bf16 %v1625_v43, %v1623_v28  ;;  %v4704_v46 = vpack.c.bf16 %v1626_v40, %v1624_v39  ;;  %v756_v28 = vmax.f32 %v4638_v19, 0.0  ;;  %v4007_v19 = vld [vmem:[#allocation5 + $0xf4] sm:$0xf0] }
 0x187   : > { %v1401_v53 = vunpack.c.l.bf16 %v1348_v41  ;;  %v1402_v56 = vunpack.c.h.bf16 %v1348_v41  ;;  %v788_v50 = vpack.c.bf16 %v756_v28, %v754_v36  ;;  %v3989_v36 = vld [vmem:[#allocation5 + $0x64] sm:$0xf0] }
 0x189   : > { %v1018_v9 = vpop.f32.mrf.mxu2  ;;  %v1107_v52 = vpop.f32.mrf.mxu3  ;;  %v1467_v0 = vadd.f32 %v4644_v61, %v1401_v53  ;;  %v1468_v29 = vadd.f32 %v4646_v2, %v1402_v56 }
 0x18a   : > { %v1108_v55 = vadd.f32 %v1107_v52, %v1018_v9  ;;  %v1196_v54 = vpop.f32.mrf.mxu0 }
 0x18b   : > { %v1286_v62 = vadd.f32 %v1285_v18, %v1196_v54  ;;  %v1627_v11 = vmax.f32 %v1467_v0, 0.0  ;;  %v1628_v26 = vmax.f32 %v1468_v29, 0.0 }
 0x18c   : > { %v1288_v63 = vpop.f32.mrf.mxu1 }
 0x18d   : > { %v1349_v45 = vpack.c.bf16 %v1286_v62, %v1108_v55  ;;  %v3885_v55 = vor.u32 %v4007_v19, %v3884_v1 }
 0x18e   : > { %1060 = vmatmul.bf16.gmra.mxu2 %v786_v33  ;;  %1149 = vmatmul.bf16.gmra.mxu3 %v4630_v48 }
 0x18f   : > { %v1403_v34 = vunpack.c.l.bf16 %v1349_v45  ;;  %v1404_v4 = vunpack.c.h.bf16 %v1349_v45  ;;  %1327 = vmatmul.bf16.gmra.mxu1 %v4630_v48  ;;  %2903 = vmatpush.bf16.msrb.mxu3 %v3885_v55  ;;  %v3822_v55 = vld [vmem:[#allocation5 + $0x78] sm:$0xf0] }
 0x191   : > { %v1021_v14 = vpop.f32.mrf.mxu2  ;;  %v1110_v15 = vpop.f32.mrf.mxu3  ;;  %v1469_v20 = vadd.f32 %v4644_v61, %v1403_v34  ;;  %v1470_v59 = vadd.f32 %v4646_v2, %v1404_v4 }
 0x192   : > { %v1111_v48 = vadd.f32 %v1110_v15, %v1021_v14  ;;  %v1199_v21 = vpop.f32.mrf.mxu0  ;;  %v3889_v14 = vor.u32 %v4006_v12, %v3886_v13  ;;  %v4005_v12 = vld [vmem:[#allocation5 + $0xe4] sm:$0xf0] }
 0x193   : > { %v1289_v3 = vadd.f32 %v1288_v63, %v1199_v21  ;;  %v1629_v23 = vmax.f32 %v1469_v20, 0.0  ;;  %v1630_v27 = vmax.f32 %v1470_v59, 0.0 }
 0x194   : > { %v1290_v30 = vpop.f32.mrf.mxu1  ;;  %1238 = vmatmul.bf16.gmra.mxu0 %v786_v33  ;;  %3081 = vmatpush.bf16.msrb.mxu1 %v3889_v14 }
 0x195   : > { %v1350_v31 = vpack.c.bf16 %v1289_v3, %v1111_v48  ;;  %v4717_v32 = vpack.c.bf16 %v1629_v23, %v1627_v11  ;;  %v4719_v35 = vpack.c.bf16 %v1630_v27, %v1628_v26 }
 0x197   : > { %v1405_v39 = vunpack.c.l.bf16 %v1350_v31  ;;  %v1406_v41 = vunpack.c.h.bf16 %v1350_v31  ;;  %v3812_v31 = vld [vmem:[#allocation5 + $0x60] sm:$0xf] }
 0x199   : > { %v1023_v38 = vpop.f32.mrf.mxu2  ;;  %v1112_v43 = vpop.f32.mrf.mxu3  ;;  %v1471_v22 = vadd.f32 %v4644_v61, %v1405_v39  ;;  %v1472_v53 = vadd.f32 %v4646_v2, %v1406_v41 }
 0x19a   : > { %v1113_v40 = vadd.f32 %v1112_v43, %v1023_v38  ;;  %v1201_v18 = vpop.f32.mrf.mxu0  ;;  %v3813_v38 = vor.u32 %v3989_v36, %v3812_v31 }
 0x19b   : > { %v1291_v47 = vadd.f32 %v1290_v30, %v1201_v18  ;;  %v1631_v0 = vmax.f32 %v1471_v22, 0.0  ;;  %v1632_v49 = vmax.f32 %v1472_v53, 0.0  ;;  %v3990_v53 = vld [vmem:[#allocation5 + $0x74] sm:$0xf] }
 0x19c   : > { %v1293_v51 = vpop.f32.mrf.mxu1  ;;  %2815 = vmatpush.bf16.msrb.mxu2 %v3813_v38  ;;  %v3878_v38 = vld [vmem:[#allocation5 + $0xe8] sm:$0xf0] }
 0x19d   : > { %v1351_v58 = vpack.c.bf16 %v1291_v47, %v1113_v40 }
 0x19e   : > { %1065 = vmatmul.bf16.gmra.mxu2 %v788_v50  ;;  %1154 = vmatmul.bf16.gmra.mxu3 %v4636_v8 }
 0x19f   : > { %v1407_v9 = vunpack.c.l.bf16 %v1351_v58  ;;  %v1408_v52 = vunpack.c.h.bf16 %v1351_v58  ;;  %1332 = vmatmul.bf16.gmra.mxu1 %v4636_v8 }
 0x1a1   : > { %v1026_v54 = vpop.f32.mrf.mxu2  ;;  %v1115_v56 = vpop.f32.mrf.mxu3  ;;  %v1473_v62 = vadd.f32 %v4644_v61, %v1407_v9  ;;  %v1474_v33 = vadd.f32 %v4646_v2, %v1408_v52 }
 0x1a2   : > { %v1116_v63 = vadd.f32 %v1115_v56, %v1026_v54  ;;  %v1204_v45 = vpop.f32.mrf.mxu0  ;;  %v4745_v54 = vor.u32 %v3990_v53, %v3822_v55  ;;  %v3987_v53 = vld [vmem:[#allocation5 + $0x54] sm:$0xf0] }
 0x1a3   : > { %v1294_v34 = vadd.f32 %v1293_v51, %v1204_v45  ;;  %v1633_v4 = vmax.f32 %v1473_v62, 0.0  ;;  %v1634_v6 = vmax.f32 %v1474_v33, 0.0 }
 0x1a4   : > { %v1295_v8 = vpop.f32.mrf.mxu1  ;;  %1243 = vmatmul.bf16.gmra.mxu0 %v788_v50 }
 0x1a5   : > { %v1352_v7 = vpack.c.bf16 %v1294_v34, %v1116_v63  ;;  %v4729_v29 = vpack.c.bf16 %v1633_v4, %v1631_v0  ;;  %v4731_v10 = vpack.c.bf16 %v1634_v6, %v1632_v49  ;;  %2992 = vmatpush.bf16.msrb.mxu0 %v4745_v54 }
 0x1a7   : > { %v1409_v20 = vunpack.c.l.bf16 %v1352_v7  ;;  %v1410_v21 = vunpack.c.h.bf16 %v1352_v7  ;;  %v3876_v7 = vld [vmem:[#allocation5 + $0xe0] sm:$0xf] }
 0x1a8   : > { %v3877_v14 = vor.u32 %v4005_v12, %v3876_v7 }
 0x1a9   : > { %v1028_v15 = vpop.f32.mrf.mxu2  ;;  %v1117_v16 = vpop.f32.mrf.mxu3  ;;  %v1475_v26 = vadd.f32 %v4644_v61, %v1409_v20  ;;  %v1476_v28 = vadd.f32 %v4646_v2, %v1410_v21 }
 0x1aa   : > { %v1118_v59 = vadd.f32 %v1117_v16, %v1028_v15  ;;  %v1206_v48 = vpop.f32.mrf.mxu0  ;;  %2904 = vmatpush.bf16.msrb.mxu3 %v3877_v14  ;;  %v3988_v14 = vld [vmem:[#allocation5 + $0x64] sm:$0xf] }
 0x1ab   : > { %v1296_v11 = vadd.f32 %v1295_v8, %v1206_v48  ;;  %v1635_v50 = vmax.f32 %v1475_v26, 0.0  ;;  %v1636_v22 = vmax.f32 %v1476_v28, 0.0  ;;  %v4004_v28 = vld [vmem:[#allocation5 + $0xe4] sm:$0xf] }
 0x1ac   : > { %v1298_v3 = vpop.f32.mrf.mxu1 }
 0x1ad   : > { %v1353_v23 = vpack.c.bf16 %v1296_v11, %v1118_v59 }
 0x1ae   : > { %1903 = vmatmul.bf16.vlgmr.msra.gmra.mxu2 %v4654_v44  ;;  %1992 = vmatmul.bf16.vlgmr.msra.gmra.mxu3 %v4656_v37 }
 0x1af   : > { %v1411_v27 = vunpack.c.l.bf16 %v1353_v23  ;;  %v1412_v30 = vunpack.c.h.bf16 %v1353_v23  ;;  %2170 = vmatmul.bf16.vlgmr.msra.gmra.mxu1 %v4656_v37 }
 0x1b1   : > { %v1031_v43 = vpop.f32.mrf.mxu2  ;;  %v1120_v39 = vpop.f32.mrf.mxu3  ;;  %v1477_v40 = vadd.f32 %v4644_v61, %v1411_v27  ;;  %v1478_v18 = vadd.f32 %v4646_v2, %v1412_v30 }
 0x1b2   : > { %v1121_v41 = vadd.f32 %v1120_v39, %v1031_v43  ;;  %v1209_v47 = vpop.f32.mrf.mxu0  ;;  %v3881_v43 = vor.u32 %v4004_v28, %v3878_v38  ;;  %v3868_v28 = vld [vmem:[#allocation5 + $0xd0] sm:$0xf]  ;;  %v4003_v38 = vld [vmem:[#allocation5 + $0xd4] sm:$0xf0] }
 0x1b3   : > { %v1299_v51 = vadd.f32 %v1298_v3, %v1209_v47  ;;  %v1637_v58 = vmax.f32 %v1477_v40, 0.0  ;;  %v1638_v9 = vmax.f32 %v1478_v18, 0.0 }
 0x1b4   : > { %v1300_v37 = vpop.f32.mrf.mxu1  ;;  %2081 = vmatmul.bf16.vlgmr.msra.gmra.mxu0 %v4654_v44  ;;  %3082 = vmatpush.bf16.msrb.mxu1 %v3881_v43 }
 0x1b5   : > { %v1354_v52 = vpack.c.bf16 %v1299_v51, %v1121_v41  ;;  %v4741_v1 = vpack.c.bf16 %v1637_v58, %v1635_v50  ;;  %v4743_v19 = vpack.c.bf16 %v1638_v9, %v1636_v22 }
 0x1b7   : > { %v1413_v33 = vunpack.c.l.bf16 %v1354_v52  ;;  %v1414_v0 = vunpack.c.h.bf16 %v1354_v52  ;;  %v3804_v52 = vld [vmem:[#allocation5 + $0x50] sm:$0xf] }
 0x1b9   : > { %v1033_v56 = vpop.f32.mrf.mxu2  ;;  %v1122_v62 = vpop.f32.mrf.mxu3  ;;  %v1479_v49 = vadd.f32 %v4644_v61, %v1413_v33  ;;  %v1480_v13 = vadd.f32 %v4646_v2, %v1414_v0 }
 0x1ba   : > { %v1123_v63 = vadd.f32 %v1122_v62, %v1033_v56  ;;  %v1211_v45 = vpop.f32.mrf.mxu0  ;;  %v3805_v56 = vor.u32 %v3987_v53, %v3804_v52 }
 0x1bb   : > { %v1301_v34 = vadd.f32 %v1300_v37, %v1211_v45  ;;  %v1639_v11 = vmax.f32 %v1479_v49, 0.0  ;;  %v1640_v26 = vmax.f32 %v1480_v13, 0.0 }
 0x1bc   : > { %v1303_v4 = vpop.f32.mrf.mxu1  ;;  %2816 = vmatpush.bf16.msrb.mxu2 %v3805_v56  ;;  %v4002_v56 = vld [vmem:[#allocation5 + $0xd4] sm:$0xf] }
 0x1bd   : > { %v1355_v44 = vpack.c.bf16 %v1301_v34, %v1123_v63 }
 0x1be   : > { %1908 = vmatmul.bf16.gmra.mxu2 %v4666_v24  ;;  %1997 = vmatmul.bf16.gmra.mxu3 %v4668_v25 }
 0x1bf   : > { %v1415_v6 = vunpack.c.l.bf16 %v1355_v44  ;;  %v1416_v8 = vunpack.c.h.bf16 %v1355_v44  ;;  %2175 = vmatmul.bf16.gmra.mxu1 %v4668_v25 }
 0x1c1   : > { %v1036_v15 = vpop.f32.mrf.mxu2  ;;  %v1125_v16 = vpop.f32.mrf.mxu3  ;;  %v1481_v20 = vadd.f32 %v4644_v61, %v1415_v6  ;;  %v1482_v59 = vadd.f32 %v4646_v2, %v1416_v8 }
 0x1c2   : > { %v1126_v48 = vadd.f32 %v1125_v16, %v1036_v15  ;;  %v1214_v21 = vpop.f32.mrf.mxu0  ;;  %v3814_v15 = vld [vmem:[#allocation5 + $0x68] sm:$0xf0] }
 0x1c3   : > { %v1304_v3 = vadd.f32 %v1303_v4, %v1214_v21  ;;  %v1641_v23 = vmax.f32 %v1481_v20, 0.0  ;;  %v1642_v27 = vmax.f32 %v1482_v59, 0.0  ;;  %v4772_v16 = vor.u32 %v3988_v14, %v3814_v15  ;;  %v3796_v14 = vld [vmem:[#allocation5 + $0x40] sm:$0xf]  ;;  %v3985_v15 = vld [vmem:[#allocation5 + $0x44] sm:$0xf0] }
 0x1c4   : > { %v1305_v25 = vpop.f32.mrf.mxu1  ;;  %2086 = vmatmul.bf16.gmra.mxu0 %v4666_v24 }
 0x1c5   : > { %v1356_v30 = vpack.c.bf16 %v1304_v3, %v1126_v48  ;;  %v4756_v31 = vpack.c.bf16 %v1641_v23, %v1639_v11  ;;  %v4758_v36 = vpack.c.bf16 %v1642_v27, %v1640_v26  ;;  %2993 = vmatpush.bf16.msrb.mxu0 %v4772_v16 }
 0x1c7   : > { %v1417_v18 = vunpack.c.l.bf16 %v1356_v30  ;;  %v1418_v50 = vunpack.c.h.bf16 %v1356_v30 }
 0x1c9   : > { %v1038_v39 = vpop.f32.mrf.mxu2  ;;  %v1127_v40 = vpop.f32.mrf.mxu3  ;;  %v1483_v24 = vadd.f32 %v4644_v61, %v1417_v18  ;;  %v1484_v55 = vadd.f32 %v4646_v2, %v1418_v50 }
 0x1ca   : > { %v1128_v41 = vadd.f32 %v1127_v40, %v1038_v39  ;;  %v1216_v47 = vpop.f32.mrf.mxu0  ;;  %v3869_v39 = vor.u32 %v4003_v38, %v3868_v28 }
 0x1cb   : > { %v1306_v51 = vadd.f32 %v1305_v25, %v1216_v47  ;;  %v1643_v4 = vmax.f32 %v1483_v24, 0.0  ;;  %v1644_v6 = vmax.f32 %v1484_v55, 0.0 }
 0x1cc   : > { %v1308_v58 = vpop.f32.mrf.mxu1  ;;  %2905 = vmatpush.bf16.msrb.mxu3 %v3869_v39 }
 0x1cd   : > { %v1357_v22 = vpack.c.bf16 %v1306_v51, %v1128_v41 }
 0x1ce   : > { %1913 = vmatmul.bf16.gmra.mxu2 %v4678_v5  ;;  %2002 = vmatmul.bf16.gmra.mxu3 %v4680_v17 }
 0x1cf   : > { %v1419_v9 = vunpack.c.l.bf16 %v1357_v22  ;;  %v1420_v37 = vunpack.c.h.bf16 %v1357_v22  ;;  %2180 = vmatmul.bf16.gmra.mxu1 %v4680_v17 }
 0x1d1   : > { %v1041_v62 = vpop.f32.mrf.mxu2  ;;  %v1130_v33 = vpop.f32.mrf.mxu3  ;;  %v1485_v63 = vadd.f32 %v4644_v61, %v1419_v9  ;;  %v1486_v45 = vadd.f32 %v4646_v2, %v1420_v37 }
 0x1d2   : > { %v1131_v0 = vadd.f32 %v1130_v33, %v1041_v62  ;;  %v1219_v34 = vpop.f32.mrf.mxu0  ;;  %v3870_v62 = vld [vmem:[#allocation5 + $0xd8] sm:$0xf0] }
 0x1d3   : > { %v1309_v44 = vadd.f32 %v1308_v58, %v1219_v34  ;;  %v1645_v49 = vmax.f32 %v1485_v63, 0.0  ;;  %v1646_v8 = vmax.f32 %v1486_v45, 0.0  ;;  %v3873_v33 = vor.u32 %v4002_v56, %v3870_v62  ;;  %v3860_v62 = vld [vmem:[#allocation5 + $0xc0] sm:$0xf] }
 0x1d4   : > { %v1310_v17 = vpop.f32.mrf.mxu1  ;;  %2091 = vmatmul.bf16.gmra.mxu0 %v4678_v5 }
 0x1d5   : > { %v1358_v7 = vpack.c.bf16 %v1309_v44, %v1131_v0  ;;  %v4768_v12 = vpack.c.bf16 %v1645_v49, %v1643_v4  ;;  %v4770_v13 = vpack.c.bf16 %v1646_v8, %v1644_v6  ;;  %3083 = vmatpush.bf16.msrb.mxu1 %v3873_v33  ;;  %v4001_v33 = vld [vmem:[#allocation5 + $0xc4] sm:$0xf0] }
 0x1d7   : > { %v1421_v48 = vunpack.c.l.bf16 %v1358_v7  ;;  %v1422_v3 = vunpack.c.h.bf16 %v1358_v7 }
 0x1d9   : > { %v1043_v20 = vpop.f32.mrf.mxu2  ;;  %v1132_v59 = vpop.f32.mrf.mxu3  ;;  %v1487_v27 = vadd.f32 %v4644_v61, %v1421_v48  ;;  %v1488_v43 = vadd.f32 %v4646_v2, %v1422_v3 }
 0x1da   : > { %v1133_v21 = vadd.f32 %v1132_v59, %v1043_v20  ;;  %v1221_v11 = vpop.f32.mrf.mxu0  ;;  %v3797_v59 = vor.u32 %v3985_v15, %v3796_v14 }
 0x1db   : > { %v1311_v23 = vadd.f32 %v1310_v17, %v1221_v11  ;;  %v1647_v58 = vmax.f32 %v1487_v27, 0.0  ;;  %v1648_v9 = vmax.f32 %v1488_v43, 0.0 }
 0x1dc   : > { %v1313_v26 = vpop.f32.mrf.mxu1  ;;  %2817 = vmatpush.bf16.msrb.mxu2 %v3797_v59 }
 0x1dd   : > { %v1359_v5 = vpack.c.bf16 %v1311_v23, %v1133_v21 }
 0x1de   : > { %1918 = vmatmul.bf16.gmra.mxu2 %v4690_v57  ;;  %2007 = vmatmul.bf16.gmra.mxu3 %v4692_v60 }
 0x1df   : > { %v1423_v25 = vunpack.c.l.bf16 %v1359_v5  ;;  %v1424_v30 = vunpack.c.h.bf16 %v1359_v5  ;;  %2185 = vmatmul.bf16.gmra.mxu1 %v4692_v60 }
 0x1e1   : > { %v1046_v40 = vpop.f32.mrf.mxu2  ;;  %v1135_v18 = vpop.f32.mrf.mxu3  ;;  %v1489_v41 = vadd.f32 %v4644_v61, %v1423_v25  ;;  %v1490_v47 = vadd.f32 %v4646_v2, %v1424_v30 }
 0x1e2   : > { %v1136_v50 = vadd.f32 %v1135_v18, %v1046_v40  ;;  %v1224_v51 = vpop.f32.mrf.mxu0  ;;  %v3986_v40 = vld [vmem:[#allocation5 + $0x54] sm:$0xf]  ;;  %v3806_v18 = vld [vmem:[#allocation5 + $0x58] sm:$0xf0] }
 0x1e3   : > { %v1314_v22 = vadd.f32 %v1313_v26, %v1224_v51  ;;  %v1649_v24 = vmax.f32 %v1489_v41, 0.0  ;;  %v1650_v37 = vmax.f32 %v1490_v47, 0.0  ;;  %v4799_v41 = vor.u32 %v3986_v40, %v3806_v18  ;;  %v3788_v40 = vld [vmem:[#allocation5 + $0x30] sm:$0xf]  ;;  %v3983_v18 = vld [vmem:[#allocation5 + $0x34] sm:$0xf0] }
 0x1e4   : > { %v1315_v60 = vpop.f32.mrf.mxu1  ;;  %2096 = vmatmul.bf16.gmra.mxu0 %v4690_v57 }
 0x1e5   : > { %v1360_v52 = vpack.c.bf16 %v1314_v22, %v1136_v50  ;;  %v4783_v53 = vpack.c.bf16 %v1649_v24, %v1647_v58  ;;  %v4785_v55 = vpack.c.bf16 %v1650_v37, %v1648_v9  ;;  %2994 = vmatpush.bf16.msrb.mxu0 %v4799_v41 }
 0x1e7   : > { %v1425_v0 = vunpack.c.l.bf16 %v1360_v52  ;;  %v1426_v44 = vunpack.c.h.bf16 %v1360_v52 }
 0x1e9   : > { %v1048_v63 = vpop.f32.mrf.mxu2  ;;  %v1137_v45 = vpop.f32.mrf.mxu3  ;;  %v1491_v57 = vadd.f32 %v4644_v61, %v1425_v0  ;;  %v1492_v20 = vadd.f32 %v4646_v2, %v1426_v44 }
 0x1ea   : > { %v1138_v34 = vadd.f32 %v1137_v45, %v1048_v63  ;;  %v1226_v4 = vpop.f32.mrf.mxu0  ;;  %v3861_v45 = vor.u32 %v4001_v33, %v3860_v62 }
 0x1eb   : > { %v1316_v49 = vadd.f32 %v1315_v60, %v1226_v4  ;;  %v1651_v5 = vmax.f32 %v1491_v57, 0.0  ;;  %v1652_v30 = vmax.f32 %v1492_v20, 0.0 }
 0x1ec   : > { %v1318_v6 = vpop.f32.mrf.mxu1  ;;  %2906 = vmatpush.bf16.msrb.mxu3 %v3861_v45 }
 0x1ed   : > { %v1361_v8 = vpack.c.bf16 %v1316_v49, %v1138_v34 }
 0x1ee   : > { %1923 = vmatmul.bf16.gmra.mxu2 %v4702_v42  ;;  %2012 = vmatmul.bf16.gmra.mxu3 %v4704_v46 }
 0x1ef   : > { %v1427_v17 = vunpack.c.l.bf16 %v1361_v8  ;;  %v1428_v7 = vunpack.c.h.bf16 %v1361_v8  ;;  %2190 = vmatmul.bf16.gmra.mxu1 %v4704_v46 }
 0x1f1   : > { %v1051_v48 = vpop.f32.mrf.mxu2  ;;  %v1140_v21 = vpop.f32.mrf.mxu3  ;;  %v1493_v11 = vadd.f32 %v4644_v61, %v1427_v17  ;;  %v1494_v3 = vadd.f32 %v4646_v2, %v1428_v7 }
 0x1f2   : > { %v1141_v23 = vadd.f32 %v1140_v21, %v1051_v48  ;;  %v1229_v26 = vpop.f32.mrf.mxu0  ;;  %v4000_v48 = vld [vmem:[#allocation5 + $0xc4] sm:$0xf]  ;;  %v3862_v21 = vld [vmem:[#allocation5 + $0xc8] sm:$0xf0] }
 0x1f3   : > { %v1319_v27 = vadd.f32 %v1318_v6, %v1229_v26  ;;  %v1653_v25 = vmax.f32 %v1493_v11, 0.0  ;;  %v1654_v28 = vmax.f32 %v1494_v3, 0.0  ;;  %v3865_v11 = vor.u32 %v4000_v48, %v3862_v21 }
 0x1f4   : > { %v1320_v46 = vpop.f32.mrf.mxu1  ;;  %2101 = vmatmul.bf16.gmra.mxu0 %v4702_v42 }
 0x1f5   : > { %v1362_v38 = vpack.c.bf16 %v1319_v27, %v1141_v23  ;;  %v4795_v43 = vpack.c.bf16 %v1653_v25, %v1651_v5  ;;  %v4797_v39 = vpack.c.bf16 %v1654_v28, %v1652_v30  ;;  %3084 = vmatpush.bf16.msrb.mxu1 %v3865_v11 }
 0x1f7   : > { %v1429_v51 = vunpack.c.l.bf16 %v1362_v38  ;;  %v1430_v24 = vunpack.c.h.bf16 %v1362_v38 }
 0x1f9   : > { %v1053_v47 = vpop.f32.mrf.mxu2  ;;  %v1142_v50 = vpop.f32.mrf.mxu3  ;;  %v1495_v60 = vadd.f32 %v4644_v61, %v1429_v51  ;;  %v1496_v63 = vadd.f32 %v4646_v2, %v1430_v24 }
 0x1fa   : > { %v1143_v58 = vadd.f32 %v1142_v50, %v1053_v47  ;;  %v1231_v22 = vpop.f32.mrf.mxu0  ;;  %v3789_v50 = vor.u32 %v3983_v18, %v3788_v40  ;;  %v3852_v18 = vld [vmem:[#allocation5 + $0xb0] sm:$0xf] }
 0x1fb   : > { %v1321_v9 = vadd.f32 %v1320_v46, %v1231_v22  ;;  %v1655_v8 = vmax.f32 %v1495_v60, 0.0  ;;  %v1656_v7 = vmax.f32 %v1496_v63, 0.0 }
 0x1fc   : > { %v1323_v37 = vpop.f32.mrf.mxu1  ;;  %2818 = vmatpush.bf16.msrb.mxu2 %v3789_v50 }
 0x1fd   : > { %v1363_v42 = vpack.c.bf16 %v1321_v9, %v1143_v58 }
 0x1fe   : > { %1928 = vmatmul.bf16.gmra.mxu2 %v4717_v32  ;;  %2017 = vmatmul.bf16.gmra.mxu3 %v4719_v35 }
 0x1ff   : > { %v1431_v52 = vunpack.c.l.bf16 %v1363_v42  ;;  %v1432_v56 = vunpack.c.h.bf16 %v1363_v42  ;;  %2195 = vmatmul.bf16.gmra.mxu1 %v4719_v35 }
 0x201   : > { %v1056_v0 = vpop.f32.mrf.mxu2  ;;  %v1145_v34 = vpop.f32.mrf.mxu3  ;;  %v1497_v4 = vadd.f32 %v4644_v61, %v1431_v52  ;;  %v1498_v44 = vadd.f32 %v4646_v2, %v1432_v56 }
 0x202   : > { %v1146_v49 = vadd.f32 %v1145_v34, %v1056_v0  ;;  %v1234_v6 = vpop.f32.mrf.mxu0 }
 0x203   : > { %v1324_v57 = vadd.f32 %v1323_v37, %v1234_v6  ;;  %v1657_v17 = vmax.f32 %v1497_v4, 0.0  ;;  %v1658_v14 = vmax.f32 %v1498_v44, 0.0 }
 0x204   : > { %v1325_v35 = vpop.f32.mrf.mxu1  ;;  %2106 = vmatmul.bf16.gmra.mxu0 %v4717_v32 }
 0x205   : > { %v1364_v15 = vpack.c.bf16 %v1324_v57, %v1146_v49  ;;  %v4810_v20 = vpack.c.bf16 %v1657_v17, %v1655_v8  ;;  %v4812_v59 = vpack.c.bf16 %v1658_v14, %v1656_v7  ;;  %v3984_v17 = vld [vmem:[#allocation5 + $0x44] sm:$0xf]  ;;  %v3798_v7 = vld [vmem:[#allocation5 + $0x48] sm:$0xf0] }
 0x207   : > { %v1433_v27 = vunpack.c.l.bf16 %v1364_v15  ;;  %v1434_v30 = vunpack.c.h.bf16 %v1364_v15 }
 0x209   : > { %v1058_v3 = vpop.f32.mrf.mxu2  ;;  %v1147_v23 = vpop.f32.mrf.mxu3  ;;  %v1499_v47 = vadd.f32 %v4644_v61, %v1433_v27  ;;  %v1500_v51 = vadd.f32 %v4646_v2, %v1434_v30 }
 0x20a   : > { %v1148_v26 = vadd.f32 %v1147_v23, %v1058_v3  ;;  %v1236_v5 = vpop.f32.mrf.mxu0 }
 0x20b   : > { %v1326_v25 = vadd.f32 %v1325_v35, %v1236_v5  ;;  %v1659_v52 = vmax.f32 %v1499_v47, 0.0  ;;  %v1660_v62 = vmax.f32 %v1500_v51, 0.0  ;;  %v4826_v35 = vor.u32 %v3984_v17, %v3798_v7  ;;  %v3999_v47 = vld [vmem:[#allocation5 + $0xb4] sm:$0xf0] }
 0x20c   : > { %v1328_v28 = vpop.f32.mrf.mxu1 }
 0x20d   : > { %v1365_v46 = vpack.c.bf16 %v1326_v25, %v1148_v26  ;;  %2995 = vmatpush.bf16.msrb.mxu0 %v4826_v35 }
 0x20e   : > { %1933 = vmatmul.bf16.gmra.mxu2 %v4729_v29  ;;  %2022 = vmatmul.bf16.gmra.mxu3 %v4731_v10 }
 0x20f   : > { %v1435_v32 = vunpack.c.l.bf16 %v1365_v46  ;;  %v1436_v38 = vunpack.c.h.bf16 %v1365_v46  ;;  %2200 = vmatmul.bf16.gmra.mxu1 %v4731_v10 }
 0x211   : > { %v1061_v58 = vpop.f32.mrf.mxu2  ;;  %v1150_v22 = vpop.f32.mrf.mxu3  ;;  %v1501_v24 = vadd.f32 %v4644_v61, %v1435_v32  ;;  %v1502_v9 = vadd.f32 %v4646_v2, %v1436_v38 }
 0x212   : > { %v1151_v37 = vadd.f32 %v1150_v22, %v1061_v58  ;;  %v1239_v42 = vpop.f32.mrf.mxu0  ;;  %v3853_v58 = vor.u32 %v3999_v47, %v3852_v18  ;;  %v3998_v22 = vld [vmem:[#allocation5 + $0xb4] sm:$0xf] }
 0x213   : > { %v1329_v60 = vadd.f32 %v1328_v28, %v1239_v42  ;;  %v1661_v56 = vmax.f32 %v1501_v24, 0.0  ;;  %v1662_v33 = vmax.f32 %v1502_v9, 0.0  ;;  %v3854_v24 = vld [vmem:[#allocation5 + $0xb8] sm:$0xf0] }
 0x214   : > { %v1330_v10 = vpop.f32.mrf.mxu1  ;;  %2111 = vmatmul.bf16.gmra.mxu0 %v4729_v29  ;;  %2907 = vmatpush.bf16.msrb.mxu3 %v3853_v58  ;;  %v3857_v9 = vor.u32 %v3998_v22, %v3854_v24 }
 0x215   : > { %v1366_v63 = vpack.c.bf16 %v1329_v60, %v1151_v37  ;;  %v4822_v45 = vpack.c.bf16 %v1661_v56, %v1659_v52  ;;  %v4824_v0 = vpack.c.bf16 %v1662_v33, %v1660_v62 }
 0x216   : > { %3085 = vmatpush.bf16.msrb.mxu1 %v3857_v9 }
 0x217   : > { %v1437_v44 = vunpack.c.l.bf16 %v1366_v63  ;;  %v1438_v8 = vunpack.c.h.bf16 %v1366_v63  ;;  %v2286_v63 = vld [vmem:[#allocation1] sm:$0xff] }
 0x219   : > { %v1063_v34 = vpop.f32.mrf.mxu2  ;;  %v1152_v4 = vpop.f32.mrf.mxu3  ;;  %v1503_v15 = vadd.f32 %v4644_v61, %v1437_v44  ;;  %v1504_v11 = vadd.f32 %v4646_v2, %v1438_v8  ;;  %v3981_v8 = vld [vmem:[#allocation5 + $0x24] sm:$0xf0] }
 0x21a   : > { %v1153_v49 = vadd.f32 %v1152_v4, %v1063_v34  ;;  %v1241_v6 = vpop.f32.mrf.mxu0 }
 0x21b   : > { %v1331_v57 = vadd.f32 %v1330_v10, %v1241_v6  ;;  %v1663_v30 = vmax.f32 %v1503_v15, 0.0  ;;  %v1664_v32 = vmax.f32 %v1504_v11, 0.0  ;;  %v3780_v6 = vld [vmem:[#allocation5 + $0x20] sm:$0xf]  ;;  %v2288_v11 = vpack.i.b16 %v2286_v63, %v2286_v63 }
 0x21c   : > { %v1333_v14 = vpop.f32.mrf.mxu1  ;;  %v3781_v17 = vor.u32 %v3981_v8, %v3780_v6 }
 0x21d   : > { %v1367_v29 = vpack.c.bf16 %v1331_v57, %v1153_v49  ;;  %v2287_v49 = vld [vmem:[#allocation1 + $0x9] sm:$0xff] }
 0x21e   : > { %1938 = vmatmul.bf16.gmra.mxu2 %v4741_v1  ;;  %2027 = vmatmul.bf16.gmra.mxu3 %v4743_v19 }
 0x21f   : > { %v1439_v48 = vunpack.c.l.bf16 %v1367_v29  ;;  %v1440_v21 = vunpack.c.h.bf16 %v1367_v29  ;;  %2205 = vmatmul.bf16.gmra.mxu1 %v4743_v19  ;;  %2819 = vmatpush.bf16.msrb.mxu2 %v3781_v17 }
 0x221   : > { %v1066_v3 = vpop.f32.mrf.mxu2  ;;  %v1155_v23 = vpop.f32.mrf.mxu3  ;;  %v1505_v26 = vadd.f32 %v4644_v61, %v1439_v48  ;;  %v1506_v5 = vadd.f32 %v4646_v2, %v1440_v21 }
 0x222   : > { %v1156_v27 = vadd.f32 %v1155_v23, %v1066_v3  ;;  %v1244_v25 = vpop.f32.mrf.mxu0  ;;  %v2291_v3 = vpack.i.b16 %v2287_v49, %v2287_v49 }
 0x223   : > { %v1334_v28 = vadd.f32 %v1333_v14, %v1244_v25  ;;  %v1665_v46 = vmax.f32 %v1505_v26, 0.0  ;;  %v1666_v38 = vmax.f32 %v1506_v5, 0.0 }
 0x224   : > { %v1335_v40 = vpop.f32.mrf.mxu1  ;;  %2116 = vmatmul.bf16.gmra.mxu0 %v4741_v1 }
 0x225   : > { %v1368_v19 = vpack.c.bf16 %v1334_v28, %v1156_v27  ;;  %v4837_v50 = vpack.c.bf16 %v1665_v46, %v1663_v30  ;;  %v4839_v51 = vpack.c.bf16 %v1666_v38, %v1664_v32  ;;  %v3982_v32 = vld [vmem:[#allocation5 + $0x34] sm:$0xf]  ;;  %v3790_v38 = vld [vmem:[#allocation5 + $0x38] sm:$0xf0] }
 0x227   : > { %v1441_v60 = vunpack.c.l.bf16 %v1368_v19  ;;  %v1442_v10 = vunpack.c.h.bf16 %v1368_v19 }
 0x229   : > { %v1068_v37 = vpop.f32.mrf.mxu2  ;;  %v1157_v42 = vpop.f32.mrf.mxu3  ;;  %v1507_v34 = vadd.f32 %v4644_v61, %v1441_v60  ;;  %v1508_v57 = vadd.f32 %v4646_v2, %v1442_v10 }
 0x22a   : > { %v1158_v52 = vadd.f32 %v1157_v42, %v1068_v37  ;;  %v1246_v56 = vpop.f32.mrf.mxu0 }
 0x22b   : > { %v1336_v1 = vadd.f32 %v1335_v40, %v1246_v56  ;;  %v1667_v23 = vmax.f32 %v1507_v34, 0.0  ;;  %v1668_v5 = vmax.f32 %v1508_v57, 0.0  ;;  %v4853_v40 = vor.u32 %v3982_v32, %v3790_v38 }
 0x22c   : > { %v2171_v62 = vpop.f32.mrf.mxu1 }
 0x22d   : > { %v1369_v33 = vpack.c.bf16 %v1336_v1, %v1158_v52  ;;  %2996 = vmatpush.bf16.msrb.mxu0 %v4853_v40 }
 0x22e   : > { %1943 = vmatmul.bf16.gmra.mxu2 %v4756_v31  ;;  %2032 = vmatmul.bf16.gmra.mxu3 %v4758_v36 }
 0x22f   : > { %v1443_v4 = vunpack.c.l.bf16 %v1369_v33  ;;  %v1444_v44 = vunpack.c.h.bf16 %v1369_v33  ;;  %2210 = vmatmul.bf16.gmra.mxu1 %v4758_v36  ;;  %v3997_v33 = vld [vmem:[#allocation5 + $0xa4] sm:$0xf0] }
 0x231   : > { %v1904_v7 = vpop.f32.mrf.mxu2  ;;  %v1993_v14 = vpop.f32.mrf.mxu3  ;;  %v1509_v29 = vadd.f32 %v4644_v61, %v1443_v4  ;;  %v1510_v15 = vadd.f32 %v4646_v2, %v1444_v44  ;;  %v2290_v61 = vperm.slane %v2288_v11, 0  ;;  %v2293_v2 = vperm.slane %v2291_v3, 0  ;;  %v3996_v11 = vld [vmem:[#allocation5 + $0xa4] sm:$0xf]  ;;  %v3846_v3 = vld [vmem:[#allocation5 + $0xa8] sm:$0xf0] }
 0x232   : > { %v1994_v48 = vadd.f32 %v1993_v14, %v1904_v7  ;;  %v2082_v21 = vpop.f32.mrf.mxu0 }
 0x233   : > { %v2172_v26 = vadd.f32 %v2171_v62, %v2082_v21  ;;  %v1669_v36 = vmax.f32 %v1509_v29, 0.0  ;;  %v1670_v27 = vmax.f32 %v1510_v15, 0.0  ;;  %v4855_v58 = vunpack.c.l.bf16 %v2290_v61  ;;  %v3844_v62 = vld [vmem:[#allocation5 + $0xa0] sm:$0xf] }
 0x234   : > { %v2173_v25 = vpop.f32.mrf.mxu1  ;;  %2121 = vmatmul.bf16.gmra.mxu0 %v4756_v31  ;;  %v4858_v9 = vunpack.c.l.bf16 %v2293_v2  ;;  %v3845_v63 = vor.u32 %v3997_v33, %v3844_v62 }
 0x235   : > { %v2251_v30 = vpack.c.bf16 %v2172_v26, %v1994_v48  ;;  %v4849_v28 = vpack.c.bf16 %v1669_v36, %v1667_v23  ;;  %v4851_v46 = vpack.c.bf16 %v1670_v27, %v1668_v5  ;;  %v3849_v23 = vor.u32 %v3996_v11, %v3846_v3 }
 0x236   : > { %2908 = vmatpush.bf16.msrb.mxu3 %v3845_v63 }
 0x237   : > { %v2294_v47 = vunpack.c.l.bf16 %v2251_v30  ;;  %v2295_v31 = vunpack.c.h.bf16 %v2251_v30  ;;  %3086 = vmatpush.bf16.msrb.mxu1 %v3849_v23 }
 0x239   : > { %v1906_v19 = vpop.f32.mrf.mxu2  ;;  %v1995_v18 = vpop.f32.mrf.mxu3  ;;  %v2360_v52 = vadd.f32 %v4855_v58, %v2294_v47  ;;  %v2361_v56 = vadd.f32 %v4858_v9, %v2295_v31  ;;  %v3979_v47 = vld [vmem:[#allocation5 + $0x14] sm:$0xf0] }
 0x23a   : > { %v1996_v22 = vadd.f32 %v1995_v18, %v1906_v19  ;;  %v2084_v24 = vpop.f32.mrf.mxu0  ;;  %v3772_v18 = vld [vmem:[#allocation5 + $0x10] sm:$0xf] }
 0x23b   : > { %v2174_v37 = vadd.f32 %v2173_v25, %v2084_v24  ;;  %v2520_v6 = vmax.f32 %v2360_v52, 0.0  ;;  %v2521_v17 = vmax.f32 %v2361_v56, 0.0  ;;  %v3773_v24 = vor.u32 %v3979_v47, %v3772_v18 }
 0x23c   : > { %v2176_v42 = vpop.f32.mrf.mxu1 }
 0x23d   : > { %v2252_v60 = vpack.c.bf16 %v2174_v37, %v1996_v22  ;;  %2820 = vmatpush.bf16.msrb.mxu2 %v3773_v24 }
 0x23e   : > { %1948 = vmatmul.bf16.gmra.mxu2 %v4768_v12  ;;  %2037 = vmatmul.bf16.gmra.mxu3 %v4770_v13 }
 0x23f   : > { %v2296_v10 = vunpack.c.l.bf16 %v2252_v60  ;;  %v2297_v1 = vunpack.c.h.bf16 %v2252_v60  ;;  %2215 = vmatmul.bf16.gmra.mxu1 %v4770_v13 }
 0x241   : > { %v2362_v34 = vadd.f32 %v4855_v58, %v2296_v10  ;;  %v2363_v4 = vadd.f32 %v4858_v9, %v2297_v1  ;;  %v1909_v44 = vpop.f32.mrf.mxu2  ;;  %v1998_v49 = vpop.f32.mrf.mxu3 }
 0x242   : > { %v1999_v8 = vadd.f32 %v1998_v49, %v1909_v44  ;;  %v2087_v57 = vpop.f32.mrf.mxu0  ;;  %v3980_v49 = vld [vmem:[#allocation5 + $0x24] sm:$0xf] }
 0x243   : > { %v2522_v7 = vmax.f32 %v2362_v34, 0.0  ;;  %v2523_v14 = vmax.f32 %v2363_v4, 0.0  ;;  %v2177_v29 = vadd.f32 %v2176_v42, %v2087_v57 }
 0x244   : > { %v2178_v15 = vpop.f32.mrf.mxu1  ;;  %2126 = vmatmul.bf16.gmra.mxu0 %v4768_v12 }
 0x245   : > { %v4868_v13 = vpack.c.bf16 %v2522_v7, %v2520_v6  ;;  %v4870_v48 = vpack.c.bf16 %v2523_v14, %v2521_v17  ;;  %v2253_v21 = vpack.c.bf16 %v2177_v29, %v1999_v8  ;;  %v3782_v6 = vld [vmem:[#allocation5 + $0x28] sm:$0xf0] }
 0x246   : > { %v4884_v8 = vor.u32 %v3980_v49, %v3782_v6 }
 0x247   : > { %v2298_v5 = vunpack.c.l.bf16 %v2253_v21  ;;  %v2299_v30 = vunpack.c.h.bf16 %v2253_v21 }
 0x248   : > { %2997 = vmatpush.bf16.msrb.mxu0 %v4884_v8 }
 0x249   : > { %v1911_v26 = vpop.f32.mrf.mxu2  ;;  %v2000_v36 = vpop.f32.mrf.mxu3  ;;  %v2364_v12 = vadd.f32 %v4855_v58, %v2298_v5  ;;  %v2365_v22 = vadd.f32 %v4858_v9, %v2299_v30  ;;  %v3995_v5 = vld [vmem:[#allocation5 + $0x94] sm:$0xf0] }
 0x24a   : > { %v2001_v27 = vadd.f32 %v2000_v36, %v1911_v26  ;;  %v2089_v25 = vpop.f32.mrf.mxu0  ;;  %v3836_v36 = vld [vmem:[#allocation5 + $0x90] sm:$0xf] }
 0x24b   : > { %v2179_v61 = vadd.f32 %v2178_v15, %v2089_v25  ;;  %v2524_v10 = vmax.f32 %v2364_v12, 0.0  ;;  %v2525_v33 = vmax.f32 %v2365_v22, 0.0  ;;  %v3837_v25 = vor.u32 %v3995_v5, %v3836_v36 }
 0x24c   : > { %v2181_v2 = vpop.f32.mrf.mxu1 }
 0x24d   : > { %v2254_v32 = vpack.c.bf16 %v2179_v61, %v2001_v27  ;;  %2909 = vmatpush.bf16.msrb.mxu3 %v3837_v25 }
 0x24e   : > { %1953 = vmatmul.bf16.gmra.mxu2 %v4783_v53  ;;  %2042 = vmatmul.bf16.gmra.mxu3 %v4785_v55 }
 0x24f   : > { %v2300_v38 = vunpack.c.l.bf16 %v2254_v32  ;;  %v2301_v19 = vunpack.c.h.bf16 %v2254_v32  ;;  %2220 = vmatmul.bf16.gmra.mxu1 %v4785_v55 }
 0x251   : > { %v1914_v31 = vpop.f32.mrf.mxu2  ;;  %v2003_v37 = vpop.f32.mrf.mxu3  ;;  %v2366_v42 = vadd.f32 %v4855_v58, %v2300_v38  ;;  %v2367_v60 = vadd.f32 %v4858_v9, %v2301_v19 }
 0x252   : > { %v2004_v52 = vadd.f32 %v2003_v37, %v1914_v31  ;;  %v2092_v56 = vpop.f32.mrf.mxu0 }
 0x253   : > { %v2182_v1 = vadd.f32 %v2181_v2, %v2092_v56  ;;  %v2526_v62 = vmax.f32 %v2366_v42, 0.0  ;;  %v2527_v63 = vmax.f32 %v2367_v60, 0.0  ;;  %v3994_v60 = vld [vmem:[#allocation5 + $0x94] sm:$0xf] }
 0x254   : > { %v2183_v55 = vpop.f32.mrf.mxu1  ;;  %2131 = vmatmul.bf16.gmra.mxu0 %v4783_v53 }
 0x255   : > { %v2255_v34 = vpack.c.bf16 %v2182_v1, %v2004_v52  ;;  %v4880_v4 = vpack.c.bf16 %v2526_v62, %v2524_v10  ;;  %v4882_v44 = vpack.c.bf16 %v2527_v63, %v2525_v33  ;;  %v3838_v52 = vld [vmem:[#allocation5 + $0x98] sm:$0xf0] }
 0x256   : > { %v3841_v56 = vor.u32 %v3994_v60, %v3838_v52 }
 0x257   : > { %v2302_v7 = vunpack.c.l.bf16 %v2255_v34  ;;  %v2303_v15 = vunpack.c.h.bf16 %v2255_v34 }
 0x258   : > { %3087 = vmatpush.bf16.msrb.mxu1 %v3841_v56 }
 0x259   : > { %v1916_v57 = vpop.f32.mrf.mxu2  ;;  %v2005_v17 = vpop.f32.mrf.mxu3  ;;  %v2368_v3 = vadd.f32 %v4855_v58, %v2302_v7  ;;  %v2369_v27 = vadd.f32 %v4858_v9, %v2303_v15  ;;  %v3764_v7 = vld [vmem:[#allocation5] sm:$0xf] }
 0x25a   : > { %v2006_v14 = vadd.f32 %v2005_v17, %v1916_v57  ;;  %v2094_v29 = vpop.f32.mrf.mxu0 }
 0x25b   : > { %v2184_v21 = vadd.f32 %v2183_v55, %v2094_v29  ;;  %v2528_v19 = vmax.f32 %v2368_v3, 0.0  ;;  %v2529_v22 = vmax.f32 %v2369_v27, 0.0 }
 0x25c   : > { %v2186_v11 = vpop.f32.mrf.mxu1 }
 0x25d   : > { %v2256_v53 = vpack.c.bf16 %v2184_v21, %v2006_v14  ;;  %v3977_v14 = vld [vmem:[#allocation5 + $0x4] sm:$0xf0] }
 0x25e   : > { %1958 = vmatmul.bf16.gmra.mxu2 %v4795_v43  ;;  %2047 = vmatmul.bf16.gmra.mxu3 %v4797_v39  ;;  %v3765_v15 = vor.u32 %v3977_v14, %v3764_v7 }
 0x25f   : > { %v2304_v23 = vunpack.c.l.bf16 %v2256_v53  ;;  %v2305_v26 = vunpack.c.h.bf16 %v2256_v53  ;;  %2225 = vmatmul.bf16.gmra.mxu1 %v4797_v39 }
 0x260   : > { %2821 = vmatpush.bf16.msrb.mxu2 %v3765_v15 }
 0x261   : > { %v1919_v30 = vpop.f32.mrf.mxu2  ;;  %v2008_v61 = vpop.f32.mrf.mxu3  ;;  %v2370_v2 = vadd.f32 %v4855_v58, %v2304_v23  ;;  %v2371_v32 = vadd.f32 %v4858_v9, %v2305_v26 }
 0x262   : > { %v2009_v12 = vadd.f32 %v2008_v61, %v1919_v30  ;;  %v2097_v38 = vpop.f32.mrf.mxu0 }
 0x263   : > { %v2187_v18 = vadd.f32 %v2186_v11, %v2097_v38  ;;  %v2530_v47 = vmax.f32 %v2370_v2, 0.0  ;;  %v2531_v24 = vmax.f32 %v2371_v32, 0.0  ;;  %v3774_v38 = vld [vmem:[#allocation5 + $0x18] sm:$0xf0] }
 0x264   : > { %v2188_v39 = vpop.f32.mrf.mxu1  ;;  %2136 = vmatmul.bf16.gmra.mxu0 %v4795_v43  ;;  %4012 = vmatpush.bf16.msra.mxu2 %v4745_v54 }
 0x265   : > { %v2257_v31 = vpack.c.bf16 %v2187_v18, %v2009_v12  ;;  %v4895_v37 = vpack.c.bf16 %v2530_v47, %v2528_v19  ;;  %v4897_v42 = vpack.c.bf16 %v2531_v24, %v2529_v22  ;;  %v3978_v12 = vld [vmem:[#allocation5 + $0x14] sm:$0xf] }
 0x266   : > { %v3777_v19 = vor.u32 %v3978_v12, %v3774_v38  ;;  %v3976_v12 = vld [vmem:[#allocation5 + $0x4] sm:$0xf]  ;;  %v3766_v38 = vld [vmem:[#allocation5 + $0x8] sm:$0xf0] }
 0x267   : > { %v2306_v62 = vunpack.c.l.bf16 %v2257_v31  ;;  %v2307_v55 = vunpack.c.h.bf16 %v2257_v31 }
 0x268   : > { %4013 = vmatpush.bf16.msra.mxu2 %v4772_v16  ;;  %2998 = vmatpush.bf16.msrb.mxu0 %v3777_v19 }
 0x269   : > { %v1921_v10 = vpop.f32.mrf.mxu2  ;;  %v2010_v1 = vpop.f32.mrf.mxu3  ;;  %v2372_v43 = vadd.f32 %v4855_v58, %v2306_v62  ;;  %v2373_v29 = vadd.f32 %v4858_v9, %v2307_v55 }
 0x26a   : > { %v2011_v33 = vadd.f32 %v2010_v1, %v1921_v10  ;;  %v2099_v63 = vpop.f32.mrf.mxu0  ;;  %v3828_v10 = vld [vmem:[#allocation5 + $0x80] sm:$0xf]  ;;  %v3993_v1 = vld [vmem:[#allocation5 + $0x84] sm:$0xf0] }
 0x26b   : > { %v2189_v34 = vadd.f32 %v2188_v39, %v2099_v63  ;;  %v2532_v36 = vmax.f32 %v2372_v43, 0.0 }
 0x26c   : > { %v2191_v49 = vpop.f32.mrf.mxu1  ;;  %4014 = vmatpush.bf16.msra.mxu2 %v4799_v41 }
 0x26d   : > { %v2258_v6 = vpack.c.bf16 %v2189_v34, %v2011_v33  ;;  %v3829_v33 = vor.u32 %v3993_v1, %v3828_v10 }
 0x26e   : > { %1963 = vmatmul.bf16.gmra.mxu2 %v4810_v20  ;;  %2052 = vmatmul.bf16.gmra.mxu3 %v4812_v59 }
 0x26f   : > { %v2308_v57 = vunpack.c.l.bf16 %v2258_v6  ;;  %v2309_v17 = vunpack.c.h.bf16 %v2258_v6  ;;  %2230 = vmatmul.bf16.gmra.mxu1 %v4812_v59  ;;  %v2533_v59 = vmax.f32 %v2373_v29, 0.0  ;;  %2910 = vmatpush.bf16.msrb.mxu3 %v3829_v33 }
 0x270   : > { %4015 = vmatpush.bf16.msra.mxu2 %v4826_v35 }
 0x271   : > { %v1924_v21 = vpop.f32.mrf.mxu2  ;;  %v2013_v11 = vpop.f32.mrf.mxu3  ;;  %v2374_v53 = vadd.f32 %v4855_v58, %v2308_v57  ;;  %v2375_v3 = vadd.f32 %v4858_v9, %v2309_v17 }
 0x272   : > { %v2014_v23 = vadd.f32 %v2013_v11, %v1924_v21  ;;  %v2102_v26 = vpop.f32.mrf.mxu0  ;;  %v3992_v21 = vld [vmem:[#allocation5 + $0x84] sm:$0xf]  ;;  %v3830_v11 = vld [vmem:[#allocation5 + $0x88] sm:$0xf0] }
 0x273   : > { %v2192_v5 = vadd.f32 %v2191_v49, %v2102_v26  ;;  %v2534_v27 = vmax.f32 %v2374_v53, 0.0  ;;  %v2535_v25 = vmax.f32 %v2375_v3, 0.0  ;;  %v3833_v53 = vor.u32 %v3992_v21, %v3830_v11 }
 0x274   : > { %v2193_v30 = vpop.f32.mrf.mxu1  ;;  %2141 = vmatmul.bf16.gmra.mxu0 %v4810_v20  ;;  %4016 = vmatpush.bf16.msra.mxu2 %v4853_v40 }
 0x275   : > { %v2259_v61 = vpack.c.bf16 %v2192_v5, %v2014_v23  ;;  %v4908_v2 = vpack.c.bf16 %v2534_v27, %v2532_v36  ;;  %v4910_v32 = vpack.c.bf16 %v2535_v25, %v2533_v59  ;;  %3088 = vmatpush.bf16.msrb.mxu1 %v3833_v53 }
 0x277   : > { %v2310_v22 = vunpack.c.l.bf16 %v2259_v61  ;;  %v2311_v39 = vunpack.c.h.bf16 %v2259_v61 }
 0x278   : > { %4017 = vmatpush.bf16.msra.mxu2 %v4884_v8 }
 0x279   : > { %v1926_v18 = vpop.f32.mrf.mxu2  ;;  %v2015_v47 = vpop.f32.mrf.mxu3  ;;  %v2376_v52 = vadd.f32 %v4855_v58, %v2310_v22  ;;  %v2377_v62 = vadd.f32 %v4858_v9, %v2311_v39  ;;  %v3769_v22 = vor.u32 %v3976_v12, %v3766_v38 }
 0x27a   : > { %v2016_v54 = vadd.f32 %v2015_v47, %v1926_v18  ;;  %v2104_v24 = vpop.f32.mrf.mxu0 }
 0x27b   : > { %v2194_v31 = vadd.f32 %v2193_v30, %v2104_v24  ;;  %v2536_v43 = vmax.f32 %v2376_v52, 0.0  ;;  %2999 = vmatpush.bf16.msrb.mxu0 %v3769_v22 }
 0x27c   : > { %v2196_v20 = vpop.f32.mrf.mxu1  ;;  %4018 = vmatpush.bf16.msra.mxu2 %v3777_v19 }
 0x27d   : > { %v2260_v60 = vpack.c.bf16 %v2194_v31, %v2016_v54 }
 0x27e   : > { %1968 = vmatmul.bf16.gmra.mxu2 %v4822_v45  ;;  %2057 = vmatmul.bf16.gmra.mxu3 %v4824_v0 }
 0x27f   : > { %v2312_v16 = vunpack.c.l.bf16 %v2260_v60  ;;  %v2313_v56 = vunpack.c.h.bf16 %v2260_v60  ;;  %2235 = vmatmul.bf16.gmra.mxu1 %v4824_v0  ;;  %v2537_v0 = vmax.f32 %v2377_v62, 0.0 }
 0x280   : > { %4019 = vmatpush.bf16.msra.mxu2 %v3769_v22 }
 0x281   : > { %v1929_v41 = vpop.f32.mrf.mxu2  ;;  %v2018_v63 = vpop.f32.mrf.mxu3  ;;  %v2378_v55 = vadd.f32 %v4855_v58, %v2312_v16  ;;  %v2379_v34 = vadd.f32 %v4858_v9, %v2313_v56 }
 0x282   : > { %v2019_v49 = vadd.f32 %v2018_v63, %v1929_v41  ;;  %v2107_v6 = vpop.f32.mrf.mxu0 }
 0x283   : > { %v2197_v57 = vadd.f32 %v2196_v20, %v2107_v6  ;;  %v2538_v17 = vmax.f32 %v2378_v55, 0.0  ;;  %v2539_v7 = vmax.f32 %v2379_v34, 0.0 }
 0x284   : > { %v2198_v14 = vpop.f32.mrf.mxu1  ;;  %2146 = vmatmul.bf16.gmra.mxu0 %v4822_v45 }
 0x285   : > { %v2261_v35 = vpack.c.bf16 %v2197_v57, %v2019_v49  ;;  %v4924_v29 = vpack.c.bf16 %v2538_v17, %v2536_v43  ;;  %v4926_v15 = vpack.c.bf16 %v2539_v7, %v2537_v0 }
 0x287   : > { %v2314_v26 = vunpack.c.l.bf16 %v2261_v35  ;;  %v2315_v40 = vunpack.c.h.bf16 %v2261_v35 }
 0x289   : > { %v1931_v3 = vpop.f32.mrf.mxu2  ;;  %v2020_v23 = vpop.f32.mrf.mxu3  ;;  %v2380_v25 = vadd.f32 %v4855_v58, %v2314_v26  ;;  %v2381_v61 = vadd.f32 %v4858_v9, %v2315_v40 }
 0x28a   : > { %v2021_v36 = vadd.f32 %v2020_v23, %v1931_v3  ;;  %v2109_v5 = vpop.f32.mrf.mxu0 }
 0x28b   : > { %v2199_v27 = vadd.f32 %v2198_v14, %v2109_v5  ;;  %v2540_v31 = vmax.f32 %v2380_v25, 0.0  ;;  %v2541_v52 = vmax.f32 %v2381_v61, 0.0 }
 0x28c   : > { %v2201_v45 = vpop.f32.mrf.mxu1 }
 0x28d   : > { %v2262_v59 = vpack.c.bf16 %v2199_v27, %v2021_v36 }
 0x28e   : > { %1973 = vmatmul.bf16.gmra.mxu2 %v4837_v50  ;;  %2062 = vmatmul.bf16.gmra.mxu3 %v4839_v51 }
 0x28f   : > { %v2316_v30 = vunpack.c.l.bf16 %v2262_v59  ;;  %v2317_v8 = vunpack.c.h.bf16 %v2262_v59  ;;  %2240 = vmatmul.bf16.gmra.mxu1 %v4839_v51 }
 0x291   : > { %v1934_v18 = vpop.f32.mrf.mxu2  ;;  %v2023_v47 = vpop.f32.mrf.mxu3  ;;  %v2382_v19 = vadd.f32 %v4855_v58, %v2316_v30  ;;  %v2383_v54 = vadd.f32 %v4858_v9, %v2317_v8 }
 0x292   : > { %v2024_v24 = vadd.f32 %v2023_v47, %v1934_v18  ;;  %v2112_v39 = vpop.f32.mrf.mxu0 }
 0x293   : > { %v2202_v20 = vadd.f32 %v2201_v45, %v2112_v39  ;;  %v2542_v60 = vmax.f32 %v2382_v19, 0.0  ;;  %v2543_v16 = vmax.f32 %v2383_v54, 0.0 }
 0x294   : > { %v2203_v51 = vpop.f32.mrf.mxu1  ;;  %2151 = vmatmul.bf16.gmra.mxu0 %v4837_v50 }
 0x295   : > { %v2263_v56 = vpack.c.bf16 %v2202_v20, %v2024_v24  ;;  %v4937_v10 = vpack.c.bf16 %v2542_v60, %v2540_v31  ;;  %v4939_v1 = vpack.c.bf16 %v2543_v16, %v2541_v52 }
 0x297   : > { %v2318_v41 = vunpack.c.l.bf16 %v2263_v56  ;;  %v2319_v34 = vunpack.c.h.bf16 %v2263_v56 }
 0x299   : > { %v1936_v62 = vpop.f32.mrf.mxu2  ;;  %v2025_v33 = vpop.f32.mrf.mxu3  ;;  %v2384_v50 = vadd.f32 %v4855_v58, %v2318_v41  ;;  %v2385_v0 = vadd.f32 %v4858_v9, %v2319_v34 }
 0x29a   : > { %v2026_v63 = vadd.f32 %v2025_v33, %v1936_v62  ;;  %v2114_v55 = vpop.f32.mrf.mxu0 }
 0x29b   : > { %v2204_v49 = vadd.f32 %v2203_v51, %v2114_v55  ;;  %v2544_v3 = vmax.f32 %v2384_v50, 0.0  ;;  %v2545_v36 = vmax.f32 %v2385_v0, 0.0 }
 0x29c   : > { %v2206_v6 = vpop.f32.mrf.mxu1 }
 0x29d   : > { %v2264_v43 = vpack.c.bf16 %v2204_v49, %v2026_v63 }
 0x29e   : > { %1978 = vmatmul.bf16.gmra.mxu2 %v4849_v28  ;;  %2067 = vmatmul.bf16.gmra.mxu3 %v4851_v46 }
 0x29f   : > { %v2320_v57 = vunpack.c.l.bf16 %v2264_v43  ;;  %v2321_v17 = vunpack.c.h.bf16 %v2264_v43  ;;  %2245 = vmatmul.bf16.gmra.mxu1 %v4851_v46 }
 0x2a1   : > { %v1939_v7 = vpop.f32.mrf.mxu2  ;;  %v2028_v14 = vpop.f32.mrf.mxu3  ;;  %v2386_v35 = vadd.f32 %v4855_v58, %v2320_v57  ;;  %v2387_v21 = vadd.f32 %v4858_v9, %v2321_v17 }
 0x2a2   : > { %v2029_v11 = vadd.f32 %v2028_v14, %v1939_v7  ;;  %v2117_v53 = vpop.f32.mrf.mxu0 }
 0x2a3   : > { %v2207_v23 = vadd.f32 %v2206_v6, %v2117_v53  ;;  %v2546_v26 = vmax.f32 %v2386_v35, 0.0  ;;  %v2547_v5 = vmax.f32 %v2387_v21, 0.0 }
 0x2a4   : > { %v2208_v40 = vpop.f32.mrf.mxu1  ;;  %2156 = vmatmul.bf16.gmra.mxu0 %v4849_v28 }
 0x2a5   : > { %v2265_v27 = vpack.c.bf16 %v2207_v23, %v2029_v11  ;;  %v4949_v46 = vpack.c.bf16 %v2546_v26, %v2544_v3  ;;  %v4951_v45 = vpack.c.bf16 %v2547_v5, %v2545_v36 }
 0x2a7   : > { %v2322_v30 = vunpack.c.l.bf16 %v2265_v27  ;;  %v2323_v12 = vunpack.c.h.bf16 %v2265_v27 }
 0x2a9   : > { %v1941_v59 = vpop.f32.mrf.mxu2  ;;  %v2030_v25 = vpop.f32.mrf.mxu3  ;;  %v2388_v28 = vadd.f32 %v4855_v58, %v2322_v30  ;;  %v2389_v54 = vadd.f32 %v4858_v9, %v2323_v12 }
 0x2aa   : > { %v2031_v8 = vadd.f32 %v2030_v25, %v1941_v59  ;;  %v2119_v61 = vpop.f32.mrf.mxu0 }
 0x2ab   : > { %v2209_v38 = vadd.f32 %v2208_v40, %v2119_v61  ;;  %v2548_v16 = vmax.f32 %v2388_v28, 0.0  ;;  %v2549_v62 = vmax.f32 %v2389_v54, 0.0 }
 0x2ac   : > { %v2211_v18 = vpop.f32.mrf.mxu1 }
 0x2ad   : > { %v2266_v47 = vpack.c.bf16 %v2209_v38, %v2031_v8 }
 0x2ae   : > { %2822 = vmatmul.bf16.vlgmr.msrb.gmra.mxu2 %v4868_v13  ;;  %2911 = vmatmul.bf16.vlgmr.msrb.gmra.mxu3 %v4870_v48 }
 0x2af   : > { %v2324_v22 = vunpack.c.l.bf16 %v2266_v47  ;;  %v2325_v19 = vunpack.c.h.bf16 %v2266_v47  ;;  %3089 = vmatmul.bf16.vlgmr.msrb.gmra.mxu1 %v4870_v48 }
 0x2b1   : > { %v1944_v24 = vpop.f32.mrf.mxu2  ;;  %v2033_v39 = vpop.f32.mrf.mxu3  ;;  %v2390_v31 = vadd.f32 %v4855_v58, %v2324_v22  ;;  %v2391_v20 = vadd.f32 %v4858_v9, %v2325_v19 }
 0x2b2   : > { %v2034_v60 = vadd.f32 %v2033_v39, %v1944_v24  ;;  %v2122_v52 = vpop.f32.mrf.mxu0 }
 0x2b3   : > { %v2212_v51 = vadd.f32 %v2211_v18, %v2122_v52  ;;  %v2550_v56 = vmax.f32 %v2390_v31, 0.0  ;;  %v2551_v33 = vmax.f32 %v2391_v20, 0.0 }
 0x2b4   : > { %v2213_v41 = vpop.f32.mrf.mxu1  ;;  %3000 = vmatmul.bf16.vlgmr.msrb.gmra.mxu0 %v4868_v13 }
 0x2b5   : > { %v2267_v63 = vpack.c.bf16 %v2212_v51, %v2034_v60  ;;  %v4961_v48 = vpack.c.bf16 %v2550_v56, %v2548_v16  ;;  %v4963_v55 = vpack.c.bf16 %v2551_v33, %v2549_v62 }
 0x2b7   : > { %v2326_v6 = vunpack.c.l.bf16 %v2267_v63  ;;  %v2327_v57 = vunpack.c.h.bf16 %v2267_v63 }
 0x2b9   : > { %v1946_v34 = vpop.f32.mrf.mxu2  ;;  %v2035_v49 = vpop.f32.mrf.mxu3  ;;  %v2392_v13 = vadd.f32 %v4855_v58, %v2326_v6  ;;  %v2393_v21 = vadd.f32 %v4858_v9, %v2327_v57 }
 0x2ba   : > { %v2036_v43 = vadd.f32 %v2035_v49, %v1946_v34  ;;  %v2124_v50 = vpop.f32.mrf.mxu0 }
 0x2bb   : > { %v2214_v17 = vadd.f32 %v2213_v41, %v2124_v50  ;;  %v2552_v5 = vmax.f32 %v2392_v13, 0.0  ;;  %v2553_v59 = vmax.f32 %v2393_v21, 0.0 }
 0x2bc   : > { %v2216_v0 = vpop.f32.mrf.mxu1 }
 0x2bd   : > { %v2268_v7 = vpack.c.bf16 %v2214_v17, %v2036_v43 }
 0x2be   : > { %2827 = vmatmul.bf16.gmra.mxu2 %v4880_v4  ;;  %2916 = vmatmul.bf16.gmra.mxu3 %v4882_v44 }
 0x2bf   : > { %v2328_v14 = vunpack.c.l.bf16 %v2268_v7  ;;  %v2329_v35 = vunpack.c.h.bf16 %v2268_v7  ;;  %3094 = vmatmul.bf16.gmra.mxu1 %v4882_v44 }
 0x2c1   : > { %v1949_v11 = vpop.f32.mrf.mxu2  ;;  %v2038_v53 = vpop.f32.mrf.mxu3  ;;  %v2394_v3 = vadd.f32 %v4855_v58, %v2328_v14  ;;  %v2395_v23 = vadd.f32 %v4858_v9, %v2329_v35 }
 0x2c2   : > { %v2039_v26 = vadd.f32 %v2038_v53, %v1949_v11  ;;  %v2127_v36 = vpop.f32.mrf.mxu0 }
 0x2c3   : > { %v2217_v40 = vadd.f32 %v2216_v0, %v2127_v36  ;;  %v2554_v27 = vmax.f32 %v2394_v3, 0.0  ;;  %v2555_v25 = vmax.f32 %v2395_v23, 0.0 }
 0x2c4   : > { %v2218_v30 = vpop.f32.mrf.mxu1  ;;  %3005 = vmatmul.bf16.gmra.mxu0 %v4880_v4 }
 0x2c5   : > { %v2269_v8 = vpack.c.bf16 %v2217_v40, %v2039_v26  ;;  %v4973_v44 = vpack.c.bf16 %v2554_v27, %v2552_v5  ;;  %v4975_v61 = vpack.c.bf16 %v2555_v25, %v2553_v59 }
 0x2c7   : > { %v2330_v18 = vunpack.c.l.bf16 %v2269_v8  ;;  %v2331_v22 = vunpack.c.h.bf16 %v2269_v8 }
 0x2c9   : > { %v1951_v12 = vpop.f32.mrf.mxu2  ;;  %v2040_v38 = vpop.f32.mrf.mxu3  ;;  %v2396_v4 = vadd.f32 %v4855_v58, %v2330_v18  ;;  %v2397_v20 = vadd.f32 %v4858_v9, %v2331_v22 }
 0x2ca   : > { %v2041_v47 = vadd.f32 %v2040_v38, %v1951_v12  ;;  %v2129_v28 = vpop.f32.mrf.mxu0 }
 0x2cb   : > { %v2219_v19 = vadd.f32 %v2218_v30, %v2129_v28  ;;  %v2556_v33 = vmax.f32 %v2396_v4, 0.0  ;;  %v2557_v34 = vmax.f32 %v2397_v20, 0.0 }
 0x2cc   : > { %v2221_v54 = vpop.f32.mrf.mxu1 }
 0x2cd   : > { %v2270_v24 = vpack.c.bf16 %v2219_v19, %v2041_v47 }
 0x2ce   : > { %2832 = vmatmul.bf16.gmra.mxu2 %v4895_v37  ;;  %2921 = vmatmul.bf16.gmra.mxu3 %v4897_v42 }
 0x2cf   : > { %v2332_v39 = vunpack.c.l.bf16 %v2270_v24  ;;  %v2333_v31 = vunpack.c.h.bf16 %v2270_v24  ;;  %3099 = vmatmul.bf16.gmra.mxu1 %v4897_v42 }
 0x2d1   : > { %v1954_v60 = vpop.f32.mrf.mxu2  ;;  %v2043_v52 = vpop.f32.mrf.mxu3  ;;  %v2398_v16 = vadd.f32 %v4855_v58, %v2332_v39  ;;  %v2399_v51 = vadd.f32 %v4858_v9, %v2333_v31 }
 0x2d2   : > { %v2044_v56 = vadd.f32 %v2043_v52, %v1954_v60  ;;  %v2132_v62 = vpop.f32.mrf.mxu0 }
 0x2d3   : > { %v2222_v41 = vadd.f32 %v2221_v54, %v2132_v62  ;;  %v2558_v63 = vmax.f32 %v2398_v16, 0.0  ;;  %v2559_v49 = vmax.f32 %v2399_v51, 0.0 }
 0x2d4   : > { %v2223_v6 = vpop.f32.mrf.mxu1  ;;  %3010 = vmatmul.bf16.gmra.mxu0 %v4895_v37 }
 0x2d5   : > { %v2271_v43 = vpack.c.bf16 %v2222_v41, %v2044_v56  ;;  %v4985_v42 = vpack.c.bf16 %v2558_v63, %v2556_v33  ;;  %v4987_v50 = vpack.c.bf16 %v2559_v49, %v2557_v34 }
 0x2d7   : > { %v2334_v0 = vunpack.c.l.bf16 %v2271_v43  ;;  %v2335_v14 = vunpack.c.h.bf16 %v2271_v43 }
 0x2d9   : > { %v1956_v57 = vpop.f32.mrf.mxu2  ;;  %v2045_v17 = vpop.f32.mrf.mxu3  ;;  %v2400_v37 = vadd.f32 %v4855_v58, %v2334_v0  ;;  %v2401_v23 = vadd.f32 %v4858_v9, %v2335_v14 }
 0x2da   : > { %v2046_v7 = vadd.f32 %v2045_v17, %v1956_v57  ;;  %v2134_v13 = vpop.f32.mrf.mxu0 }
 0x2db   : > { %v2224_v35 = vadd.f32 %v2223_v6, %v2134_v13  ;;  %v2560_v25 = vmax.f32 %v2400_v37, 0.0  ;;  %v2561_v12 = vmax.f32 %v2401_v23, 0.0 }
 0x2dc   : > { %v2226_v21 = vpop.f32.mrf.mxu1 }
 0x2dd   : > { %v2272_v11 = vpack.c.bf16 %v2224_v35, %v2046_v7 }
 0x2de   : > { %2837 = vmatmul.bf16.gmra.mxu2 %v4908_v2  ;;  %2926 = vmatmul.bf16.gmra.mxu3 %v4910_v32 }
 0x2df   : > { %v2336_v53 = vunpack.c.l.bf16 %v2272_v11  ;;  %v2337_v3 = vunpack.c.h.bf16 %v2272_v11  ;;  %3104 = vmatmul.bf16.gmra.mxu1 %v4910_v32 }
 0x2e1   : > { %v1959_v26 = vpop.f32.mrf.mxu2  ;;  %v2048_v36 = vpop.f32.mrf.mxu3  ;;  %v2402_v5 = vadd.f32 %v4855_v58, %v2336_v53  ;;  %v2403_v40 = vadd.f32 %v4858_v9, %v2337_v3 }
 0x2e2   : > { %v2049_v27 = vadd.f32 %v2048_v36, %v1959_v26  ;;  %v2137_v59 = vpop.f32.mrf.mxu0 }
 0x2e3   : > { %v2227_v30 = vadd.f32 %v2226_v21, %v2137_v59  ;;  %v2562_v8 = vmax.f32 %v2402_v5, 0.0  ;;  %v2563_v38 = vmax.f32 %v2403_v40, 0.0 }
 0x2e4   : > { %v2228_v18 = vpop.f32.mrf.mxu1  ;;  %3015 = vmatmul.bf16.gmra.mxu0 %v4908_v2 }
 0x2e5   : > { %v2273_v47 = vpack.c.bf16 %v2227_v30, %v2049_v27  ;;  %v4997_v32 = vpack.c.bf16 %v2562_v8, %v2560_v25  ;;  %v4999_v28 = vpack.c.bf16 %v2563_v38, %v2561_v12 }
 0x2e7   : > { %v2338_v54 = vunpack.c.l.bf16 %v2273_v47  ;;  %v2339_v39 = vunpack.c.h.bf16 %v2273_v47 }
 0x2e9   : > { %v1961_v22 = vpop.f32.mrf.mxu2  ;;  %v2050_v19 = vpop.f32.mrf.mxu3  ;;  %v2404_v2 = vadd.f32 %v4855_v58, %v2338_v54  ;;  %v2405_v51 = vadd.f32 %v4858_v9, %v2339_v39 }
 0x2ea   : > { %v2051_v24 = vadd.f32 %v2050_v19, %v1961_v22  ;;  %v2139_v4 = vpop.f32.mrf.mxu0 }
 0x2eb   : > { %v2229_v31 = vadd.f32 %v2228_v18, %v2139_v4  ;;  %v2564_v49 = vmax.f32 %v2404_v2, 0.0  ;;  %v2565_v57 = vmax.f32 %v2405_v51, 0.0 }
 0x2ec   : > { %v2231_v20 = vpop.f32.mrf.mxu1 }
 0x2ed   : > { %v2274_v60 = vpack.c.bf16 %v2229_v31, %v2051_v24 }
 0x2ee   : > { %2842 = vmatmul.bf16.gmra.mxu2 %v4924_v29  ;;  %2931 = vmatmul.bf16.gmra.mxu3 %v4926_v15 }
 0x2ef   : > { %v2340_v52 = vunpack.c.l.bf16 %v2274_v60  ;;  %v2341_v16 = vunpack.c.h.bf16 %v2274_v60  ;;  %3109 = vmatmul.bf16.gmra.mxu1 %v4926_v15 }
 0x2f1   : > { %v1964_v56 = vpop.f32.mrf.mxu2  ;;  %v2053_v62 = vpop.f32.mrf.mxu3  ;;  %v2406_v33 = vadd.f32 %v4855_v58, %v2340_v52  ;;  %v2407_v41 = vadd.f32 %v4858_v9, %v2341_v16 }
 0x2f2   : > { %v2054_v63 = vadd.f32 %v2053_v62, %v1964_v56  ;;  %v2142_v34 = vpop.f32.mrf.mxu0 }
 0x2f3   : > { %v2232_v6 = vadd.f32 %v2231_v20, %v2142_v34  ;;  %v2566_v43 = vmax.f32 %v2406_v33, 0.0  ;;  %v2567_v17 = vmax.f32 %v2407_v41, 0.0 }
 0x2f4   : > { %v2233_v0 = vpop.f32.mrf.mxu1  ;;  %3020 = vmatmul.bf16.gmra.mxu0 %v4924_v29 }
 0x2f5   : > { %v2275_v7 = vpack.c.bf16 %v2232_v6, %v2054_v63  ;;  %v5009_v15 = vpack.c.bf16 %v2566_v43, %v2564_v49  ;;  %v5011_v13 = vpack.c.bf16 %v2567_v17, %v2565_v57 }
 0x2f7   : > { %v2342_v21 = vunpack.c.l.bf16 %v2275_v7  ;;  %v2343_v53 = vunpack.c.h.bf16 %v2275_v7 }
 0x2f9   : > { %v1966_v14 = vpop.f32.mrf.mxu2  ;;  %v2055_v35 = vpop.f32.mrf.mxu3  ;;  %v2408_v29 = vadd.f32 %v4855_v58, %v2342_v21  ;;  %v2409_v40 = vadd.f32 %v4858_v9, %v2343_v53 }
 0x2fa   : > { %v2056_v11 = vadd.f32 %v2055_v35, %v1966_v14  ;;  %v2144_v37 = vpop.f32.mrf.mxu0 }
 0x2fb   : > { %v2234_v3 = vadd.f32 %v2233_v0, %v2144_v37  ;;  %v2568_v38 = vmax.f32 %v2408_v29, 0.0  ;;  %v2569_v22 = vmax.f32 %v2409_v40, 0.0 }
 0x2fc   : > { %v2236_v23 = vpop.f32.mrf.mxu1 }
 0x2fd   : > { %v2276_v26 = vpack.c.bf16 %v2234_v3, %v2056_v11 }
 0x2fe   : > { %2847 = vmatmul.bf16.gmra.mxu2 %v4937_v10  ;;  %2936 = vmatmul.bf16.gmra.mxu3 %v4939_v1 }
 0x2ff   : > { %v2344_v36 = vunpack.c.l.bf16 %v2276_v26  ;;  %v2345_v5 = vunpack.c.h.bf16 %v2276_v26  ;;  %3114 = vmatmul.bf16.gmra.mxu1 %v4939_v1 }
 0x301   : > { %v1969_v27 = vpop.f32.mrf.mxu2  ;;  %v2058_v59 = vpop.f32.mrf.mxu3  ;;  %v2410_v25 = vadd.f32 %v4855_v58, %v2344_v36  ;;  %v2411_v30 = vadd.f32 %v4858_v9, %v2345_v5 }
 0x302   : > { %v2059_v8 = vadd.f32 %v2058_v59, %v1969_v27  ;;  %v2147_v12 = vpop.f32.mrf.mxu0 }
 0x303   : > { %v2237_v18 = vadd.f32 %v2236_v23, %v2147_v12  ;;  %v2570_v47 = vmax.f32 %v2410_v25, 0.0  ;;  %v2571_v19 = vmax.f32 %v2411_v30, 0.0 }
 0x304   : > { %v2238_v54 = vpop.f32.mrf.mxu1  ;;  %3025 = vmatmul.bf16.gmra.mxu0 %v4937_v10 }
 0x305   : > { %v2277_v24 = vpack.c.bf16 %v2237_v18, %v2059_v8  ;;  %v5021_v1 = vpack.c.bf16 %v2570_v47, %v2568_v38  ;;  %v5023_v4 = vpack.c.bf16 %v2571_v19, %v2569_v22 }
 0x307   : > { %v2346_v20 = vunpack.c.l.bf16 %v2277_v24  ;;  %v2347_v52 = vunpack.c.h.bf16 %v2277_v24 }
 0x309   : > { %v1971_v39 = vpop.f32.mrf.mxu2  ;;  %v2060_v31 = vpop.f32.mrf.mxu3  ;;  %v2412_v10 = vadd.f32 %v4855_v58, %v2346_v20  ;;  %v2413_v41 = vadd.f32 %v4858_v9, %v2347_v52 }
 0x30a   : > { %v2061_v60 = vadd.f32 %v2060_v31, %v1971_v39  ;;  %v2149_v2 = vpop.f32.mrf.mxu0 }
 0x30b   : > { %v2239_v16 = vadd.f32 %v2238_v54, %v2149_v2  ;;  %v2572_v17 = vmax.f32 %v2412_v10, 0.0  ;;  %v2573_v14 = vmax.f32 %v2413_v41, 0.0  ;;  %v2648_v41 = vld [vmem:[%s5270_s7] sm:$0x3] }
 0x30c   : > { %v2241_v51 = vpop.f32.mrf.mxu1 }
 0x30d   : > { %v2278_v56 = vpack.c.bf16 %v2239_v16, %v2061_v60 }
 0x30e   : > { %2852 = vmatmul.bf16.gmra.mxu2 %v4949_v46  ;;  %2941 = vmatmul.bf16.gmra.mxu3 %v4951_v45 }
 0x30f   : > { %v2348_v62 = vunpack.c.l.bf16 %v2278_v56  ;;  %v2349_v33 = vunpack.c.h.bf16 %v2278_v56  ;;  %3119 = vmatmul.bf16.gmra.mxu1 %v4951_v45 }
 0x311   : > { %v1974_v63 = vpop.f32.mrf.mxu2  ;;  %v2063_v34 = vpop.f32.mrf.mxu3  ;;  %v2414_v49 = vadd.f32 %v4855_v58, %v2348_v62  ;;  %v2415_v6 = vadd.f32 %v4858_v9, %v2349_v33 }
 0x312   : > { %v2064_v43 = vadd.f32 %v2063_v34, %v1974_v63  ;;  %v2152_v57 = vpop.f32.mrf.mxu0 }
 0x313   : > { %v2242_v0 = vadd.f32 %v2241_v51, %v2152_v57  ;;  %v2574_v7 = vmax.f32 %v2414_v49, 0.0  ;;  %v2575_v35 = vmax.f32 %v2415_v6, 0.0  ;;  %v5059_v57 = vperm.slane %v2648_v41, 1 }
 0x314   : > { %v2243_v21 = vpop.f32.mrf.mxu1  ;;  %3030 = vmatmul.bf16.gmra.mxu0 %v4949_v46 }
 0x315   : > { %v2279_v11 = vpack.c.bf16 %v2242_v0, %v2064_v43  ;;  %v5033_v45 = vpack.c.bf16 %v2574_v7, %v2572_v17  ;;  %v5035_v37 = vpack.c.bf16 %v2575_v35, %v2573_v14 }
 0x317   : > { %v2350_v23 = vunpack.c.l.bf16 %v2279_v11  ;;  %v2351_v36 = vunpack.c.h.bf16 %v2279_v11 }
 0x319   : > { %v1976_v53 = vpop.f32.mrf.mxu2  ;;  %v2065_v3 = vpop.f32.mrf.mxu3  ;;  %v2416_v46 = vadd.f32 %v4855_v58, %v2350_v23  ;;  %v2417_v30 = vadd.f32 %v4858_v9, %v2351_v36 }
 0x31a   : > { %v2066_v26 = vadd.f32 %v2065_v3, %v1976_v53  ;;  %v2154_v29 = vpop.f32.mrf.mxu0 }
 0x31b   : > { %v2244_v5 = vadd.f32 %v2243_v21, %v2154_v29  ;;  %v2576_v19 = vmax.f32 %v2416_v46, 0.0  ;;  %v2577_v39 = vmax.f32 %v2417_v30, 0.0 }
 0x31c   : > { %v2246_v40 = vpop.f32.mrf.mxu1 }
 0x31d   : > { %v2280_v27 = vpack.c.bf16 %v2244_v5, %v2066_v26 }
 0x31e   : > { %2857 = vmatmul.bf16.gmra.mxu2 %v4961_v48  ;;  %2946 = vmatmul.bf16.gmra.mxu3 %v4963_v55 }
 0x31f   : > { %v2352_v59 = vunpack.c.l.bf16 %v2280_v27  ;;  %v2353_v25 = vunpack.c.h.bf16 %v2280_v27  ;;  %3124 = vmatmul.bf16.gmra.mxu1 %v4963_v55 }
 0x321   : > { %v1979_v8 = vpop.f32.mrf.mxu2  ;;  %v2068_v12 = vpop.f32.mrf.mxu3  ;;  %v2418_v38 = vadd.f32 %v4855_v58, %v2352_v59  ;;  %v2419_v18 = vadd.f32 %v4858_v9, %v2353_v25 }
 0x322   : > { %v2069_v47 = vadd.f32 %v2068_v12, %v1979_v8  ;;  %v2157_v22 = vpop.f32.mrf.mxu0 }
 0x323   : > { %v2247_v54 = vadd.f32 %v2246_v40, %v2157_v22  ;;  %v2578_v24 = vmax.f32 %v2418_v38, 0.0  ;;  %v2579_v31 = vmax.f32 %v2419_v18, 0.0 }
 0x324   : > { %v2248_v20 = vpop.f32.mrf.mxu1  ;;  %3035 = vmatmul.bf16.gmra.mxu0 %v4961_v48  ;;  %v5054_v48 = vperm.slane %v2648_v41, 0 }
 0x325   : > { %v2281_v60 = vpack.c.bf16 %v2247_v54, %v2069_v47  ;;  %v5045_v55 = vpack.c.bf16 %v2578_v24, %v2576_v19  ;;  %v5047_v2 = vpack.c.bf16 %v2579_v31, %v2577_v39 }
 0x327   : > { %v2354_v51 = vunpack.c.l.bf16 %v2281_v60  ;;  %v2355_v62 = vunpack.c.h.bf16 %v2281_v60 }
 0x329   : > { %v1981_v52 = vpop.f32.mrf.mxu2  ;;  %v2070_v16 = vpop.f32.mrf.mxu3  ;;  %v2420_v49 = vadd.f32 %v4855_v58, %v2354_v51  ;;  %v2421_v17 = vadd.f32 %v4858_v9, %v2355_v62 }
 0x32a   : > { %v2071_v56 = vadd.f32 %v2070_v16, %v1981_v52  ;;  %v2159_v10 = vpop.f32.mrf.mxu0 }
 0x32b   : > { %v2249_v33 = vadd.f32 %v2248_v20, %v2159_v10  ;;  %v2580_v53 = vmax.f32 %v2420_v49, 0.0  ;;  %v2581_v23 = vmax.f32 %v2421_v17, 0.0 }
 0x32c   : > { %v3090_v63 = vpop.f32.mrf.mxu1 }
 0x32d   : > { %v2282_v34 = vpack.c.bf16 %v2249_v33, %v2071_v56 }
 0x32e   : > { %2862 = vmatmul.bf16.gmra.mxu2 %v4973_v44  ;;  %2951 = vmatmul.bf16.gmra.mxu3 %v4975_v61 }
 0x32f   : > { %v2356_v6 = vunpack.c.l.bf16 %v2282_v34  ;;  %v2357_v43 = vunpack.c.h.bf16 %v2282_v34  ;;  %3129 = vmatmul.bf16.gmra.mxu1 %v4975_v61 }
 0x331   : > { %v2823_v0 = vpop.f32.mrf.mxu2  ;;  %v2912_v7 = vpop.f32.mrf.mxu3  ;;  %v2422_v14 = vadd.f32 %v4855_v58, %v2356_v6  ;;  %v2423_v35 = vadd.f32 %v4858_v9, %v2357_v43 }
 0x332   : > { %v2824_v21 = vadd.f32 %v2823_v0, %v5054_v48  ;;  %v3001_v11 = vpop.f32.mrf.mxu0 }
 0x333   : > { %v3002_v3 = vadd.f32 %v3001_v11, %v5059_v57  ;;  %v2582_v61 = vmax.f32 %v2422_v14, 0.0  ;;  %v2583_v26 = vmax.f32 %v2423_v35, 0.0 }
 0x334   : > { %v2913_v29 = vadd.f32 %v2912_v7, %v2824_v21  ;;  %v3092_v36 = vpop.f32.mrf.mxu1  ;;  %3040 = vmatmul.bf16.gmra.mxu0 %v4973_v44 }
 0x335   : > { %v3091_v5 = vadd.f32 %v3090_v63, %v3002_v3  ;;  %v5069_v40 = vpack.c.bf16 %v2582_v61, %v2580_v53  ;;  %v5071_v58 = vpack.c.bf16 %v2583_v26, %v2581_v23 }
 0x336   : > { %v3170_v9 = vmax.f32 %v2913_v29, 0.0 }
 0x337   : > { %v3171_v27 = vmax.f32 %v3091_v5, 0.0 }
 0x338   : > { %3234 = vst [vmem:[%s5073_s10] sm:$0xff] %v3170_v9 }
 0x339   : > { %3235 = vst [vmem:[%s5073_s10 + $0x8] sm:$0xff] %v3171_v27  ;;  %v2825_v46 = vpop.f32.mrf.mxu2  ;;  %v2914_v59 = vpop.f32.mrf.mxu3 }
 0x33a   : > { %v2826_v25 = vadd.f32 %v2825_v46, %v5054_v48  ;;  %v3003_v44 = vpop.f32.mrf.mxu0 }
 0x33b   : > { %v3004_v30 = vadd.f32 %v3003_v44, %v5059_v57 }
 0x33c   : > { %v2915_v8 = vadd.f32 %v2914_v59, %v2826_v25  ;;  %v3095_v12 = vpop.f32.mrf.mxu1 }
 0x33d   : > { %v3093_v38 = vadd.f32 %v3092_v36, %v3004_v30 }
 0x33e   : > { %v3172_v18 = vmax.f32 %v2915_v8, 0.0  ;;  %2867 = vmatmul.bf16.gmra.mxu2 %v4985_v42  ;;  %2956 = vmatmul.bf16.gmra.mxu3 %v4987_v50 }
 0x33f   : > { %v3173_v47 = vmax.f32 %v3093_v38, 0.0  ;;  %3134 = vmatmul.bf16.gmra.mxu1 %v4987_v50 }
 0x340   : > { %3236 = vst [vmem:[%s5073_s10 + $0x10] sm:$0xff] %v3172_v18 }
 0x341   : > { %3237 = vst [vmem:[%s5073_s10 + $0x18] sm:$0xff] %v3173_v47  ;;  %v2828_v22 = vpop.f32.mrf.mxu2  ;;  %v2917_v19 = vpop.f32.mrf.mxu3 }
 0x342   : > { %v2829_v54 = vadd.f32 %v2828_v22, %v5054_v48  ;;  %v3006_v24 = vpop.f32.mrf.mxu0 }
 0x343   : > { %v3007_v39 = vadd.f32 %v3006_v24, %v5059_v57 }
 0x344   : > { %v2918_v31 = vadd.f32 %v2917_v19, %v2829_v54  ;;  %v3097_v20 = vpop.f32.mrf.mxu1  ;;  %3045 = vmatmul.bf16.gmra.mxu0 %v4985_v42 }
 0x345   : > { %v3096_v60 = vadd.f32 %v3095_v12, %v3007_v39 }
 0x346   : > { %v3174_v52 = vmax.f32 %v2918_v31, 0.0 }
 0x347   : > { %v3175_v16 = vmax.f32 %v3096_v60, 0.0 }
 0x348   : > { %3238 = vst [vmem:[%s5073_s10 + $0x20] sm:$0xff] %v3174_v52 }
 0x349   : > { %3239 = vst [vmem:[%s5073_s10 + $0x28] sm:$0xff] %v3175_v16  ;;  %v2830_v50 = vpop.f32.mrf.mxu2  ;;  %v2919_v51 = vpop.f32.mrf.mxu3 }
 0x34a   : > { %v2831_v56 = vadd.f32 %v2830_v50, %v5054_v48  ;;  %v3008_v10 = vpop.f32.mrf.mxu0 }
 0x34b   : > { %v3009_v62 = vadd.f32 %v3008_v10, %v5059_v57 }
 0x34c   : > { %v2920_v33 = vadd.f32 %v2919_v51, %v2831_v56  ;;  %v3100_v41 = vpop.f32.mrf.mxu1 }
 0x34d   : > { %v3098_v63 = vadd.f32 %v3097_v20, %v3009_v62 }
 0x34e   : > { %v3176_v34 = vmax.f32 %v2920_v33, 0.0  ;;  %2872 = vmatmul.bf16.gmra.mxu2 %v4997_v32  ;;  %2961 = vmatmul.bf16.gmra.mxu3 %v4999_v28 }
 0x34f   : > { %v3177_v42 = vmax.f32 %v3098_v63, 0.0  ;;  %3139 = vmatmul.bf16.gmra.mxu1 %v4999_v28 }
 0x350   : > { %3240 = vst [vmem:[%s5073_s10 + $0x30] sm:$0xff] %v3176_v34 }
 0x351   : > { %3241 = vst [vmem:[%s5073_s10 + $0x38] sm:$0xff] %v3177_v42  ;;  %v2833_v49 = vpop.f32.mrf.mxu2  ;;  %v2922_v6 = vpop.f32.mrf.mxu3 }
 0x352   : > { %v2834_v43 = vadd.f32 %v2833_v49, %v5054_v48  ;;  %v3011_v17 = vpop.f32.mrf.mxu0 }
 0x353   : > { %v3012_v0 = vadd.f32 %v3011_v17, %v5059_v57 }
 0x354   : > { %v2923_v7 = vadd.f32 %v2922_v6, %v2834_v43  ;;  %v3102_v14 = vpop.f32.mrf.mxu1  ;;  %3050 = vmatmul.bf16.gmra.mxu0 %v4997_v32 }
 0x355   : > { %v3101_v35 = vadd.f32 %v3100_v41, %v3012_v0 }
 0x356   : > { %v3178_v21 = vmax.f32 %v2923_v7, 0.0 }
 0x357   : > { %v3179_v11 = vmax.f32 %v3101_v35, 0.0 }
 0x358   : > { %3242 = vst [vmem:[%s5073_s10 + $0x40] sm:$0xff] %v3178_v21 }
 0x359   : > { %3243 = vst [vmem:[%s5073_s10 + $0x48] sm:$0xff] %v3179_v11  ;;  %v2835_v28 = vpop.f32.mrf.mxu2  ;;  %v2924_v53 = vpop.f32.mrf.mxu3 }
 0x35a   : > { %v2836_v3 = vadd.f32 %v2835_v28, %v5054_v48  ;;  %v3013_v61 = vpop.f32.mrf.mxu0 }
 0x35b   : > { %v3014_v23 = vadd.f32 %v3013_v61, %v5059_v57 }
 0x35c   : > { %v2925_v26 = vadd.f32 %v2924_v53, %v2836_v3  ;;  %v3105_v29 = vpop.f32.mrf.mxu1 }
 0x35d   : > { %v3103_v36 = vadd.f32 %v3102_v14, %v3014_v23 }
 0x35e   : > { %v3180_v5 = vmax.f32 %v2925_v26, 0.0  ;;  %2877 = vmatmul.bf16.gmra.mxu2 %v5009_v15  ;;  %2966 = vmatmul.bf16.gmra.mxu3 %v5011_v13 }
 0x35f   : > { %v3181_v32 = vmax.f32 %v3103_v36, 0.0  ;;  %3144 = vmatmul.bf16.gmra.mxu1 %v5011_v13 }
 0x360   : > { %3244 = vst [vmem:[%s5073_s10 + $0x50] sm:$0xff] %v3180_v5 }
 0x361   : > { %3245 = vst [vmem:[%s5073_s10 + $0x58] sm:$0xff] %v3181_v32  ;;  %v2838_v9 = vpop.f32.mrf.mxu2  ;;  %v2927_v27 = vpop.f32.mrf.mxu3 }
 0x362   : > { %v2839_v46 = vadd.f32 %v2838_v9, %v5054_v48  ;;  %v3016_v59 = vpop.f32.mrf.mxu0 }
 0x363   : > { %v3017_v25 = vadd.f32 %v3016_v59, %v5059_v57 }
 0x364   : > { %v2928_v44 = vadd.f32 %v2927_v27, %v2839_v46  ;;  %v3107_v30 = vpop.f32.mrf.mxu1  ;;  %3055 = vmatmul.bf16.gmra.mxu0 %v5009_v15 }
 0x365   : > { %v3106_v8 = vadd.f32 %v3105_v29, %v3017_v25 }
 0x366   : > { %v3182_v12 = vmax.f32 %v2928_v44, 0.0 }
 0x367   : > { %v3183_v38 = vmax.f32 %v3106_v8, 0.0 }
 0x368   : > { %3246 = vst [vmem:[%s5073_s10 + $0x60] sm:$0xff] %v3182_v12 }
 0x369   : > { %3247 = vst [vmem:[%s5073_s10 + $0x68] sm:$0xff] %v3183_v38  ;;  %v2840_v13 = vpop.f32.mrf.mxu2  ;;  %v2929_v18 = vpop.f32.mrf.mxu3 }
 0x36a   : > { %v2841_v47 = vadd.f32 %v2840_v13, %v5054_v48  ;;  %v3018_v22 = vpop.f32.mrf.mxu0 }
 0x36b   : > { %v3019_v19 = vadd.f32 %v3018_v22, %v5059_v57 }
 0x36c   : > { %v2930_v54 = vadd.f32 %v2929_v18, %v2841_v47  ;;  %v3110_v24 = vpop.f32.mrf.mxu1 }
 0x36d   : > { %v3108_v39 = vadd.f32 %v3107_v30, %v3019_v19 }
 0x36e   : > { %v3184_v31 = vmax.f32 %v2930_v54, 0.0  ;;  %2882 = vmatmul.bf16.gmra.mxu2 %v5021_v1  ;;  %2971 = vmatmul.bf16.gmra.mxu3 %v5023_v4 }
 0x36f   : > { %v3185_v15 = vmax.f32 %v3108_v39, 0.0  ;;  %3149 = vmatmul.bf16.gmra.mxu1 %v5023_v4 }
 0x370   : > { %3248 = vst [vmem:[%s5073_s10 + $0x70] sm:$0xff] %v3184_v31 }
 0x371   : > { %3249 = vst [vmem:[%s5073_s10 + $0x78] sm:$0xff] %v3185_v15  ;;  %v2843_v20 = vpop.f32.mrf.mxu2  ;;  %v2932_v60 = vpop.f32.mrf.mxu3 }
 0x372   : > { %v2844_v52 = vadd.f32 %v2843_v20, %v5054_v48  ;;  %v3021_v16 = vpop.f32.mrf.mxu0 }
 0x373   : > { %v3022_v50 = vadd.f32 %v3021_v16, %v5059_v57 }
 0x374   : > { %v2933_v51 = vadd.f32 %v2932_v60, %v2844_v52  ;;  %v3112_v56 = vpop.f32.mrf.mxu1  ;;  %3060 = vmatmul.bf16.gmra.mxu0 %v5021_v1 }
 0x375   : > { %v3111_v10 = vadd.f32 %v3110_v24, %v3022_v50 }
 0x376   : > { %v3186_v62 = vmax.f32 %v2933_v51, 0.0 }
 0x377   : > { %v3187_v33 = vmax.f32 %v3111_v10, 0.0 }
 0x378   : > { %3250 = vst [vmem:[%s5073_s10 + $0x80] sm:$0xff] %v3186_v62 }
 0x379   : > { %3251 = vst [vmem:[%s5073_s10 + $0x88] sm:$0xff] %v3187_v33  ;;  %v2845_v4 = vpop.f32.mrf.mxu2  ;;  %v2934_v41 = vpop.f32.mrf.mxu3 }
 0x37a   : > { %v2846_v63 = vadd.f32 %v2845_v4, %v5054_v48  ;;  %v3023_v34 = vpop.f32.mrf.mxu0 }
 0x37b   : > { %v3024_v42 = vadd.f32 %v3023_v34, %v5059_v57 }
 0x37c   : > { %v2935_v49 = vadd.f32 %v2934_v41, %v2846_v63  ;;  %v3115_v6 = vpop.f32.mrf.mxu1 }
 0x37d   : > { %v3113_v43 = vadd.f32 %v3112_v56, %v3024_v42 }
 0x37e   : > { %v3188_v17 = vmax.f32 %v2935_v49, 0.0  ;;  %2887 = vmatmul.bf16.gmra.mxu2 %v5033_v45  ;;  %2976 = vmatmul.bf16.gmra.mxu3 %v5035_v37 }
 0x37f   : > { %v3189_v1 = vmax.f32 %v3113_v43, 0.0  ;;  %3154 = vmatmul.bf16.gmra.mxu1 %v5035_v37 }
 0x380   : > { %3252 = vst [vmem:[%s5073_s10 + $0x90] sm:$0xff] %v3188_v17 }
 0x381   : > { %3253 = vst [vmem:[%s5073_s10 + $0x98] sm:$0xff] %v3189_v1  ;;  %v2848_v0 = vpop.f32.mrf.mxu2  ;;  %v2937_v7 = vpop.f32.mrf.mxu3 }
 0x382   : > { %v2849_v14 = vadd.f32 %v2848_v0, %v5054_v48  ;;  %v3026_v35 = vpop.f32.mrf.mxu0 }
 0x383   : > { %v3027_v21 = vadd.f32 %v3026_v35, %v5059_v57 }
 0x384   : > { %v2938_v11 = vadd.f32 %v2937_v7, %v2849_v14  ;;  %v3117_v28 = vpop.f32.mrf.mxu1  ;;  %3065 = vmatmul.bf16.gmra.mxu0 %v5033_v45 }
 0x385   : > { %v3116_v53 = vadd.f32 %v3115_v6, %v3027_v21 }
 0x386   : > { %v3190_v3 = vmax.f32 %v2938_v11, 0.0 }
 0x387   : > { %v3191_v61 = vmax.f32 %v3116_v53, 0.0 }
 0x388   : > { %3254 = vst [vmem:[%s5073_s10 + $0xa0] sm:$0xff] %v3190_v3 }
 0x389   : > { %3255 = vst [vmem:[%s5073_s10 + $0xa8] sm:$0xff] %v3191_v61  ;;  %v2850_v37 = vpop.f32.mrf.mxu2  ;;  %v2939_v23 = vpop.f32.mrf.mxu3 }
 0x38a   : > { %v2851_v26 = vadd.f32 %v2850_v37, %v5054_v48  ;;  %v3028_v29 = vpop.f32.mrf.mxu0 }
 0x38b   : > { %v3029_v36 = vadd.f32 %v3028_v29, %v5059_v57 }
 0x38c   : > { %v2940_v5 = vadd.f32 %v2939_v23, %v2851_v26  ;;  %v3120_v32 = vpop.f32.mrf.mxu1 }
 0x38d   : > { %v3118_v9 = vadd.f32 %v3117_v28, %v3029_v36 }
 0x38e   : > { %v3192_v27 = vmax.f32 %v2940_v5, 0.0  ;;  %2892 = vmatmul.bf16.gmra.mxu2 %v5045_v55  ;;  %2981 = vmatmul.bf16.gmra.mxu3 %v5047_v2 }
 0x38f   : > { %v3193_v45 = vmax.f32 %v3118_v9, 0.0  ;;  %3159 = vmatmul.bf16.gmra.mxu1 %v5047_v2 }
 0x390   : > { %3256 = vst [vmem:[%s5073_s10 + $0xb0] sm:$0xff] %v3192_v27 }
 0x391   : > { %3257 = vst [vmem:[%s5073_s10 + $0xb8] sm:$0xff] %v3193_v45  ;;  %v2853_v46 = vpop.f32.mrf.mxu2  ;;  %v2942_v59 = vpop.f32.mrf.mxu3 }
 0x392   : > { %v2854_v25 = vadd.f32 %v2853_v46, %v5054_v48  ;;  %v3031_v44 = vpop.f32.mrf.mxu0 }
 0x393   : > { %v3032_v30 = vadd.f32 %v3031_v44, %v5059_v57 }
 0x394   : > { %v2943_v8 = vadd.f32 %v2942_v59, %v2854_v25  ;;  %v3122_v12 = vpop.f32.mrf.mxu1  ;;  %3070 = vmatmul.bf16.gmra.mxu0 %v5045_v55 }
 0x395   : > { %v3121_v38 = vadd.f32 %v3120_v32, %v3032_v30 }
 0x396   : > { %v3194_v13 = vmax.f32 %v2943_v8, 0.0 }
 0x397   : > { %v3195_v18 = vmax.f32 %v3121_v38, 0.0 }
 0x398   : > { %3258 = vst [vmem:[%s5073_s10 + $0xc0] sm:$0xff] %v3194_v13 }
 0x399   : > { %3259 = vst [vmem:[%s5073_s10 + $0xc8] sm:$0xff] %v3195_v18  ;;  %v2855_v2 = vpop.f32.mrf.mxu2  ;;  %v2944_v47 = vpop.f32.mrf.mxu3 }
 0x39a   : > { %v2856_v22 = vadd.f32 %v2855_v2, %v5054_v48  ;;  %v3033_v19 = vpop.f32.mrf.mxu0 }
 0x39b   : > { %v3034_v54 = vadd.f32 %v3033_v19, %v5059_v57 }
 0x39c   : > { %v2945_v24 = vadd.f32 %v2944_v47, %v2856_v22  ;;  %v3125_v39 = vpop.f32.mrf.mxu1 }
 0x39d   : > { %v3123_v31 = vadd.f32 %v3122_v12, %v3034_v54 }
 0x39e   : > { %v3196_v15 = vmax.f32 %v2945_v24, 0.0  ;;  %2897 = vmatmul.bf16.gmra.mxu2 %v5069_v40  ;;  %2986 = vmatmul.bf16.gmra.mxu3 %v5071_v58 }
 0x39f   : > { %v3197_v55 = vmax.f32 %v3123_v31, 0.0  ;;  %3164 = vmatmul.bf16.gmra.mxu1 %v5071_v58 }
 0x3a0   : > { %3260 = vst [vmem:[%s5073_s10 + $0xd0] sm:$0xff] %v3196_v15 }
 0x3a1   : > { %3261 = vst [vmem:[%s5073_s10 + $0xd8] sm:$0xff] %v3197_v55  ;;  %v2858_v20 = vpop.f32.mrf.mxu2  ;;  %v2947_v60 = vpop.f32.mrf.mxu3 }
 0x3a2   : > { %v2859_v52 = vadd.f32 %v2858_v20, %v5054_v48  ;;  %v3036_v16 = vpop.f32.mrf.mxu0 }
 0x3a3   : > { %v3037_v50 = vadd.f32 %v3036_v16, %v5059_v57 }
 0x3a4   : > { %v2948_v51 = vadd.f32 %v2947_v60, %v2859_v52  ;;  %v3127_v56 = vpop.f32.mrf.mxu1 }
 0x3a5   : > { %v3126_v10 = vadd.f32 %v3125_v39, %v3037_v50 }
 0x3a6   : > { %v3198_v62 = vmax.f32 %v2948_v51, 0.0 }
 0x3a7   : > { %v3199_v33 = vmax.f32 %v3126_v10, 0.0 }
 0x3a8   : > { %3262 = vst [vmem:[%s5073_s10 + $0xe0] sm:$0xff] %v3198_v62 }
 0x3a9   : > { %3263 = vst [vmem:[%s5073_s10 + $0xe8] sm:$0xff] %v3199_v33  ;;  %v2860_v4 = vpop.f32.mrf.mxu2  ;;  %v2949_v58 = vpop.f32.mrf.mxu3 }
 0x3aa   : > { %v2861_v41 = vadd.f32 %v2860_v4, %v5054_v48  ;;  %v3038_v63 = vpop.f32.mrf.mxu0 }
 0x3ab   : > { %v3039_v34 = vadd.f32 %v3038_v63, %v5059_v57 }
 0x3ac   : > { %v2950_v42 = vadd.f32 %v2949_v58, %v2861_v41  ;;  %v3130_v49 = vpop.f32.mrf.mxu1 }
 0x3ad   : > { %v3128_v6 = vadd.f32 %v3127_v56, %v3039_v34 }
 0x3ae   : > { %v3200_v43 = vmax.f32 %v2950_v42, 0.0  ;;  %3075 = vmatmul.bf16.vlgmr.msra.gmra.mxu2 %v5069_v40 }
 0x3af   : > { %v3201_v17 = vmax.f32 %v3128_v6, 0.0 }
 0x3b0   : > { %3264 = vst [vmem:[%s5073_s10 + $0xf0] sm:$0xff] %v3200_v43 }
 0x3b1   : > { %3265 = vst [vmem:[%s5073_s10 + $0xf8] sm:$0xff] %v3201_v17  ;;  %v2863_v1 = vpop.f32.mrf.mxu2  ;;  %v2952_v0 = vpop.f32.mrf.mxu3 }
 0x3b2   : > { %v2864_v7 = vadd.f32 %v2863_v1, %v5054_v48  ;;  %v3041_v14 = vpop.f32.mrf.mxu0 }
 0x3b3   : > { %v3042_v35 = vadd.f32 %v3041_v14, %v5059_v57 }
 0x3b4   : > { %v2953_v21 = vadd.f32 %v2952_v0, %v2864_v7  ;;  %v3132_v11 = vpop.f32.mrf.mxu1 }
 0x3b5   : > { %v3131_v28 = vadd.f32 %v3130_v49, %v3042_v35 }
 0x3b6   : > { %v3202_v53 = vmax.f32 %v2953_v21, 0.0 }
 0x3b7   : > { %v3203_v3 = vmax.f32 %v3131_v28, 0.0 }
 0x3b8   : > { %3266 = vst [vmem:[%s5073_s10 + $0x100] sm:$0xff] %v3202_v53 }
 0x3b9   : > { %3267 = vst [vmem:[%s5073_s10 + $0x108] sm:$0xff] %v3203_v3  ;;  %v2865_v40 = vpop.f32.mrf.mxu2  ;;  %v2954_v61 = vpop.f32.mrf.mxu3 }
 0x3ba   : > { %v2866_v37 = vadd.f32 %v2865_v40, %v5054_v48  ;;  %v3043_v23 = vpop.f32.mrf.mxu0 }
 0x3bb   : > { %v3044_v26 = vadd.f32 %v3043_v23, %v5059_v57 }
 0x3bc   : > { %v2955_v29 = vadd.f32 %v2954_v61, %v2866_v37  ;;  %v3135_v36 = vpop.f32.mrf.mxu1 }
 0x3bd   : > { %v3133_v5 = vadd.f32 %v3132_v11, %v3044_v26 }
 0x3be   : > { %v3204_v32 = vmax.f32 %v2955_v29, 0.0 }
 0x3bf   : > { %v3205_v9 = vmax.f32 %v3133_v5, 0.0 }
 0x3c0   : > { %3268 = vst [vmem:[%s5073_s10 + $0x110] sm:$0xff] %v3204_v32 }
 0x3c1   : > { %3269 = vst [vmem:[%s5073_s10 + $0x118] sm:$0xff] %v3205_v9  ;;  %v2868_v27 = vpop.f32.mrf.mxu2  ;;  %v2957_v45 = vpop.f32.mrf.mxu3 }
 0x3c2   : > { %v2869_v46 = vadd.f32 %v2868_v27, %v5054_v48  ;;  %v3046_v59 = vpop.f32.mrf.mxu0 }
 0x3c3   : > { %v3047_v25 = vadd.f32 %v3046_v59, %v5059_v57 }
 0x3c4   : > { %v2958_v44 = vadd.f32 %v2957_v45, %v2869_v46  ;;  %v3137_v30 = vpop.f32.mrf.mxu1 }
 0x3c5   : > { %v3136_v8 = vadd.f32 %v3135_v36, %v3047_v25 }
 0x3c6   : > { %v3206_v12 = vmax.f32 %v2958_v44, 0.0 }
 0x3c7   : > { %v3207_v38 = vmax.f32 %v3136_v8, 0.0 }
 0x3c8   : > { %3270 = vst [vmem:[%s5073_s10 + $0x120] sm:$0xff] %v3206_v12 }
 0x3c9   : > { %3271 = vst [vmem:[%s5073_s10 + $0x128] sm:$0xff] %v3207_v38  ;;  %v2870_v13 = vpop.f32.mrf.mxu2  ;;  %v2959_v18 = vpop.f32.mrf.mxu3 }
 0x3ca   : > { %v2871_v2 = vadd.f32 %v2870_v13, %v5054_v48  ;;  %v3048_v47 = vpop.f32.mrf.mxu0 }
 0x3cb   : > { %v3049_v22 = vadd.f32 %v3048_v47, %v5059_v57 }
 0x3cc   : > { %v2960_v19 = vadd.f32 %v2959_v18, %v2871_v2  ;;  %v3140_v54 = vpop.f32.mrf.mxu1 }
 0x3cd   : > { %v3138_v24 = vadd.f32 %v3137_v30, %v3049_v22 }
 0x3ce   : > { %v3208_v39 = vmax.f32 %v2960_v19, 0.0 }
 0x3cf   : > { %v3209_v31 = vmax.f32 %v3138_v24, 0.0 }
 0x3d0   : > { %3272 = vst [vmem:[%s5073_s10 + $0x130] sm:$0xff] %v3208_v39 }
 0x3d1   : > { %3273 = vst [vmem:[%s5073_s10 + $0x138] sm:$0xff] %v3209_v31  ;;  %v2873_v15 = vpop.f32.mrf.mxu2  ;;  %v2962_v55 = vpop.f32.mrf.mxu3 }
 0x3d2   : > { %v2874_v20 = vadd.f32 %v2873_v15, %v5054_v48  ;;  %v3051_v60 = vpop.f32.mrf.mxu0 }
 0x3d3   : > { %v3052_v52 = vadd.f32 %v3051_v60, %v5059_v57 }
 0x3d4   : > { %v2963_v16 = vadd.f32 %v2962_v55, %v2874_v20  ;;  %v3142_v50 = vpop.f32.mrf.mxu1 }
 0x3d5   : > { %v3141_v51 = vadd.f32 %v3140_v54, %v3052_v52 }
 0x3d6   : > { %v3210_v56 = vmax.f32 %v2963_v16, 0.0 }
 0x3d7   : > { %v3211_v10 = vmax.f32 %v3141_v51, 0.0 }
 0x3d8   : > { %3274 = vst [vmem:[%s5073_s10 + $0x140] sm:$0xff] %v3210_v56 }
 0x3d9   : > { %3275 = vst [vmem:[%s5073_s10 + $0x148] sm:$0xff] %v3211_v10  ;;  %v2875_v62 = vpop.f32.mrf.mxu2  ;;  %v2964_v33 = vpop.f32.mrf.mxu3 }
 0x3da   : > { %v2876_v4 = vadd.f32 %v2875_v62, %v5054_v48  ;;  %v3053_v58 = vpop.f32.mrf.mxu0 }
 0x3db   : > { %v3054_v41 = vadd.f32 %v3053_v58, %v5059_v57 }
 0x3dc   : > { %v2965_v63 = vadd.f32 %v2964_v33, %v2876_v4  ;;  %v3145_v34 = vpop.f32.mrf.mxu1 }
 0x3dd   : > { %v3143_v42 = vadd.f32 %v3142_v50, %v3054_v41 }
 0x3de   : > { %v3212_v49 = vmax.f32 %v2965_v63, 0.0 }
 0x3df   : > { %v3213_v6 = vmax.f32 %v3143_v42, 0.0 }
 0x3e0   : > { %3276 = vst [vmem:[%s5073_s10 + $0x150] sm:$0xff] %v3212_v49 }
 0x3e1   : > { %3277 = vst [vmem:[%s5073_s10 + $0x158] sm:$0xff] %v3213_v6  ;;  %v2878_v43 = vpop.f32.mrf.mxu2  ;;  %v2967_v17 = vpop.f32.mrf.mxu3 }
 0x3e2   : > { %v2879_v1 = vadd.f32 %v2878_v43, %v5054_v48  ;;  %v3056_v0 = vpop.f32.mrf.mxu0 }
 0x3e3   : > { %v3057_v7 = vadd.f32 %v3056_v0, %v5059_v57 }
 0x3e4   : > { %v2968_v14 = vadd.f32 %v2967_v17, %v2879_v1  ;;  %v3147_v35 = vpop.f32.mrf.mxu1 }
 0x3e5   : > { %v3146_v21 = vadd.f32 %v3145_v34, %v3057_v7 }
 0x3e6   : > { %v3214_v11 = vmax.f32 %v2968_v14, 0.0 }
 0x3e7   : > { %v3215_v28 = vmax.f32 %v3146_v21, 0.0 }
 0x3e8   : > { %3278 = vst [vmem:[%s5073_s10 + $0x160] sm:$0xff] %v3214_v11 }
 0x3e9   : > { %3279 = vst [vmem:[%s5073_s10 + $0x168] sm:$0xff] %v3215_v28  ;;  %v2880_v53 = vpop.f32.mrf.mxu2  ;;  %v2969_v3 = vpop.f32.mrf.mxu3 }
 0x3ea   : > { %v2881_v40 = vadd.f32 %v2880_v53, %v5054_v48  ;;  %v3058_v61 = vpop.f32.mrf.mxu0 }
 0x3eb   : > { %v3059_v37 = vadd.f32 %v3058_v61, %v5059_v57 }
 0x3ec   : > { %v2970_v23 = vadd.f32 %v2969_v3, %v2881_v40  ;;  %v3150_v26 = vpop.f32.mrf.mxu1 }
 0x3ed   : > { %v3148_v29 = vadd.f32 %v3147_v35, %v3059_v37 }
 0x3ee   : > { %v3216_v36 = vmax.f32 %v2970_v23, 0.0 }
 0x3ef   : > { %v3217_v5 = vmax.f32 %v3148_v29, 0.0 }
 0x3f0   : > { %3280 = vst [vmem:[%s5073_s10 + $0x170] sm:$0xff] %v3216_v36 }
 0x3f1   : > { %3281 = vst [vmem:[%s5073_s10 + $0x178] sm:$0xff] %v3217_v5  ;;  %v2883_v32 = vpop.f32.mrf.mxu2  ;;  %v2972_v9 = vpop.f32.mrf.mxu3 }
 0x3f2   : > { %v2884_v27 = vadd.f32 %v2883_v32, %v5054_v48  ;;  %v3061_v45 = vpop.f32.mrf.mxu0 }
 0x3f3   : > { %v3062_v46 = vadd.f32 %v3061_v45, %v5059_v57 }
 0x3f4   : > { %v2973_v59 = vadd.f32 %v2972_v9, %v2884_v27  ;;  %v3152_v25 = vpop.f32.mrf.mxu1 }
 0x3f5   : > { %v3151_v44 = vadd.f32 %v3150_v26, %v3062_v46 }
 0x3f6   : > { %v3218_v30 = vmax.f32 %v2973_v59, 0.0 }
 0x3f7   : > { %v3219_v8 = vmax.f32 %v3151_v44, 0.0 }
 0x3f8   : > { %3282 = vst [vmem:[%s5073_s10 + $0x180] sm:$0xff] %v3218_v30 }
 0x3f9   : > { %3283 = vst [vmem:[%s5073_s10 + $0x188] sm:$0xff] %v3219_v8  ;;  %v2885_v12 = vpop.f32.mrf.mxu2  ;;  %v2974_v38 = vpop.f32.mrf.mxu3 }
 0x3fa   : > { %v2886_v13 = vadd.f32 %v2885_v12, %v5054_v48  ;;  %v3063_v18 = vpop.f32.mrf.mxu0 }
 0x3fb   : > { %v3064_v2 = vadd.f32 %v3063_v18, %v5059_v57 }
 0x3fc   : > { %v2975_v47 = vadd.f32 %v2974_v38, %v2886_v13  ;;  %v3155_v54 = vpop.f32.mrf.mxu1 }
 0x3fd   : > { %v3153_v22 = vadd.f32 %v3152_v25, %v3064_v2 }
 0x3fe   : > { %v3220_v19 = vmax.f32 %v2975_v47, 0.0 }
 0x3ff   : > { %v3221_v24 = vmax.f32 %v3153_v22, 0.0 }
 0x400   : > { %3284 = vst [vmem:[%s5073_s10 + $0x190] sm:$0xff] %v3220_v19 }
 0x401   : > { %3285 = vst [vmem:[%s5073_s10 + $0x198] sm:$0xff] %v3221_v24  ;;  %v2888_v39 = vpop.f32.mrf.mxu2  ;;  %v2977_v31 = vpop.f32.mrf.mxu3 }
 0x402   : > { %v2889_v15 = vadd.f32 %v2888_v39, %v5054_v48  ;;  %v3066_v55 = vpop.f32.mrf.mxu0 }
 0x403   : > { %v3067_v20 = vadd.f32 %v3066_v55, %v5059_v57 }
 0x404   : > { %v2978_v60 = vadd.f32 %v2977_v31, %v2889_v15  ;;  %v3157_v51 = vpop.f32.mrf.mxu1 }
 0x405   : > { %v3156_v52 = vadd.f32 %v3155_v54, %v3067_v20 }
 0x406   : > { %v3222_v16 = vmax.f32 %v2978_v60, 0.0 }
 0x407   : > { %v3223_v50 = vmax.f32 %v3156_v52, 0.0 }
 0x408   : > { %3286 = vst [vmem:[%s5073_s10 + $0x1a0] sm:$0xff] %v3222_v16 }
 0x409   : > { %3287 = vst [vmem:[%s5073_s10 + $0x1a8] sm:$0xff] %v3223_v50  ;;  %v2890_v56 = vpop.f32.mrf.mxu2  ;;  %v2979_v10 = vpop.f32.mrf.mxu3 }
 0x40a   : > { %v2891_v62 = vadd.f32 %v2890_v56, %v5054_v48  ;;  %v3068_v33 = vpop.f32.mrf.mxu0 }
 0x40b   : > { %v3069_v4 = vadd.f32 %v3068_v33, %v5059_v57 }
 0x40c   : > { %v2980_v58 = vadd.f32 %v2979_v10, %v2891_v62  ;;  %v3160_v6 = vpop.f32.mrf.mxu1 }
 0x40d   : > { %v3158_v41 = vadd.f32 %v3157_v51, %v3069_v4 }
 0x40e   : > { %v3224_v63 = vmax.f32 %v2980_v58, 0.0 }
 0x40f   : > { %v3225_v34 = vmax.f32 %v3158_v41, 0.0 }
 0x410   : > { %3288 = vst [vmem:[%s5073_s10 + $0x1b0] sm:$0xff] %v3224_v63 }
 0x411   : > { %3289 = vst [vmem:[%s5073_s10 + $0x1b8] sm:$0xff] %v3225_v34  ;;  %v2893_v42 = vpop.f32.mrf.mxu2  ;;  %v2982_v49 = vpop.f32.mrf.mxu3 }
 0x412   : > { %v2894_v43 = vadd.f32 %v2893_v42, %v5054_v48  ;;  %v3071_v17 = vpop.f32.mrf.mxu0 }
 0x413   : > { %v3072_v1 = vadd.f32 %v3071_v17, %v5059_v57 }
 0x414   : > { %v2983_v0 = vadd.f32 %v2982_v49, %v2894_v43  ;;  %v3162_v40 = vpop.f32.mrf.mxu1 }
 0x415   : > { %v3161_v7 = vadd.f32 %v3160_v6, %v3072_v1 }
 0x416   : > { %v3226_v14 = vmax.f32 %v2983_v0, 0.0 }
 0x417   : > { %v3227_v35 = vmax.f32 %v3161_v7, 0.0 }
 0x418   : > { %3290 = vst [vmem:[%s5073_s10 + $0x1c0] sm:$0xff] %v3226_v14 }
 0x419   : > { %3291 = vst [vmem:[%s5073_s10 + $0x1c8] sm:$0xff] %v3227_v35  ;;  %v2895_v21 = vpop.f32.mrf.mxu2  ;;  %v2984_v11 = vpop.f32.mrf.mxu3 }
 0x41a   : > { %v2896_v28 = vadd.f32 %v2895_v21, %v5054_v48  ;;  %v3073_v53 = vpop.f32.mrf.mxu0 }
 0x41b   : > { %v3074_v3 = vadd.f32 %v3073_v53, %v5059_v57 }
 0x41c   : > { %v2985_v61 = vadd.f32 %v2984_v11, %v2896_v28  ;;  %v3165_v44 = vpop.f32.mrf.mxu1 }
 0x41d   : > { %v3163_v37 = vadd.f32 %v3162_v40, %v3074_v3 }
 0x41e   : > { %v3228_v23 = vmax.f32 %v2985_v61, 0.0 }
 0x41f   : > { %v3229_v26 = vmax.f32 %v3163_v37, 0.0 }
 0x420   : > { %3292 = vst [vmem:[%s5073_s10 + $0x1d0] sm:$0xff] %v3228_v23 }
 0x421   : > { %3293 = vst [vmem:[%s5073_s10 + $0x1d8] sm:$0xff] %v3229_v26  ;;  %v2898_v29 = vpop.f32.mrf.mxu2  ;;  %v2987_v36 = vpop.f32.mrf.mxu3 }
 0x422   : > { %v2899_v5 = vadd.f32 %v2898_v29, %v5054_v48 }
 0x424   : > { %v2988_v32 = vadd.f32 %v2987_v36, %v2899_v5  ;;  %v3167_v18 = vpop.f32.mrf.mxu1 }
 0x426   : > { %v3230_v9 = vmax.f32 %v2988_v32, 0.0 }
 0x428   : > { %3294 = vst [vmem:[%s5073_s10 + $0x1e0] sm:$0xff] %v3230_v9 }
 0x429   : > { %v2900_v27 = vpop.f32.mrf.mxu2  ;;  %v2989_v46 = vpop.f32.mrf.mxu3 }
 0x42a   : > { %v2901_v45 = vadd.f32 %v2900_v27, %v5054_v48 }
 0x42c   : > { %v2990_v59 = vadd.f32 %v2989_v46, %v2901_v45 }
 0x42e   : > { %v3232_v25 = vmax.f32 %v2990_v59, 0.0 }
 0x430   : > { %3296 = vst [vmem:[%s5073_s10 + $0x1f0] sm:$0xff] %v3232_v25 }
 0x431   : > { %v3076_v30 = vpop.f32.mrf.mxu2 }
 0x432   : > { %v3077_v8 = vadd.f32 %v3076_v30, %v5059_v57 }
 0x434   : > { %v3166_v12 = vadd.f32 %v3165_v44, %v3077_v8 }
 0x436   : > { %v3231_v38 = vmax.f32 %v3166_v12, 0.0 }
 0x438   : > { %3295 = vst [vmem:[%s5073_s10 + $0x1e8] sm:$0xff] %v3231_v38 }
 0x439   : > { %v3078_v48 = vpop.f32.mrf.mxu2 }
 0x43a   : > { %v3079_v13 = vadd.f32 %v3078_v48, %v5059_v57 }
 0x43c   : > { %v3168_v2 = vadd.f32 %v3167_v18, %v3079_v13 }
 0x43e   : > { %v3233_v47 = vmax.f32 %v3168_v2, 0.0 }
 0x440   : > { %3297 = vst [vmem:[%s5073_s10 + $0x1f8] sm:$0xff] %v3233_v47 }
 0x441   : > { %4171 = shalt.err (!%p4168_p8)
}
 0x442   : > { %s4220_s24 = smov 256   ;;  %s4221_s10 = smov 16  }
 0x443   : > { %4028 = dma.vmem_to_hbm [thread:$0]  (%p4305_p5), %s3313_s25, 8192, %s3315_s19, %s3299_s9, %s4220_s24, %s4220_s24, %s4221_s10  }
 0x444 PF: > { %p4045_p9 = scmp.ge.s32.totalorder %s4214_s30, 2  ;;  %s3329_s18 = sand.u32 1, %s4202_s27  }
 0x445   : > { %s3330_s20 = scalar_lea.sflag [#allocation4], %s3329_s18 }
 0x446   : > { %p4038_p10 = pnand %p4045_p9, %p4309_p6 }
 0x448   : > { %p4039_p11 = pneg %p4038_p10 }
 0x44a   : > { %4197 = dma.done.wait (%p4039_p11), %s3330_s20, 8192  }
 0x44b   : > { %4199 = vsyncadd (%p4039_p11), %s3330_s20, 4294959104  ;;  %p20_p12 = scmp.ge.s32.totalorder %s4292_s11, 4   ;;  %s5275_s27 = smov %s4206_s28 }
 0x44c   : > { %s5276_s28 = smov %s4210_s29  ;;  %s5277_s29 = smov %s4303_s14 }
 0x44d   : > { %s5278_s30 = smov %s4292_s11  ;;  %22 = sbr.rel (!%p20_p12) target bundleno = 5 (0x5), region = 96 }
 0x452   :  { %3336 = vsyncpa [#allocation3], 1 }
 0x453   :  { %3338 = vsyncpa [#allocation3 + $0x1], 1 }
 0x454   :  { %3339 = vsyncpa [#allocation6], 1 }
 0x455   :  { %3340 = vsyncpa [#allocation4], 1 }
 0x456   :  { %3342 = vsyncpa [#allocation4 + $0x1], 1 }

</bundles_post_ra>
